<compile_context>
chip_gen: v5e
topology: v5e:2x2
jax: 0.10.0
libtpu: 0.0.40
codegen_flags: <defaults>
</compile_context>

<pallas_src>
import functools
import math

import jax
import jax.numpy as jnp
from jax.experimental import pallas as pl
from jax.experimental.pallas import tpu as pltpu


# ----------------------------- fused Pallas kernel ------------------------------

def _bert_fused_kernel(
    emb_ref, eln_g_ref, eln_b_ref,
    wqkv_ref, bqkv_ref, wo_ref, bo_ref, ln1_g_ref, ln1_b_ref,
    w1_ref, b1_ref, w2_ref, b2_ref, ln2_g_ref, ln2_b_ref,
    pool_w_ref, pool_b_ref, fc_w_ref, fc_b_ref,
    probs_ref, fc_ref,
    ctx_vmem,
    *, B, S, nh, dh, L):
    """Single invocation: embeddings LN -> L unrolled encoder layers -> pooler -> FC."""
    H = nh * dh
    scale = 1.0 / math.sqrt(dh)
    bf16 = jnp.bfloat16

    def layernorm(y, g, b):
        mu = jnp.mean(y, axis=-1, keepdims=True)
        var = jnp.mean(jnp.square(y - mu), axis=-1, keepdims=True)
        return (y - mu) * jax.lax.rsqrt(var + 1e-12) * g + b

    # ---- embeddings LayerNorm ----
    x = layernorm(emb_ref[...], eln_g_ref[...], eln_b_ref[...])            # [B*S, H] f32

    # ---- encoder layers: statically unrolled, hidden state stays a live value ----
    for l in range(L):
        # fused Q|K|V projection: one bf16 MXU dot, f32 accumulate + f32 bias
        qkv = jnp.dot(x.astype(bf16), wqkv_ref[l],
                      preferred_element_type=jnp.float32) + bqkv_ref[l]    # [B*S, 3H] f32

        # per-head attention (nh statically unrolled); qkv is sliced as a live value
        for h in range(nh):
            q_h = qkv[:, h * dh:(h + 1) * dh].reshape(B, S, dh)
            k_h = qkv[:, H + h * dh:H + (h + 1) * dh].reshape(B, S, dh)
            v_h = qkv[:, 2 * H + h * dh:2 * H + (h + 1) * dh].reshape(B, S, dh)

            s = jnp.einsum("bqd,bkd->bqk", q_h.astype(bf16), k_h.astype(bf16),
                           preferred_element_type=jnp.float32) * scale     # [B, S, S] f32
            m = jnp.max(s, axis=-1, keepdims=True)
            e = jnp.exp(s - m)
            p = e / jnp.sum(e, axis=-1, keepdims=True)                     # exact softmax (f32)

            # lane-dense probs slab: layer l is [B*S, nh*S]; head h owns lanes [h*S, (h+1)*S)
            probs_ref[l, :, h * S:(h + 1) * S] = p.reshape(B * S, S)

            c = jnp.einsum("bqk,bkd->bqd", p.astype(bf16), v_h.astype(bf16),
                           preferred_element_type=jnp.float32)             # [B, S, dh] f32
            # stage the merged-head context so the output projection is ONE K=H matmul
            ctx_vmem[:, h * dh:(h + 1) * dh] = c.reshape(B * S, dh)

        # single output projection over the merged context (wo packed as [L, H, H])
        attn = jnp.dot(ctx_vmem[...].astype(bf16), wo_ref[l],
                       preferred_element_type=jnp.float32) + bo_ref[l]

        # residual + LayerNorm 1
        x = layernorm(attn + x, ln1_g_ref[l], ln1_b_ref[l])

        # feed-forward with exact erf GELU (parity with transformers' default "gelu")
        hdn = jnp.dot(x.astype(bf16), w1_ref[l],
                      preferred_element_type=jnp.float32) + b1_ref[l]
        hdn = 0.5 * hdn * (1.0 + jax.lax.erf(hdn * 0.7071067811865476))
        ffn = jnp.dot(hdn.astype(bf16), w2_ref[l],
                      preferred_element_type=jnp.float32) + b2_ref[l]

        # residual + LayerNorm 2 — carried to the next unrolled layer as a live value
        x = layernorm(ffn + x, ln2_g_ref[l], ln2_b_ref[l])

    # ---- pooler (tanh) + dropout(eval: identity) + FC head ----
    # Pooler is computed for every token row (same vreg cost as CLS-only at this size);
    # the wrapper selects the CLS rows — math identical to pooler(hidden[:, 0]).
    # TODO(synk): training-mode dropout (RNG mask) not implemented (eval identity here).
    pooled = jnp.tanh(jnp.dot(x.astype(bf16), pool_w_ref[...],
                              preferred_element_type=jnp.float32) + pool_b_ref[...])  # [B*S, H]
    # out_features == 1: keep it off the MXU — VPU multiply + lane reduce.
    fc_ref[...] = jnp.sum(pooled * fc_w_ref[...], axis=-1, keepdims=True) + fc_b_ref[...]


# ------------------------- model config & deterministic init -------------------------

CFG = dict(
    vocab_size=50,
    hidden=32,
    num_heads=4,
    head_dim=8,
    intermediate=64,
    num_layers=2,
    max_pos=16,
    type_vocab=2,
)


def init_params(key, cfg):
    H, I = cfg["hidden"], cfg["intermediate"]
    std = 0.02
    ks = iter(jax.random.split(key, 64))

    def w(shape):
        return (std * jax.random.normal(next(ks), shape)).astype(jnp.float32)

    params = {
        "word_emb": w((cfg["vocab_size"], H)),
        "pos_emb": w((cfg["max_pos"], H)),
        "type_emb": w((cfg["type_vocab"], H)),
        "emb_ln_g": jnp.ones((H,), jnp.float32),
        "emb_ln_b": jnp.zeros((H,), jnp.float32),
        "layers": [],
        "pool_w": w((H, H)),
        "pool_b": jnp.zeros((H,), jnp.float32),
        "fc_w": w((H, 1)),
        "fc_b": jnp.zeros((1,), jnp.float32),
    }
    for _ in range(cfg["num_layers"]):
        params["layers"].append(dict(
            wq=w((H, H)), bq=jnp.zeros((H,), jnp.float32),
            wk=w((H, H)), bk=jnp.zeros((H,), jnp.float32),
            wv=w((H, H)), bv=jnp.zeros((H,), jnp.float32),
            wo=w((H, H)), bo=jnp.zeros((H,), jnp.float32),
            ln1_g=jnp.ones((H,), jnp.float32), ln1_b=jnp.zeros((H,), jnp.float32),
            w1=w((H, I)), b1=jnp.zeros((I,), jnp.float32),
            w2=w((I, H)), b2=jnp.zeros((H,), jnp.float32),
            ln2_g=jnp.ones((H,), jnp.float32), ln2_b=jnp.zeros((H,), jnp.float32),
        ))
    return params


def pack_params(params, cfg):
    """Stack per-layer weights on a leading [L, ...] axis; fuse Q|K|V; bf16 matmul weights."""
    H, I, L = cfg["hidden"], cfg["intermediate"], cfg["num_layers"]
    layers = params["layers"]
    bf16, f32 = jnp.bfloat16, jnp.float32

    def stack(k):
        return jnp.stack([lp[k] for lp in layers])

    return {
        "word_emb": params["word_emb"],
        "pos_emb": params["pos_emb"],
        "type_emb": params["type_emb"],
        "emb_ln_g": params["emb_ln_g"].reshape(1, H).astype(f32),
        "emb_ln_b": params["emb_ln_b"].reshape(1, H).astype(f32),
        "wqkv": jnp.stack([jnp.concatenate([lp["wq"], lp["wk"], lp["wv"]], axis=1)
                           for lp in layers]).astype(bf16),                      # [L, H, 3H]
        "bqkv": jnp.stack([jnp.concatenate([lp["bq"], lp["bk"], lp["bv"]])
                           for lp in layers]).reshape(L, 1, 3 * H).astype(f32),
        "wo": stack("wo").astype(bf16),                                          # [L, H, H]
        "bo": stack("bo").reshape(L, 1, H).astype(f32),
        "ln1_g": stack("ln1_g").reshape(L, 1, H).astype(f32),
        "ln1_b": stack("ln1_b").reshape(L, 1, H).astype(f32),
        "w1": stack("w1").astype(bf16),                                          # [L, H, I]
        "b1": stack("b1").reshape(L, 1, I).astype(f32),
        "w2": stack("w2").astype(bf16),                                          # [L, I, H]
        "b2": stack("b2").reshape(L, 1, H).astype(f32),
        "ln2_g": stack("ln2_g").reshape(L, 1, H).astype(f32),
        "ln2_b": stack("ln2_b").reshape(L, 1, H).astype(f32),
        "pool_w": params["pool_w"].astype(bf16),                                 # [H, H]
        "pool_b": params["pool_b"].reshape(1, H).astype(f32),
        "fc_w": params["fc_w"].reshape(1, H).astype(f32),  # row layout for the VPU reduce
        "fc_b": params["fc_b"].reshape(1, 1).astype(f32),
    }


# --------------------------------- forward pass ---------------------------------

def bert_nn_forward(packed, ex, cfg):
    """Mirrors BertNN.forward: returns (fc_out [B, 1], attentions tuple of [B, nH, S, S])."""
    B, S = ex.shape
    H, nh, dh = cfg["hidden"], cfg["num_heads"], cfg["head_dim"]
    L = cfg["num_layers"]
    assert nh * dh == H

    # --- embeddings (gather glue); LayerNorm happens inside the fused kernel ---
    emb = (jnp.take(packed["word_emb"], ex, axis=0)
           + packed["pos_emb"][None, :S, :]
           + packed["type_emb"][0][None, None, :])                  # [B, S, H]
    emb2d = emb.reshape(B * S, H).astype(jnp.float32)

    kernel = functools.partial(_bert_fused_kernel, B=B, S=S, nh=nh, dh=dh, L=L)

    # No grid: single invocation, all (tiny) stacked weights live whole in VMEM,
    # layers are statically unrolled inside the kernel.
    probs, fc_all = pl.pallas_call(
        kernel,
        out_shape=(
            jax.ShapeDtypeStruct((L, B * S, nh * S), jnp.float32),   # lane-dense attention probs
            jax.ShapeDtypeStruct((B * S, 1), jnp.float32),           # fc head over all tokens
        ),
        scratch_shapes=[
            pltpu.VMEM((B * S, H), jnp.float32),                     # merged-head context staging
        ],
    )(emb2d, packed["emb_ln_g"], packed["emb_ln_b"],
      packed["wqkv"], packed["bqkv"], packed["wo"], packed["bo"],
      packed["ln1_g"], packed["ln1_b"], packed["w1"], packed["b1"],
      packed["w2"], packed["b2"], packed["ln2_g"], packed["ln2_b"],
      packed["pool_w"], packed["pool_b"], packed["fc_w"], packed["fc_b"])

    # probs[l, b*S+q, h*S+k] -> per-layer [B, nh, S, S]  (pure XLA reshape/transpose glue)
    probs = probs.reshape(L, B, S, nh, S).transpose(0, 1, 3, 2, 4)
    attentions = tuple(probs[l] for l in range(L))

    # fc head was computed for every token; select the CLS rows (== pooler(hidden[:, 0])).
    fc_out = fc_all.reshape(B, S, 1)[:, 0, :]                        # [B, 1]
    return fc_out, attentions


# --------------------------------------- main ---------------------------------------

if __name__ == "__main__":
    key = jax.random.PRNGKey(0)
    pkey, dkey = jax.random.split(key)

    params = init_params(pkey, CFG)
    packed = pack_params(params, CFG)

    B, S = 2, 8
    ex = jax.random.randint(dkey, (B, S), 0, CFG["vocab_size"], dtype=jnp.int32)

    fwd = jax.jit(lambda p, e: bert_nn_forward(p, e, CFG))
    fc_out, attentions = fwd(packed, ex)
    fc_out = jax.block_until_ready(fc_out)
    attentions = jax.block_until_ready(attentions)

    assert fc_out.shape == (B, 1)
    assert len(attentions) == CFG["num_layers"]
    assert all(a.shape == (B, CFG["num_heads"], S, S) for a in attentions)
    # Softmax denominator is now an exact f32 division, so rows sum to 1 to f32 precision.
    assert bool(jnp.allclose(jnp.sum(attentions[0], axis=-1), 1.0, atol=1e-4))
    assert bool(jnp.allclose(jnp.sum(attentions[-1], axis=-1), 1.0, atol=1e-4))
    assert bool(jnp.all(jnp.isfinite(fc_out)))

    print("KERNEL_OK")
</pallas_src>

<mosaic_0001>
module attributes {stable_mosaic.version = 11 : i64} {
  func.func @_bert_fused_kernel(%arg0: memref<16x32xf32, #tpu.memory_space<vmem>>, %arg1: memref<1x32xf32, #tpu.memory_space<vmem>>, %arg2: memref<1x32xf32, #tpu.memory_space<vmem>>, %arg3: memref<2x32x96xbf16, #tpu.memory_space<vmem>>, %arg4: memref<2x1x96xf32, #tpu.memory_space<vmem>>, %arg5: memref<2x32x32xbf16, #tpu.memory_space<vmem>>, %arg6: memref<2x1x32xf32, #tpu.memory_space<vmem>>, %arg7: memref<2x1x32xf32, #tpu.memory_space<vmem>>, %arg8: memref<2x1x32xf32, #tpu.memory_space<vmem>>, %arg9: memref<2x32x64xbf16, #tpu.memory_space<vmem>>, %arg10: memref<2x1x64xf32, #tpu.memory_space<vmem>>, %arg11: memref<2x64x32xbf16, #tpu.memory_space<vmem>>, %arg12: memref<2x1x32xf32, #tpu.memory_space<vmem>>, %arg13: memref<2x1x32xf32, #tpu.memory_space<vmem>>, %arg14: memref<2x1x32xf32, #tpu.memory_space<vmem>>, %arg15: memref<32x32xbf16, #tpu.memory_space<vmem>>, %arg16: memref<1x32xf32, #tpu.memory_space<vmem>>, %arg17: memref<1x32xf32, #tpu.memory_space<vmem>>, %arg18: memref<1x1xf32, #tpu.memory_space<vmem>>, %arg19: memref<2x16x32xf32, #tpu.memory_space<vmem>>, %arg20: memref<16x1xf32, #tpu.memory_space<vmem>>, %arg21: memref<16x32xf32, #tpu.memory_space<vmem>>) attributes {dimension_semantics = [], scalar_prefetch = 0 : i64, scratch_operands = 1 : i64, tpu.core_type = #tpu.core_type<tc>} {
    %c0 = arith.constant 0 : index
    %c0_0 = arith.constant 0 : index
    %0 = vector.load %arg0[%c0, %c0_0] : memref<16x32xf32, #tpu.memory_space<vmem>>, vector<16x32xf32>
    %c0_1 = arith.constant 0 : index
    %c0_2 = arith.constant 0 : index
    %1 = vector.load %arg1[%c0_1, %c0_2] : memref<1x32xf32, #tpu.memory_space<vmem>>, vector<1x32xf32>
    %c0_3 = arith.constant 0 : index
    %c0_4 = arith.constant 0 : index
    %2 = vector.load %arg2[%c0_3, %c0_4] : memref<1x32xf32, #tpu.memory_space<vmem>>, vector<1x32xf32>
    %cst = arith.constant dense<0.000000e+00> : vector<16xf32>
    %3 = vector.multi_reduction <add>, %0, %cst [1] : vector<16x32xf32> to vector<16xf32>
    %4 = vector.shape_cast %3 : vector<16xf32> to vector<16x1xf32>
    %cst_5 = arith.constant 3.200000e+01 : f32
    %5 = vector.broadcast %cst_5 : f32 to vector<16x1xf32>
    %6 = arith.divf %4, %5 : vector<16x1xf32>
    %7 = vector.broadcast %6 : vector<16x1xf32> to vector<16x32xf32>
    %8 = arith.subf %0, %7 : vector<16x32xf32>
    %9 = arith.mulf %8, %8 : vector<16x32xf32>
    %cst_6 = arith.constant dense<0.000000e+00> : vector<16xf32>
    %10 = vector.multi_reduction <add>, %9, %cst_6 [1] : vector<16x32xf32> to vector<16xf32>
    %11 = vector.shape_cast %10 : vector<16xf32> to vector<16x1xf32>
    %cst_7 = arith.constant 3.200000e+01 : f32
    %12 = vector.broadcast %cst_7 : f32 to vector<16x1xf32>
    %13 = arith.divf %11, %12 : vector<16x1xf32>
    %14 = vector.broadcast %6 : vector<16x1xf32> to vector<16x32xf32>
    %15 = arith.subf %0, %14 : vector<16x32xf32>
    %cst_8 = arith.constant 9.99999996E-13 : f32
    %16 = vector.broadcast %cst_8 : f32 to vector<16x1xf32>
    %17 = arith.addf %13, %16 : vector<16x1xf32>
    %18 = math.rsqrt %17 : vector<16x1xf32>
    %19 = vector.broadcast %18 : vector<16x1xf32> to vector<16x32xf32>
    %20 = arith.mulf %15, %19 : vector<16x32xf32>
    %21 = vector.broadcast %1 : vector<1x32xf32> to vector<16x32xf32>
    %22 = arith.mulf %20, %21 : vector<16x32xf32>
    %23 = vector.broadcast %2 : vector<1x32xf32> to vector<16x32xf32>
    %24 = arith.addf %22, %23 : vector<16x32xf32>
    %25 = arith.truncf %24 : vector<16x32xf32> to vector<16x32xbf16>
    %c0_9 = arith.constant 0 : index
    %c0_10 = arith.constant 0 : index
    %c0_11 = arith.constant 0 : index
    %26 = vector.load %arg3[%c0_9, %c0_10, %c0_11] : memref<2x32x96xbf16, #tpu.memory_space<vmem>>, vector<1x32x96xbf16>
    %27 = vector.shape_cast %26 : vector<1x32x96xbf16> to vector<32x96xbf16>
    %cst_12 = arith.constant dense<0.000000e+00> : vector<16x96xf32>
    %28 = tpu.matmul %25, %27, %cst_12 {dimension_numbers = #tpu.dot_dimension_numbers<[1], [0], [0], [1], [0, 0, 1, 1], [], []>} : vector<16x32xbf16>, vector<32x96xbf16>, vector<16x96xf32> -> vector<16x96xf32>
    %c0_13 = arith.constant 0 : index
    %c0_14 = arith.constant 0 : index
    %c0_15 = arith.constant 0 : index
    %29 = vector.load %arg4[%c0_13, %c0_14, %c0_15] : memref<2x1x96xf32, #tpu.memory_space<vmem>>, vector<1x1x96xf32>
    %30 = vector.shape_cast %29 : vector<1x1x96xf32> to vector<1x96xf32>
    %31 = vector.broadcast %30 : vector<1x96xf32> to vector<16x96xf32>
    %32 = arith.addf %28, %31 : vector<16x96xf32>
    %33 = vector.extract_strided_slice %32 {offsets = [0, 0], sizes = [16, 8], strides = [1, 1]} : vector<16x96xf32> to vector<16x8xf32>
    %34 = vector.shape_cast %33 : vector<16x8xf32> to vector<2x8x8xf32>
    %35 = vector.extract_strided_slice %32 {offsets = [0, 32], sizes = [16, 8], strides = [1, 1]} : vector<16x96xf32> to vector<16x8xf32>
    %36 = vector.shape_cast %35 : vector<16x8xf32> to vector<2x8x8xf32>
    %37 = vector.extract_strided_slice %32 {offsets = [0, 64], sizes = [16, 8], strides = [1, 1]} : vector<16x96xf32> to vector<16x8xf32>
    %38 = vector.shape_cast %37 : vector<16x8xf32> to vector<2x8x8xf32>
    %39 = arith.truncf %34 : vector<2x8x8xf32> to vector<2x8x8xbf16>
    %40 = arith.truncf %36 : vector<2x8x8xf32> to vector<2x8x8xbf16>
    "tpu.trace_start"() <{level = 10 : i32, message = "bqd,bkd->bqk"}> : () -> ()
    %cst_16 = arith.constant dense<0.000000e+00> : vector<2x8x8xf32>
    %41 = tpu.matmul %39, %40, %cst_16 {dimension_numbers = #tpu.dot_dimension_numbers<[2], [2], [1], [1], [0, 0, 0, 1, 1, 1], [0], [0]>} : vector<2x8x8xbf16>, vector<2x8x8xbf16>, vector<2x8x8xf32> -> vector<2x8x8xf32>
    "tpu.trace_stop"() : () -> ()
    %cst_17 = arith.constant 0.353553385 : f32
    %42 = vector.broadcast %cst_17 : f32 to vector<2x8x8xf32>
    %43 = arith.mulf %41, %42 : vector<2x8x8xf32>
    %cst_18 = arith.constant dense<0xFF800000> : vector<2x8xf32>
    %44 = vector.multi_reduction <maximumf>, %43, %cst_18 [2] : vector<2x8x8xf32> to vector<2x8xf32>
    %45 = vector.shape_cast %44 : vector<2x8xf32> to vector<2x8x1xf32>
    %46 = vector.broadcast %45 : vector<2x8x1xf32> to vector<2x8x8xf32>
    %47 = arith.subf %43, %46 : vector<2x8x8xf32>
    %48 = math.exp %47 : vector<2x8x8xf32>
    %cst_19 = arith.constant dense<0.000000e+00> : vector<2x8xf32>
    %49 = vector.multi_reduction <add>, %48, %cst_19 [2] : vector<2x8x8xf32> to vector<2x8xf32>
    %50 = vector.shape_cast %49 : vector<2x8xf32> to vector<2x8x1xf32>
    %51 = vector.broadcast %50 : vector<2x8x1xf32> to vector<2x8x8xf32>
    %52 = arith.divf %48, %51 : vector<2x8x8xf32>
    %53 = vector.shape_cast %52 : vector<2x8x8xf32> to vector<16x8xf32>
    %c0_20 = arith.constant 0 : index
    %c0_21 = arith.constant 0 : index
    %c0_22 = arith.constant 0 : index
    %54 = vector.load %arg19[%c0_20, %c0_21, %c0_22] : memref<2x16x32xf32, #tpu.memory_space<vmem>>, vector<1x16x8xf32>
    %55 = vector.shape_cast %54 : vector<1x16x8xf32> to vector<16x8xf32>
    %56 = vector.shape_cast %53 : vector<16x8xf32> to vector<1x16x8xf32>
    tpu.vector_store %arg19[%c0_20, %c0_21, %c0_22], %56 {strides = array<i32>} : memref<2x16x32xf32, #tpu.memory_space<vmem>>, vector<1x16x8xf32>,
    %57 = arith.truncf %52 : vector<2x8x8xf32> to vector<2x8x8xbf16>
    %58 = arith.truncf %38 : vector<2x8x8xf32> to vector<2x8x8xbf16>
    "tpu.trace_start"() <{level = 10 : i32, message = "bqk,bkd->bqd"}> : () -> ()
    %cst_23 = arith.constant dense<0.000000e+00> : vector<2x8x8xf32>
    %59 = tpu.matmul %57, %58, %cst_23 {dimension_numbers = #tpu.dot_dimension_numbers<[2], [1], [1], [2], [0, 0, 0, 1, 1, 2], [0], [0]>} : vector<2x8x8xbf16>, vector<2x8x8xbf16>, vector<2x8x8xf32> -> vector<2x8x8xf32>
    "tpu.trace_stop"() : () -> ()
    %60 = vector.shape_cast %59 : vector<2x8x8xf32> to vector<16x8xf32>
    %c0_24 = arith.constant 0 : index
    %c0_25 = arith.constant 0 : index
    %61 = vector.load %arg21[%c0_24, %c0_25] : memref<16x32xf32, #tpu.memory_space<vmem>>, vector<16x8xf32>
    tpu.vector_store %arg21[%c0_24, %c0_25], %60 {strides = array<i32>} : memref<16x32xf32, #tpu.memory_space<vmem>>, vector<16x8xf32>,
    %62 = vector.extract_strided_slice %32 {offsets = [0, 8], sizes = [16, 8], strides = [1, 1]} : vector<16x96xf32> to vector<16x8xf32>
    %63 = vector.shape_cast %62 : vector<16x8xf32> to vector<2x8x8xf32>
    %64 = vector.extract_strided_slice %32 {offsets = [0, 40], sizes = [16, 8], strides = [1, 1]} : vector<16x96xf32> to vector<16x8xf32>
    %65 = vector.shape_cast %64 : vector<16x8xf32> to vector<2x8x8xf32>
    %66 = vector.extract_strided_slice %32 {offsets = [0, 72], sizes = [16, 8], strides = [1, 1]} : vector<16x96xf32> to vector<16x8xf32>
    %67 = vector.shape_cast %66 : vector<16x8xf32> to vector<2x8x8xf32>
    %68 = arith.truncf %63 : vector<2x8x8xf32> to vector<2x8x8xbf16>
    %69 = arith.truncf %65 : vector<2x8x8xf32> to vector<2x8x8xbf16>
    "tpu.trace_start"() <{level = 10 : i32, message = "bqd,bkd->bqk"}> : () -> ()
    %cst_26 = arith.constant dense<0.000000e+00> : vector<2x8x8xf32>
    %70 = tpu.matmul %68, %69, %cst_26 {dimension_numbers = #tpu.dot_dimension_numbers<[2], [2], [1], [1], [0, 0, 0, 1, 1, 1], [0], [0]>} : vector<2x8x8xbf16>, vector<2x8x8xbf16>, vector<2x8x8xf32> -> vector<2x8x8xf32>
    "tpu.trace_stop"() : () -> ()
    %cst_27 = arith.constant 0.353553385 : f32
    %71 = vector.broadcast %cst_27 : f32 to vector<2x8x8xf32>
    %72 = arith.mulf %70, %71 : vector<2x8x8xf32>
    %cst_28 = arith.constant dense<0xFF800000> : vector<2x8xf32>
    %73 = vector.multi_reduction <maximumf>, %72, %cst_28 [2] : vector<2x8x8xf32> to vector<2x8xf32>
    %74 = vector.shape_cast %73 : vector<2x8xf32> to vector<2x8x1xf32>
    %75 = vector.broadcast %74 : vector<2x8x1xf32> to vector<2x8x8xf32>
    %76 = arith.subf %72, %75 : vector<2x8x8xf32>
    %77 = math.exp %76 : vector<2x8x8xf32>
    %cst_29 = arith.constant dense<0.000000e+00> : vector<2x8xf32>
    %78 = vector.multi_reduction <add>, %77, %cst_29 [2] : vector<2x8x8xf32> to vector<2x8xf32>
    %79 = vector.shape_cast %78 : vector<2x8xf32> to vector<2x8x1xf32>
    %80 = vector.broadcast %79 : vector<2x8x1xf32> to vector<2x8x8xf32>
    %81 = arith.divf %77, %80 : vector<2x8x8xf32>
    %82 = vector.shape_cast %81 : vector<2x8x8xf32> to vector<16x8xf32>
    %c0_30 = arith.constant 0 : index
    %c0_31 = arith.constant 0 : index
    %c8 = arith.constant 8 : index
    %83 = vector.load %arg19[%c0_30, %c0_31, %c8] : memref<2x16x32xf32, #tpu.memory_space<vmem>>, vector<1x16x8xf32>
    %84 = vector.shape_cast %83 : vector<1x16x8xf32> to vector<16x8xf32>
    %85 = vector.shape_cast %82 : vector<16x8xf32> to vector<1x16x8xf32>
    tpu.vector_store %arg19[%c0_30, %c0_31, %c8], %85 {strides = array<i32>} : memref<2x16x32xf32, #tpu.memory_space<vmem>>, vector<1x16x8xf32>,
    %86 = arith.truncf %81 : vector<2x8x8xf32> to vector<2x8x8xbf16>
    %87 = arith.truncf %67 : vector<2x8x8xf32> to vector<2x8x8xbf16>
    "tpu.trace_start"() <{level = 10 : i32, message = "bqk,bkd->bqd"}> : () -> ()
    %cst_32 = arith.constant dense<0.000000e+00> : vector<2x8x8xf32>
    %88 = tpu.matmul %86, %87, %cst_32 {dimension_numbers = #tpu.dot_dimension_numbers<[2], [1], [1], [2], [0, 0, 0, 1, 1, 2], [0], [0]>} : vector<2x8x8xbf16>, vector<2x8x8xbf16>, vector<2x8x8xf32> -> vector<2x8x8xf32>
    "tpu.trace_stop"() : () -> ()
    %89 = vector.shape_cast %88 : vector<2x8x8xf32> to vector<16x8xf32>
    %c0_33 = arith.constant 0 : index
    %c8_34 = arith.constant 8 : index
    %90 = vector.load %arg21[%c0_33, %c8_34] : memref<16x32xf32, #tpu.memory_space<vmem>>, vector<16x8xf32>
    tpu.vector_store %arg21[%c0_33, %c8_34], %89 {strides = array<i32>} : memref<16x32xf32, #tpu.memory_space<vmem>>, vector<16x8xf32>,
    %91 = vector.extract_strided_slice %32 {offsets = [0, 16], sizes = [16, 8], strides = [1, 1]} : vector<16x96xf32> to vector<16x8xf32>
    %92 = vector.shape_cast %91 : vector<16x8xf32> to vector<2x8x8xf32>
    %93 = vector.extract_strided_slice %32 {offsets = [0, 48], sizes = [16, 8], strides = [1, 1]} : vector<16x96xf32> to vector<16x8xf32>
    %94 = vector.shape_cast %93 : vector<16x8xf32> to vector<2x8x8xf32>
    %95 = vector.extract_strided_slice %32 {offsets = [0, 80], sizes = [16, 8], strides = [1, 1]} : vector<16x96xf32> to vector<16x8xf32>
    %96 = vector.shape_cast %95 : vector<16x8xf32> to vector<2x8x8xf32>
    %97 = arith.truncf %92 : vector<2x8x8xf32> to vector<2x8x8xbf16>
    %98 = arith.truncf %94 : vector<2x8x8xf32> to vector<2x8x8xbf16>
    "tpu.trace_start"() <{level = 10 : i32, message = "bqd,bkd->bqk"}> : () -> ()
    %cst_35 = arith.constant dense<0.000000e+00> : vector<2x8x8xf32>
    %99 = tpu.matmul %97, %98, %cst_35 {dimension_numbers = #tpu.dot_dimension_numbers<[2], [2], [1], [1], [0, 0, 0, 1, 1, 1], [0], [0]>} : vector<2x8x8xbf16>, vector<2x8x8xbf16>, vector<2x8x8xf32> -> vector<2x8x8xf32>
    "tpu.trace_stop"() : () -> ()
    %cst_36 = arith.constant 0.353553385 : f32
    %100 = vector.broadcast %cst_36 : f32 to vector<2x8x8xf32>
    %101 = arith.mulf %99, %100 : vector<2x8x8xf32>
    %cst_37 = arith.constant dense<0xFF800000> : vector<2x8xf32>
    %102 = vector.multi_reduction <maximumf>, %101, %cst_37 [2] : vector<2x8x8xf32> to vector<2x8xf32>
    %103 = vector.shape_cast %102 : vector<2x8xf32> to vector<2x8x1xf32>
    %104 = vector.broadcast %103 : vector<2x8x1xf32> to vector<2x8x8xf32>
    %105 = arith.subf %101, %104 : vector<2x8x8xf32>
    %106 = math.exp %105 : vector<2x8x8xf32>
    %cst_38 = arith.constant dense<0.000000e+00> : vector<2x8xf32>
    %107 = vector.multi_reduction <add>, %106, %cst_38 [2] : vector<2x8x8xf32> to vector<2x8xf32>
    %108 = vector.shape_cast %107 : vector<2x8xf32> to vector<2x8x1xf32>
    %109 = vector.broadcast %108 : vector<2x8x1xf32> to vector<2x8x8xf32>
    %110 = arith.divf %106, %109 : vector<2x8x8xf32>
    %111 = vector.shape_cast %110 : vector<2x8x8xf32> to vector<16x8xf32>
    %c0_39 = arith.constant 0 : index
    %c0_40 = arith.constant 0 : index
    %c16 = arith.constant 16 : index
    %112 = vector.load %arg19[%c0_39, %c0_40, %c16] : memref<2x16x32xf32, #tpu.memory_space<vmem>>, vector<1x16x8xf32>
    %113 = vector.shape_cast %112 : vector<1x16x8xf32> to vector<16x8xf32>
    %114 = vector.shape_cast %111 : vector<16x8xf32> to vector<1x16x8xf32>
    tpu.vector_store %arg19[%c0_39, %c0_40, %c16], %114 {strides = array<i32>} : memref<2x16x32xf32, #tpu.memory_space<vmem>>, vector<1x16x8xf32>,
    %115 = arith.truncf %110 : vector<2x8x8xf32> to vector<2x8x8xbf16>
    %116 = arith.truncf %96 : vector<2x8x8xf32> to vector<2x8x8xbf16>
    "tpu.trace_start"() <{level = 10 : i32, message = "bqk,bkd->bqd"}> : () -> ()
    %cst_41 = arith.constant dense<0.000000e+00> : vector<2x8x8xf32>
    %117 = tpu.matmul %115, %116, %cst_41 {dimension_numbers = #tpu.dot_dimension_numbers<[2], [1], [1], [2], [0, 0, 0, 1, 1, 2], [0], [0]>} : vector<2x8x8xbf16>, vector<2x8x8xbf16>, vector<2x8x8xf32> -> vector<2x8x8xf32>
    "tpu.trace_stop"() : () -> ()
    %118 = vector.shape_cast %117 : vector<2x8x8xf32> to vector<16x8xf32>
    %c0_42 = arith.constant 0 : index
    %c16_43 = arith.constant 16 : index
    %119 = vector.load %arg21[%c0_42, %c16_43] : memref<16x32xf32, #tpu.memory_space<vmem>>, vector<16x8xf32>
    tpu.vector_store %arg21[%c0_42, %c16_43], %118 {strides = array<i32>} : memref<16x32xf32, #tpu.memory_space<vmem>>, vector<16x8xf32>,
    %120 = vector.extract_strided_slice %32 {offsets = [0, 24], sizes = [16, 8], strides = [1, 1]} : vector<16x96xf32> to vector<16x8xf32>
    %121 = vector.shape_cast %120 : vector<16x8xf32> to vector<2x8x8xf32>
    %122 = vector.extract_strided_slice %32 {offsets = [0, 56], sizes = [16, 8], strides = [1, 1]} : vector<16x96xf32> to vector<16x8xf32>
    %123 = vector.shape_cast %122 : vector<16x8xf32> to vector<2x8x8xf32>
    %124 = vector.extract_strided_slice %32 {offsets = [0, 88], sizes = [16, 8], strides = [1, 1]} : vector<16x96xf32> to vector<16x8xf32>
    %125 = vector.shape_cast %124 : vector<16x8xf32> to vector<2x8x8xf32>
    %126 = arith.truncf %121 : vector<2x8x8xf32> to vector<2x8x8xbf16>
    %127 = arith.truncf %123 : vector<2x8x8xf32> to vector<2x8x8xbf16>
    "tpu.trace_start"() <{level = 10 : i32, message = "bqd,bkd->bqk"}> : () -> ()
    %cst_44 = arith.constant dense<0.000000e+00> : vector<2x8x8xf32>
    %128 = tpu.matmul %126, %127, %cst_44 {dimension_numbers = #tpu.dot_dimension_numbers<[2], [2], [1], [1], [0, 0, 0, 1, 1, 1], [0], [0]>} : vector<2x8x8xbf16>, vector<2x8x8xbf16>, vector<2x8x8xf32> -> vector<2x8x8xf32>
    "tpu.trace_stop"() : () -> ()
    %cst_45 = arith.constant 0.353553385 : f32
    %129 = vector.broadcast %cst_45 : f32 to vector<2x8x8xf32>
    %130 = arith.mulf %128, %129 : vector<2x8x8xf32>
    %cst_46 = arith.constant dense<0xFF800000> : vector<2x8xf32>
    %131 = vector.multi_reduction <maximumf>, %130, %cst_46 [2] : vector<2x8x8xf32> to vector<2x8xf32>
    %132 = vector.shape_cast %131 : vector<2x8xf32> to vector<2x8x1xf32>
    %133 = vector.broadcast %132 : vector<2x8x1xf32> to vector<2x8x8xf32>
    %134 = arith.subf %130, %133 : vector<2x8x8xf32>
    %135 = math.exp %134 : vector<2x8x8xf32>
    %cst_47 = arith.constant dense<0.000000e+00> : vector<2x8xf32>
    %136 = vector.multi_reduction <add>, %135, %cst_47 [2] : vector<2x8x8xf32> to vector<2x8xf32>
    %137 = vector.shape_cast %136 : vector<2x8xf32> to vector<2x8x1xf32>
    %138 = vector.broadcast %137 : vector<2x8x1xf32> to vector<2x8x8xf32>
    %139 = arith.divf %135, %138 : vector<2x8x8xf32>
    %140 = vector.shape_cast %139 : vector<2x8x8xf32> to vector<16x8xf32>
    %c0_48 = arith.constant 0 : index
    %c0_49 = arith.constant 0 : index
    %c24 = arith.constant 24 : index
    %141 = vector.load %arg19[%c0_48, %c0_49, %c24] : memref<2x16x32xf32, #tpu.memory_space<vmem>>, vector<1x16x8xf32>
    %142 = vector.shape_cast %141 : vector<1x16x8xf32> to vector<16x8xf32>
    %143 = vector.shape_cast %140 : vector<16x8xf32> to vector<1x16x8xf32>
    tpu.vector_store %arg19[%c0_48, %c0_49, %c24], %143 {strides = array<i32>} : memref<2x16x32xf32, #tpu.memory_space<vmem>>, vector<1x16x8xf32>,
    %144 = arith.truncf %139 : vector<2x8x8xf32> to vector<2x8x8xbf16>
    %145 = arith.truncf %125 : vector<2x8x8xf32> to vector<2x8x8xbf16>
    "tpu.trace_start"() <{level = 10 : i32, message = "bqk,bkd->bqd"}> : () -> ()
    %cst_50 = arith.constant dense<0.000000e+00> : vector<2x8x8xf32>
    %146 = tpu.matmul %144, %145, %cst_50 {dimension_numbers = #tpu.dot_dimension_numbers<[2], [1], [1], [2], [0, 0, 0, 1, 1, 2], [0], [0]>} : vector<2x8x8xbf16>, vector<2x8x8xbf16>, vector<2x8x8xf32> -> vector<2x8x8xf32>
    "tpu.trace_stop"() : () -> ()
    %147 = vector.shape_cast %146 : vector<2x8x8xf32> to vector<16x8xf32>
    %c0_51 = arith.constant 0 : index
    %c24_52 = arith.constant 24 : index
    %148 = vector.load %arg21[%c0_51, %c24_52] : memref<16x32xf32, #tpu.memory_space<vmem>>, vector<16x8xf32>
    tpu.vector_store %arg21[%c0_51, %c24_52], %147 {strides = array<i32>} : memref<16x32xf32, #tpu.memory_space<vmem>>, vector<16x8xf32>,
    %c0_53 = arith.constant 0 : index
    %c0_54 = arith.constant 0 : index
    %149 = vector.load %arg21[%c0_53, %c0_54] : memref<16x32xf32, #tpu.memory_space<vmem>>, vector<16x32xf32>
    %150 = arith.truncf %149 : vector<16x32xf32> to vector<16x32xbf16>
    %c0_55 = arith.constant 0 : index
    %c0_56 = arith.constant 0 : index
    %c0_57 = arith.constant 0 : index
    %151 = vector.load %arg5[%c0_55, %c0_56, %c0_57] : memref<2x32x32xbf16, #tpu.memory_space<vmem>>, vector<1x32x32xbf16>
    %152 = vector.shape_cast %151 : vector<1x32x32xbf16> to vector<32x32xbf16>
    %cst_58 = arith.constant dense<0.000000e+00> : vector<16x32xf32>
    %153 = tpu.matmul %150, %152, %cst_58 {dimension_numbers = #tpu.dot_dimension_numbers<[1], [0], [0], [1], [0, 0, 1, 1], [], []>} : vector<16x32xbf16>, vector<32x32xbf16>, vector<16x32xf32> -> vector<16x32xf32>
    %c0_59 = arith.constant 0 : index
    %c0_60 = arith.constant 0 : index
    %c0_61 = arith.constant 0 : index
    %154 = vector.load %arg6[%c0_59, %c0_60, %c0_61] : memref<2x1x32xf32, #tpu.memory_space<vmem>>, vector<1x1x32xf32>
    %155 = vector.shape_cast %154 : vector<1x1x32xf32> to vector<1x32xf32>
    %156 = vector.broadcast %155 : vector<1x32xf32> to vector<16x32xf32>
    %157 = arith.addf %153, %156 : vector<16x32xf32>
    %158 = arith.addf %157, %24 : vector<16x32xf32>
    %c0_62 = arith.constant 0 : index
    %c0_63 = arith.constant 0 : index
    %c0_64 = arith.constant 0 : index
    %159 = vector.load %arg7[%c0_62, %c0_63, %c0_64] : memref<2x1x32xf32, #tpu.memory_space<vmem>>, vector<1x1x32xf32>
    %160 = vector.shape_cast %159 : vector<1x1x32xf32> to vector<1x32xf32>
    %c0_65 = arith.constant 0 : index
    %c0_66 = arith.constant 0 : index
    %c0_67 = arith.constant 0 : index
    %161 = vector.load %arg8[%c0_65, %c0_66, %c0_67] : memref<2x1x32xf32, #tpu.memory_space<vmem>>, vector<1x1x32xf32>
    %162 = vector.shape_cast %161 : vector<1x1x32xf32> to vector<1x32xf32>
    %cst_68 = arith.constant dense<0.000000e+00> : vector<16xf32>
    %163 = vector.multi_reduction <add>, %158, %cst_68 [1] : vector<16x32xf32> to vector<16xf32>
    %164 = vector.shape_cast %163 : vector<16xf32> to vector<16x1xf32>
    %cst_69 = arith.constant 3.200000e+01 : f32
    %165 = vector.broadcast %cst_69 : f32 to vector<16x1xf32>
    %166 = arith.divf %164, %165 : vector<16x1xf32>
    %167 = vector.broadcast %166 : vector<16x1xf32> to vector<16x32xf32>
    %168 = arith.subf %158, %167 : vector<16x32xf32>
    %169 = arith.mulf %168, %168 : vector<16x32xf32>
    %cst_70 = arith.constant dense<0.000000e+00> : vector<16xf32>
    %170 = vector.multi_reduction <add>, %169, %cst_70 [1] : vector<16x32xf32> to vector<16xf32>
    %171 = vector.shape_cast %170 : vector<16xf32> to vector<16x1xf32>
    %cst_71 = arith.constant 3.200000e+01 : f32
    %172 = vector.broadcast %cst_71 : f32 to vector<16x1xf32>
    %173 = arith.divf %171, %172 : vector<16x1xf32>
    %174 = vector.broadcast %166 : vector<16x1xf32> to vector<16x32xf32>
    %175 = arith.subf %158, %174 : vector<16x32xf32>
    %cst_72 = arith.constant 9.99999996E-13 : f32
    %176 = vector.broadcast %cst_72 : f32 to vector<16x1xf32>
    %177 = arith.addf %173, %176 : vector<16x1xf32>
    %178 = math.rsqrt %177 : vector<16x1xf32>
    %179 = vector.broadcast %178 : vector<16x1xf32> to vector<16x32xf32>
    %180 = arith.mulf %175, %179 : vector<16x32xf32>
    %181 = vector.broadcast %160 : vector<1x32xf32> to vector<16x32xf32>
    %182 = arith.mulf %180, %181 : vector<16x32xf32>
    %183 = vector.broadcast %162 : vector<1x32xf32> to vector<16x32xf32>
    %184 = arith.addf %182, %183 : vector<16x32xf32>
    %185 = arith.truncf %184 : vector<16x32xf32> to vector<16x32xbf16>
    %c0_73 = arith.constant 0 : index
    %c0_74 = arith.constant 0 : index
    %c0_75 = arith.constant 0 : index
    %186 = vector.load %arg9[%c0_73, %c0_74, %c0_75] : memref<2x32x64xbf16, #tpu.memory_space<vmem>>, vector<1x32x64xbf16>
    %187 = vector.shape_cast %186 : vector<1x32x64xbf16> to vector<32x64xbf16>
    %cst_76 = arith.constant dense<0.000000e+00> : vector<16x64xf32>
    %188 = tpu.matmul %185, %187, %cst_76 {dimension_numbers = #tpu.dot_dimension_numbers<[1], [0], [0], [1], [0, 0, 1, 1], [], []>} : vector<16x32xbf16>, vector<32x64xbf16>, vector<16x64xf32> -> vector<16x64xf32>
    %c0_77 = arith.constant 0 : index
    %c0_78 = arith.constant 0 : index
    %c0_79 = arith.constant 0 : index
    %189 = vector.load %arg10[%c0_77, %c0_78, %c0_79] : memref<2x1x64xf32, #tpu.memory_space<vmem>>, vector<1x1x64xf32>
    %190 = vector.shape_cast %189 : vector<1x1x64xf32> to vector<1x64xf32>
    %191 = vector.broadcast %190 : vector<1x64xf32> to vector<16x64xf32>
    %192 = arith.addf %188, %191 : vector<16x64xf32>
    %cst_80 = arith.constant 5.000000e-01 : f32
    %193 = vector.broadcast %cst_80 : f32 to vector<16x64xf32>
    %194 = arith.mulf %193, %192 : vector<16x64xf32>
    %cst_81 = arith.constant 0.707106769 : f32
    %195 = vector.broadcast %cst_81 : f32 to vector<16x64xf32>
    %196 = arith.mulf %192, %195 : vector<16x64xf32>
    %197 = math.erf %196 : vector<16x64xf32>
    %cst_82 = arith.constant 1.000000e+00 : f32
    %198 = vector.broadcast %cst_82 : f32 to vector<16x64xf32>
    %199 = arith.addf %198, %197 : vector<16x64xf32>
    %200 = arith.mulf %194, %199 : vector<16x64xf32>
    %201 = arith.truncf %200 : vector<16x64xf32> to vector<16x64xbf16>
    %c0_83 = arith.constant 0 : index
    %c0_84 = arith.constant 0 : index
    %c0_85 = arith.constant 0 : index
    %202 = vector.load %arg11[%c0_83, %c0_84, %c0_85] : memref<2x64x32xbf16, #tpu.memory_space<vmem>>, vector<1x64x32xbf16>
    %203 = vector.shape_cast %202 : vector<1x64x32xbf16> to vector<64x32xbf16>
    %cst_86 = arith.constant dense<0.000000e+00> : vector<16x32xf32>
    %204 = tpu.matmul %201, %203, %cst_86 {dimension_numbers = #tpu.dot_dimension_numbers<[1], [0], [0], [1], [0, 0, 1, 1], [], []>} : vector<16x64xbf16>, vector<64x32xbf16>, vector<16x32xf32> -> vector<16x32xf32>
    %c0_87 = arith.constant 0 : index
    %c0_88 = arith.constant 0 : index
    %c0_89 = arith.constant 0 : index
    %205 = vector.load %arg12[%c0_87, %c0_88, %c0_89] : memref<2x1x32xf32, #tpu.memory_space<vmem>>, vector<1x1x32xf32>
    %206 = vector.shape_cast %205 : vector<1x1x32xf32> to vector<1x32xf32>
    %207 = vector.broadcast %206 : vector<1x32xf32> to vector<16x32xf32>
    %208 = arith.addf %204, %207 : vector<16x32xf32>
    %209 = arith.addf %208, %184 : vector<16x32xf32>
    %c0_90 = arith.constant 0 : index
    %c0_91 = arith.constant 0 : index
    %c0_92 = arith.constant 0 : index
    %210 = vector.load %arg13[%c0_90, %c0_91, %c0_92] : memref<2x1x32xf32, #tpu.memory_space<vmem>>, vector<1x1x32xf32>
    %211 = vector.shape_cast %210 : vector<1x1x32xf32> to vector<1x32xf32>
    %c0_93 = arith.constant 0 : index
    %c0_94 = arith.constant 0 : index
    %c0_95 = arith.constant 0 : index
    %212 = vector.load %arg14[%c0_93, %c0_94, %c0_95] : memref<2x1x32xf32, #tpu.memory_space<vmem>>, vector<1x1x32xf32>
    %213 = vector.shape_cast %212 : vector<1x1x32xf32> to vector<1x32xf32>
    %cst_96 = arith.constant dense<0.000000e+00> : vector<16xf32>
    %214 = vector.multi_reduction <add>, %209, %cst_96 [1] : vector<16x32xf32> to vector<16xf32>
    %215 = vector.shape_cast %214 : vector<16xf32> to vector<16x1xf32>
    %cst_97 = arith.constant 3.200000e+01 : f32
    %216 = vector.broadcast %cst_97 : f32 to vector<16x1xf32>
    %217 = arith.divf %215, %216 : vector<16x1xf32>
    %218 = vector.broadcast %217 : vector<16x1xf32> to vector<16x32xf32>
    %219 = arith.subf %209, %218 : vector<16x32xf32>
    %220 = arith.mulf %219, %219 : vector<16x32xf32>
    %cst_98 = arith.constant dense<0.000000e+00> : vector<16xf32>
    %221 = vector.multi_reduction <add>, %220, %cst_98 [1] : vector<16x32xf32> to vector<16xf32>
    %222 = vector.shape_cast %221 : vector<16xf32> to vector<16x1xf32>
    %cst_99 = arith.constant 3.200000e+01 : f32
    %223 = vector.broadcast %cst_99 : f32 to vector<16x1xf32>
    %224 = arith.divf %222, %223 : vector<16x1xf32>
    %225 = vector.broadcast %217 : vector<16x1xf32> to vector<16x32xf32>
    %226 = arith.subf %209, %225 : vector<16x32xf32>
    %cst_100 = arith.constant 9.99999996E-13 : f32
    %227 = vector.broadcast %cst_100 : f32 to vector<16x1xf32>
    %228 = arith.addf %224, %227 : vector<16x1xf32>
    %229 = math.rsqrt %228 : vector<16x1xf32>
    %230 = vector.broadcast %229 : vector<16x1xf32> to vector<16x32xf32>
    %231 = arith.mulf %226, %230 : vector<16x32xf32>
    %232 = vector.broadcast %211 : vector<1x32xf32> to vector<16x32xf32>
    %233 = arith.mulf %231, %232 : vector<16x32xf32>
    %234 = vector.broadcast %213 : vector<1x32xf32> to vector<16x32xf32>
    %235 = arith.addf %233, %234 : vector<16x32xf32>
    %236 = arith.truncf %235 : vector<16x32xf32> to vector<16x32xbf16>
    %c1 = arith.constant 1 : index
    %c0_101 = arith.constant 0 : index
    %c0_102 = arith.constant 0 : index
    %237 = vector.load %arg3[%c1, %c0_101, %c0_102] : memref<2x32x96xbf16, #tpu.memory_space<vmem>>, vector<1x32x96xbf16>
    %238 = vector.shape_cast %237 : vector<1x32x96xbf16> to vector<32x96xbf16>
    %cst_103 = arith.constant dense<0.000000e+00> : vector<16x96xf32>
    %239 = tpu.matmul %236, %238, %cst_103 {dimension_numbers = #tpu.dot_dimension_numbers<[1], [0], [0], [1], [0, 0, 1, 1], [], []>} : vector<16x32xbf16>, vector<32x96xbf16>, vector<16x96xf32> -> vector<16x96xf32>
    %c1_104 = arith.constant 1 : index
    %c0_105 = arith.constant 0 : index
    %c0_106 = arith.constant 0 : index
    %240 = vector.load %arg4[%c1_104, %c0_105, %c0_106] : memref<2x1x96xf32, #tpu.memory_space<vmem>>, vector<1x1x96xf32>
    %241 = vector.shape_cast %240 : vector<1x1x96xf32> to vector<1x96xf32>
    %242 = vector.broadcast %241 : vector<1x96xf32> to vector<16x96xf32>
    %243 = arith.addf %239, %242 : vector<16x96xf32>
    %244 = vector.extract_strided_slice %243 {offsets = [0, 0], sizes = [16, 8], strides = [1, 1]} : vector<16x96xf32> to vector<16x8xf32>
    %245 = vector.shape_cast %244 : vector<16x8xf32> to vector<2x8x8xf32>
    %246 = vector.extract_strided_slice %243 {offsets = [0, 32], sizes = [16, 8], strides = [1, 1]} : vector<16x96xf32> to vector<16x8xf32>
    %247 = vector.shape_cast %246 : vector<16x8xf32> to vector<2x8x8xf32>
    %248 = vector.extract_strided_slice %243 {offsets = [0, 64], sizes = [16, 8], strides = [1, 1]} : vector<16x96xf32> to vector<16x8xf32>
    %249 = vector.shape_cast %248 : vector<16x8xf32> to vector<2x8x8xf32>
    %250 = arith.truncf %245 : vector<2x8x8xf32> to vector<2x8x8xbf16>
    %251 = arith.truncf %247 : vector<2x8x8xf32> to vector<2x8x8xbf16>
    "tpu.trace_start"() <{level = 10 : i32, message = "bqd,bkd->bqk"}> : () -> ()
    %cst_107 = arith.constant dense<0.000000e+00> : vector<2x8x8xf32>
    %252 = tpu.matmul %250, %251, %cst_107 {dimension_numbers = #tpu.dot_dimension_numbers<[2], [2], [1], [1], [0, 0, 0, 1, 1, 1], [0], [0]>} : vector<2x8x8xbf16>, vector<2x8x8xbf16>, vector<2x8x8xf32> -> vector<2x8x8xf32>
    "tpu.trace_stop"() : () -> ()
    %cst_108 = arith.constant 0.353553385 : f32
    %253 = vector.broadcast %cst_108 : f32 to vector<2x8x8xf32>
    %254 = arith.mulf %252, %253 : vector<2x8x8xf32>
    %cst_109 = arith.constant dense<0xFF800000> : vector<2x8xf32>
    %255 = vector.multi_reduction <maximumf>, %254, %cst_109 [2] : vector<2x8x8xf32> to vector<2x8xf32>
    %256 = vector.shape_cast %255 : vector<2x8xf32> to vector<2x8x1xf32>
    %257 = vector.broadcast %256 : vector<2x8x1xf32> to vector<2x8x8xf32>
    %258 = arith.subf %254, %257 : vector<2x8x8xf32>
    %259 = math.exp %258 : vector<2x8x8xf32>
    %cst_110 = arith.constant dense<0.000000e+00> : vector<2x8xf32>
    %260 = vector.multi_reduction <add>, %259, %cst_110 [2] : vector<2x8x8xf32> to vector<2x8xf32>
    %261 = vector.shape_cast %260 : vector<2x8xf32> to vector<2x8x1xf32>
    %262 = vector.broadcast %261 : vector<2x8x1xf32> to vector<2x8x8xf32>
    %263 = arith.divf %259, %262 : vector<2x8x8xf32>
    %264 = vector.shape_cast %263 : vector<2x8x8xf32> to vector<16x8xf32>
    %c1_111 = arith.constant 1 : index
    %c0_112 = arith.constant 0 : index
    %c0_113 = arith.constant 0 : index
    %265 = vector.load %arg19[%c1_111, %c0_112, %c0_113] : memref<2x16x32xf32, #tpu.memory_space<vmem>>, vector<1x16x8xf32>
    %266 = vector.shape_cast %265 : vector<1x16x8xf32> to vector<16x8xf32>
    %267 = vector.shape_cast %264 : vector<16x8xf32> to vector<1x16x8xf32>
    tpu.vector_store %arg19[%c1_111, %c0_112, %c0_113], %267 {strides = array<i32>} : memref<2x16x32xf32, #tpu.memory_space<vmem>>, vector<1x16x8xf32>,
    %268 = arith.truncf %263 : vector<2x8x8xf32> to vector<2x8x8xbf16>
    %269 = arith.truncf %249 : vector<2x8x8xf32> to vector<2x8x8xbf16>
    "tpu.trace_start"() <{level = 10 : i32, message = "bqk,bkd->bqd"}> : () -> ()
    %cst_114 = arith.constant dense<0.000000e+00> : vector<2x8x8xf32>
    %270 = tpu.matmul %268, %269, %cst_114 {dimension_numbers = #tpu.dot_dimension_numbers<[2], [1], [1], [2], [0, 0, 0, 1, 1, 2], [0], [0]>} : vector<2x8x8xbf16>, vector<2x8x8xbf16>, vector<2x8x8xf32> -> vector<2x8x8xf32>
    "tpu.trace_stop"() : () -> ()
    %271 = vector.shape_cast %270 : vector<2x8x8xf32> to vector<16x8xf32>
    %c0_115 = arith.constant 0 : index
    %c0_116 = arith.constant 0 : index
    %272 = vector.load %arg21[%c0_115, %c0_116] : memref<16x32xf32, #tpu.memory_space<vmem>>, vector<16x8xf32>
    tpu.vector_store %arg21[%c0_115, %c0_116], %271 {strides = array<i32>} : memref<16x32xf32, #tpu.memory_space<vmem>>, vector<16x8xf32>,
    %273 = vector.extract_strided_slice %243 {offsets = [0, 8], sizes = [16, 8], strides = [1, 1]} : vector<16x96xf32> to vector<16x8xf32>
    %274 = vector.shape_cast %273 : vector<16x8xf32> to vector<2x8x8xf32>
    %275 = vector.extract_strided_slice %243 {offsets = [0, 40], sizes = [16, 8], strides = [1, 1]} : vector<16x96xf32> to vector<16x8xf32>
    %276 = vector.shape_cast %275 : vector<16x8xf32> to vector<2x8x8xf32>
    %277 = vector.extract_strided_slice %243 {offsets = [0, 72], sizes = [16, 8], strides = [1, 1]} : vector<16x96xf32> to vector<16x8xf32>
    %278 = vector.shape_cast %277 : vector<16x8xf32> to vector<2x8x8xf32>
    %279 = arith.truncf %274 : vector<2x8x8xf32> to vector<2x8x8xbf16>
    %280 = arith.truncf %276 : vector<2x8x8xf32> to vector<2x8x8xbf16>
    "tpu.trace_start"() <{level = 10 : i32, message = "bqd,bkd->bqk"}> : () -> ()
    %cst_117 = arith.constant dense<0.000000e+00> : vector<2x8x8xf32>
    %281 = tpu.matmul %279, %280, %cst_117 {dimension_numbers = #tpu.dot_dimension_numbers<[2], [2], [1], [1], [0, 0, 0, 1, 1, 1], [0], [0]>} : vector<2x8x8xbf16>, vector<2x8x8xbf16>, vector<2x8x8xf32> -> vector<2x8x8xf32>
    "tpu.trace_stop"() : () -> ()
    %cst_118 = arith.constant 0.353553385 : f32
    %282 = vector.broadcast %cst_118 : f32 to vector<2x8x8xf32>
    %283 = arith.mulf %281, %282 : vector<2x8x8xf32>
    %cst_119 = arith.constant dense<0xFF800000> : vector<2x8xf32>
    %284 = vector.multi_reduction <maximumf>, %283, %cst_119 [2] : vector<2x8x8xf32> to vector<2x8xf32>
    %285 = vector.shape_cast %284 : vector<2x8xf32> to vector<2x8x1xf32>
    %286 = vector.broadcast %285 : vector<2x8x1xf32> to vector<2x8x8xf32>
    %287 = arith.subf %283, %286 : vector<2x8x8xf32>
    %288 = math.exp %287 : vector<2x8x8xf32>
    %cst_120 = arith.constant dense<0.000000e+00> : vector<2x8xf32>
    %289 = vector.multi_reduction <add>, %288, %cst_120 [2] : vector<2x8x8xf32> to vector<2x8xf32>
    %290 = vector.shape_cast %289 : vector<2x8xf32> to vector<2x8x1xf32>
    %291 = vector.broadcast %290 : vector<2x8x1xf32> to vector<2x8x8xf32>
    %292 = arith.divf %288, %291 : vector<2x8x8xf32>
    %293 = vector.shape_cast %292 : vector<2x8x8xf32> to vector<16x8xf32>
    %c1_121 = arith.constant 1 : index
    %c0_122 = arith.constant 0 : index
    %c8_123 = arith.constant 8 : index
    %294 = vector.load %arg19[%c1_121, %c0_122, %c8_123] : memref<2x16x32xf32, #tpu.memory_space<vmem>>, vector<1x16x8xf32>
    %295 = vector.shape_cast %294 : vector<1x16x8xf32> to vector<16x8xf32>
    %296 = vector.shape_cast %293 : vector<16x8xf32> to vector<1x16x8xf32>
    tpu.vector_store %arg19[%c1_121, %c0_122, %c8_123], %296 {strides = array<i32>} : memref<2x16x32xf32, #tpu.memory_space<vmem>>, vector<1x16x8xf32>,
    %297 = arith.truncf %292 : vector<2x8x8xf32> to vector<2x8x8xbf16>
    %298 = arith.truncf %278 : vector<2x8x8xf32> to vector<2x8x8xbf16>
    "tpu.trace_start"() <{level = 10 : i32, message = "bqk,bkd->bqd"}> : () -> ()
    %cst_124 = arith.constant dense<0.000000e+00> : vector<2x8x8xf32>
    %299 = tpu.matmul %297, %298, %cst_124 {dimension_numbers = #tpu.dot_dimension_numbers<[2], [1], [1], [2], [0, 0, 0, 1, 1, 2], [0], [0]>} : vector<2x8x8xbf16>, vector<2x8x8xbf16>, vector<2x8x8xf32> -> vector<2x8x8xf32>
    "tpu.trace_stop"() : () -> ()
    %300 = vector.shape_cast %299 : vector<2x8x8xf32> to vector<16x8xf32>
    %c0_125 = arith.constant 0 : index
    %c8_126 = arith.constant 8 : index
    %301 = vector.load %arg21[%c0_125, %c8_126] : memref<16x32xf32, #tpu.memory_space<vmem>>, vector<16x8xf32>
    tpu.vector_store %arg21[%c0_125, %c8_126], %300 {strides = array<i32>} : memref<16x32xf32, #tpu.memory_space<vmem>>, vector<16x8xf32>,
    %302 = vector.extract_strided_slice %243 {offsets = [0, 16], sizes = [16, 8], strides = [1, 1]} : vector<16x96xf32> to vector<16x8xf32>
    %303 = vector.shape_cast %302 : vector<16x8xf32> to vector<2x8x8xf32>
    %304 = vector.extract_strided_slice %243 {offsets = [0, 48], sizes = [16, 8], strides = [1, 1]} : vector<16x96xf32> to vector<16x8xf32>
    %305 = vector.shape_cast %304 : vector<16x8xf32> to vector<2x8x8xf32>
    %306 = vector.extract_strided_slice %243 {offsets = [0, 80], sizes = [16, 8], strides = [1, 1]} : vector<16x96xf32> to vector<16x8xf32>
    %307 = vector.shape_cast %306 : vector<16x8xf32> to vector<2x8x8xf32>
    %308 = arith.truncf %303 : vector<2x8x8xf32> to vector<2x8x8xbf16>
    %309 = arith.truncf %305 : vector<2x8x8xf32> to vector<2x8x8xbf16>
    "tpu.trace_start"() <{level = 10 : i32, message = "bqd,bkd->bqk"}> : () -> ()
    %cst_127 = arith.constant dense<0.000000e+00> : vector<2x8x8xf32>
    %310 = tpu.matmul %308, %309, %cst_127 {dimension_numbers = #tpu.dot_dimension_numbers<[2], [2], [1], [1], [0, 0, 0, 1, 1, 1], [0], [0]>} : vector<2x8x8xbf16>, vector<2x8x8xbf16>, vector<2x8x8xf32> -> vector<2x8x8xf32>
    "tpu.trace_stop"() : () -> ()
    %cst_128 = arith.constant 0.353553385 : f32
    %311 = vector.broadcast %cst_128 : f32 to vector<2x8x8xf32>
    %312 = arith.mulf %310, %311 : vector<2x8x8xf32>
    %cst_129 = arith.constant dense<0xFF800000> : vector<2x8xf32>
    %313 = vector.multi_reduction <maximumf>, %312, %cst_129 [2] : vector<2x8x8xf32> to vector<2x8xf32>
    %314 = vector.shape_cast %313 : vector<2x8xf32> to vector<2x8x1xf32>
    %315 = vector.broadcast %314 : vector<2x8x1xf32> to vector<2x8x8xf32>
    %316 = arith.subf %312, %315 : vector<2x8x8xf32>
    %317 = math.exp %316 : vector<2x8x8xf32>
    %cst_130 = arith.constant dense<0.000000e+00> : vector<2x8xf32>
    %318 = vector.multi_reduction <add>, %317, %cst_130 [2] : vector<2x8x8xf32> to vector<2x8xf32>
    %319 = vector.shape_cast %318 : vector<2x8xf32> to vector<2x8x1xf32>
    %320 = vector.broadcast %319 : vector<2x8x1xf32> to vector<2x8x8xf32>
    %321 = arith.divf %317, %320 : vector<2x8x8xf32>
    %322 = vector.shape_cast %321 : vector<2x8x8xf32> to vector<16x8xf32>
    %c1_131 = arith.constant 1 : index
    %c0_132 = arith.constant 0 : index
    %c16_133 = arith.constant 16 : index
    %323 = vector.load %arg19[%c1_131, %c0_132, %c16_133] : memref<2x16x32xf32, #tpu.memory_space<vmem>>, vector<1x16x8xf32>
    %324 = vector.shape_cast %323 : vector<1x16x8xf32> to vector<16x8xf32>
    %325 = vector.shape_cast %322 : vector<16x8xf32> to vector<1x16x8xf32>
    tpu.vector_store %arg19[%c1_131, %c0_132, %c16_133], %325 {strides = array<i32>} : memref<2x16x32xf32, #tpu.memory_space<vmem>>, vector<1x16x8xf32>,
    %326 = arith.truncf %321 : vector<2x8x8xf32> to vector<2x8x8xbf16>
    %327 = arith.truncf %307 : vector<2x8x8xf32> to vector<2x8x8xbf16>
    "tpu.trace_start"() <{level = 10 : i32, message = "bqk,bkd->bqd"}> : () -> ()
    %cst_134 = arith.constant dense<0.000000e+00> : vector<2x8x8xf32>
    %328 = tpu.matmul %326, %327, %cst_134 {dimension_numbers = #tpu.dot_dimension_numbers<[2], [1], [1], [2], [0, 0, 0, 1, 1, 2], [0], [0]>} : vector<2x8x8xbf16>, vector<2x8x8xbf16>, vector<2x8x8xf32> -> vector<2x8x8xf32>
    "tpu.trace_stop"() : () -> ()
    %329 = vector.shape_cast %328 : vector<2x8x8xf32> to vector<16x8xf32>
    %c0_135 = arith.constant 0 : index
    %c16_136 = arith.constant 16 : index
    %330 = vector.load %arg21[%c0_135, %c16_136] : memref<16x32xf32, #tpu.memory_space<vmem>>, vector<16x8xf32>
    tpu.vector_store %arg21[%c0_135, %c16_136], %329 {strides = array<i32>} : memref<16x32xf32, #tpu.memory_space<vmem>>, vector<16x8xf32>,
    %331 = vector.extract_strided_slice %243 {offsets = [0, 24], sizes = [16, 8], strides = [1, 1]} : vector<16x96xf32> to vector<16x8xf32>
    %332 = vector.shape_cast %331 : vector<16x8xf32> to vector<2x8x8xf32>
    %333 = vector.extract_strided_slice %243 {offsets = [0, 56], sizes = [16, 8], strides = [1, 1]} : vector<16x96xf32> to vector<16x8xf32>
    %334 = vector.shape_cast %333 : vector<16x8xf32> to vector<2x8x8xf32>
    %335 = vector.extract_strided_slice %243 {offsets = [0, 88], sizes = [16, 8], strides = [1, 1]} : vector<16x96xf32> to vector<16x8xf32>
    %336 = vector.shape_cast %335 : vector<16x8xf32> to vector<2x8x8xf32>
    %337 = arith.truncf %332 : vector<2x8x8xf32> to vector<2x8x8xbf16>
    %338 = arith.truncf %334 : vector<2x8x8xf32> to vector<2x8x8xbf16>
    "tpu.trace_start"() <{level = 10 : i32, message = "bqd,bkd->bqk"}> : () -> ()
    %cst_137 = arith.constant dense<0.000000e+00> : vector<2x8x8xf32>
    %339 = tpu.matmul %337, %338, %cst_137 {dimension_numbers = #tpu.dot_dimension_numbers<[2], [2], [1], [1], [0, 0, 0, 1, 1, 1], [0], [0]>} : vector<2x8x8xbf16>, vector<2x8x8xbf16>, vector<2x8x8xf32> -> vector<2x8x8xf32>
    "tpu.trace_stop"() : () -> ()
    %cst_138 = arith.constant 0.353553385 : f32
    %340 = vector.broadcast %cst_138 : f32 to vector<2x8x8xf32>
    %341 = arith.mulf %339, %340 : vector<2x8x8xf32>
    %cst_139 = arith.constant dense<0xFF800000> : vector<2x8xf32>
    %342 = vector.multi_reduction <maximumf>, %341, %cst_139 [2] : vector<2x8x8xf32> to vector<2x8xf32>
    %343 = vector.shape_cast %342 : vector<2x8xf32> to vector<2x8x1xf32>
    %344 = vector.broadcast %343 : vector<2x8x1xf32> to vector<2x8x8xf32>
    %345 = arith.subf %341, %344 : vector<2x8x8xf32>
    %346 = math.exp %345 : vector<2x8x8xf32>
    %cst_140 = arith.constant dense<0.000000e+00> : vector<2x8xf32>
    %347 = vector.multi_reduction <add>, %346, %cst_140 [2] : vector<2x8x8xf32> to vector<2x8xf32>
    %348 = vector.shape_cast %347 : vector<2x8xf32> to vector<2x8x1xf32>
    %349 = vector.broadcast %348 : vector<2x8x1xf32> to vector<2x8x8xf32>
    %350 = arith.divf %346, %349 : vector<2x8x8xf32>
    %351 = vector.shape_cast %350 : vector<2x8x8xf32> to vector<16x8xf32>
    %c1_141 = arith.constant 1 : index
    %c0_142 = arith.constant 0 : index
    %c24_143 = arith.constant 24 : index
    %352 = vector.load %arg19[%c1_141, %c0_142, %c24_143] : memref<2x16x32xf32, #tpu.memory_space<vmem>>, vector<1x16x8xf32>
    %353 = vector.shape_cast %352 : vector<1x16x8xf32> to vector<16x8xf32>
    %354 = vector.shape_cast %351 : vector<16x8xf32> to vector<1x16x8xf32>
    tpu.vector_store %arg19[%c1_141, %c0_142, %c24_143], %354 {strides = array<i32>} : memref<2x16x32xf32, #tpu.memory_space<vmem>>, vector<1x16x8xf32>,
    %355 = arith.truncf %350 : vector<2x8x8xf32> to vector<2x8x8xbf16>
    %356 = arith.truncf %336 : vector<2x8x8xf32> to vector<2x8x8xbf16>
    "tpu.trace_start"() <{level = 10 : i32, message = "bqk,bkd->bqd"}> : () -> ()
    %cst_144 = arith.constant dense<0.000000e+00> : vector<2x8x8xf32>
    %357 = tpu.matmul %355, %356, %cst_144 {dimension_numbers = #tpu.dot_dimension_numbers<[2], [1], [1], [2], [0, 0, 0, 1, 1, 2], [0], [0]>} : vector<2x8x8xbf16>, vector<2x8x8xbf16>, vector<2x8x8xf32> -> vector<2x8x8xf32>
    "tpu.trace_stop"() : () -> ()
    %358 = vector.shape_cast %357 : vector<2x8x8xf32> to vector<16x8xf32>
    %c0_145 = arith.constant 0 : index
    %c24_146 = arith.constant 24 : index
    %359 = vector.load %arg21[%c0_145, %c24_146] : memref<16x32xf32, #tpu.memory_space<vmem>>, vector<16x8xf32>
    tpu.vector_store %arg21[%c0_145, %c24_146], %358 {strides = array<i32>} : memref<16x32xf32, #tpu.memory_space<vmem>>, vector<16x8xf32>,
    %c0_147 = arith.constant 0 : index
    %c0_148 = arith.constant 0 : index
    %360 = vector.load %arg21[%c0_147, %c0_148] : memref<16x32xf32, #tpu.memory_space<vmem>>, vector<16x32xf32>
    %361 = arith.truncf %360 : vector<16x32xf32> to vector<16x32xbf16>
    %c1_149 = arith.constant 1 : index
    %c0_150 = arith.constant 0 : index
    %c0_151 = arith.constant 0 : index
    %362 = vector.load %arg5[%c1_149, %c0_150, %c0_151] : memref<2x32x32xbf16, #tpu.memory_space<vmem>>, vector<1x32x32xbf16>
    %363 = vector.shape_cast %362 : vector<1x32x32xbf16> to vector<32x32xbf16>
    %cst_152 = arith.constant dense<0.000000e+00> : vector<16x32xf32>
    %364 = tpu.matmul %361, %363, %cst_152 {dimension_numbers = #tpu.dot_dimension_numbers<[1], [0], [0], [1], [0, 0, 1, 1], [], []>} : vector<16x32xbf16>, vector<32x32xbf16>, vector<16x32xf32> -> vector<16x32xf32>
    %c1_153 = arith.constant 1 : index
    %c0_154 = arith.constant 0 : index
    %c0_155 = arith.constant 0 : index
    %365 = vector.load %arg6[%c1_153, %c0_154, %c0_155] : memref<2x1x32xf32, #tpu.memory_space<vmem>>, vector<1x1x32xf32>
    %366 = vector.shape_cast %365 : vector<1x1x32xf32> to vector<1x32xf32>
    %367 = vector.broadcast %366 : vector<1x32xf32> to vector<16x32xf32>
    %368 = arith.addf %364, %367 : vector<16x32xf32>
    %369 = arith.addf %368, %235 : vector<16x32xf32>
    %c1_156 = arith.constant 1 : index
    %c0_157 = arith.constant 0 : index
    %c0_158 = arith.constant 0 : index
    %370 = vector.load %arg7[%c1_156, %c0_157, %c0_158] : memref<2x1x32xf32, #tpu.memory_space<vmem>>, vector<1x1x32xf32>
    %371 = vector.shape_cast %370 : vector<1x1x32xf32> to vector<1x32xf32>
    %c1_159 = arith.constant 1 : index
    %c0_160 = arith.constant 0 : index
    %c0_161 = arith.constant 0 : index
    %372 = vector.load %arg8[%c1_159, %c0_160, %c0_161] : memref<2x1x32xf32, #tpu.memory_space<vmem>>, vector<1x1x32xf32>
    %373 = vector.shape_cast %372 : vector<1x1x32xf32> to vector<1x32xf32>
    %cst_162 = arith.constant dense<0.000000e+00> : vector<16xf32>
    %374 = vector.multi_reduction <add>, %369, %cst_162 [1] : vector<16x32xf32> to vector<16xf32>
    %375 = vector.shape_cast %374 : vector<16xf32> to vector<16x1xf32>
    %cst_163 = arith.constant 3.200000e+01 : f32
    %376 = vector.broadcast %cst_163 : f32 to vector<16x1xf32>
    %377 = arith.divf %375, %376 : vector<16x1xf32>
    %378 = vector.broadcast %377 : vector<16x1xf32> to vector<16x32xf32>
    %379 = arith.subf %369, %378 : vector<16x32xf32>
    %380 = arith.mulf %379, %379 : vector<16x32xf32>
    %cst_164 = arith.constant dense<0.000000e+00> : vector<16xf32>
    %381 = vector.multi_reduction <add>, %380, %cst_164 [1] : vector<16x32xf32> to vector<16xf32>
    %382 = vector.shape_cast %381 : vector<16xf32> to vector<16x1xf32>
    %cst_165 = arith.constant 3.200000e+01 : f32
    %383 = vector.broadcast %cst_165 : f32 to vector<16x1xf32>
    %384 = arith.divf %382, %383 : vector<16x1xf32>
    %385 = vector.broadcast %377 : vector<16x1xf32> to vector<16x32xf32>
    %386 = arith.subf %369, %385 : vector<16x32xf32>
    %cst_166 = arith.constant 9.99999996E-13 : f32
    %387 = vector.broadcast %cst_166 : f32 to vector<16x1xf32>
    %388 = arith.addf %384, %387 : vector<16x1xf32>
    %389 = math.rsqrt %388 : vector<16x1xf32>
    %390 = vector.broadcast %389 : vector<16x1xf32> to vector<16x32xf32>
    %391 = arith.mulf %386, %390 : vector<16x32xf32>
    %392 = vector.broadcast %371 : vector<1x32xf32> to vector<16x32xf32>
    %393 = arith.mulf %391, %392 : vector<16x32xf32>
    %394 = vector.broadcast %373 : vector<1x32xf32> to vector<16x32xf32>
    %395 = arith.addf %393, %394 : vector<16x32xf32>
    %396 = arith.truncf %395 : vector<16x32xf32> to vector<16x32xbf16>
    %c1_167 = arith.constant 1 : index
    %c0_168 = arith.constant 0 : index
    %c0_169 = arith.constant 0 : index
    %397 = vector.load %arg9[%c1_167, %c0_168, %c0_169] : memref<2x32x64xbf16, #tpu.memory_space<vmem>>, vector<1x32x64xbf16>
    %398 = vector.shape_cast %397 : vector<1x32x64xbf16> to vector<32x64xbf16>
    %cst_170 = arith.constant dense<0.000000e+00> : vector<16x64xf32>
    %399 = tpu.matmul %396, %398, %cst_170 {dimension_numbers = #tpu.dot_dimension_numbers<[1], [0], [0], [1], [0, 0, 1, 1], [], []>} : vector<16x32xbf16>, vector<32x64xbf16>, vector<16x64xf32> -> vector<16x64xf32>
    %c1_171 = arith.constant 1 : index
    %c0_172 = arith.constant 0 : index
    %c0_173 = arith.constant 0 : index
    %400 = vector.load %arg10[%c1_171, %c0_172, %c0_173] : memref<2x1x64xf32, #tpu.memory_space<vmem>>, vector<1x1x64xf32>
    %401 = vector.shape_cast %400 : vector<1x1x64xf32> to vector<1x64xf32>
    %402 = vector.broadcast %401 : vector<1x64xf32> to vector<16x64xf32>
    %403 = arith.addf %399, %402 : vector<16x64xf32>
    %cst_174 = arith.constant 5.000000e-01 : f32
    %404 = vector.broadcast %cst_174 : f32 to vector<16x64xf32>
    %405 = arith.mulf %404, %403 : vector<16x64xf32>
    %cst_175 = arith.constant 0.707106769 : f32
    %406 = vector.broadcast %cst_175 : f32 to vector<16x64xf32>
    %407 = arith.mulf %403, %406 : vector<16x64xf32>
    %408 = math.erf %407 : vector<16x64xf32>
    %cst_176 = arith.constant 1.000000e+00 : f32
    %409 = vector.broadcast %cst_176 : f32 to vector<16x64xf32>
    %410 = arith.addf %409, %408 : vector<16x64xf32>
    %411 = arith.mulf %405, %410 : vector<16x64xf32>
    %412 = arith.truncf %411 : vector<16x64xf32> to vector<16x64xbf16>
    %c1_177 = arith.constant 1 : index
    %c0_178 = arith.constant 0 : index
    %c0_179 = arith.constant 0 : index
    %413 = vector.load %arg11[%c1_177, %c0_178, %c0_179] : memref<2x64x32xbf16, #tpu.memory_space<vmem>>, vector<1x64x32xbf16>
    %414 = vector.shape_cast %413 : vector<1x64x32xbf16> to vector<64x32xbf16>
    %cst_180 = arith.constant dense<0.000000e+00> : vector<16x32xf32>
    %415 = tpu.matmul %412, %414, %cst_180 {dimension_numbers = #tpu.dot_dimension_numbers<[1], [0], [0], [1], [0, 0, 1, 1], [], []>} : vector<16x64xbf16>, vector<64x32xbf16>, vector<16x32xf32> -> vector<16x32xf32>
    %c1_181 = arith.constant 1 : index
    %c0_182 = arith.constant 0 : index
    %c0_183 = arith.constant 0 : index
    %416 = vector.load %arg12[%c1_181, %c0_182, %c0_183] : memref<2x1x32xf32, #tpu.memory_space<vmem>>, vector<1x1x32xf32>
    %417 = vector.shape_cast %416 : vector<1x1x32xf32> to vector<1x32xf32>
    %418 = vector.broadcast %417 : vector<1x32xf32> to vector<16x32xf32>
    %419 = arith.addf %415, %418 : vector<16x32xf32>
    %420 = arith.addf %419, %395 : vector<16x32xf32>
    %c1_184 = arith.constant 1 : index
    %c0_185 = arith.constant 0 : index
    %c0_186 = arith.constant 0 : index
    %421 = vector.load %arg13[%c1_184, %c0_185, %c0_186] : memref<2x1x32xf32, #tpu.memory_space<vmem>>, vector<1x1x32xf32>
    %422 = vector.shape_cast %421 : vector<1x1x32xf32> to vector<1x32xf32>
    %c1_187 = arith.constant 1 : index
    %c0_188 = arith.constant 0 : index
    %c0_189 = arith.constant 0 : index
    %423 = vector.load %arg14[%c1_187, %c0_188, %c0_189] : memref<2x1x32xf32, #tpu.memory_space<vmem>>, vector<1x1x32xf32>
    %424 = vector.shape_cast %423 : vector<1x1x32xf32> to vector<1x32xf32>
    %cst_190 = arith.constant dense<0.000000e+00> : vector<16xf32>
    %425 = vector.multi_reduction <add>, %420, %cst_190 [1] : vector<16x32xf32> to vector<16xf32>
    %426 = vector.shape_cast %425 : vector<16xf32> to vector<16x1xf32>
    %cst_191 = arith.constant 3.200000e+01 : f32
    %427 = vector.broadcast %cst_191 : f32 to vector<16x1xf32>
    %428 = arith.divf %426, %427 : vector<16x1xf32>
    %429 = vector.broadcast %428 : vector<16x1xf32> to vector<16x32xf32>
    %430 = arith.subf %420, %429 : vector<16x32xf32>
    %431 = arith.mulf %430, %430 : vector<16x32xf32>
    %cst_192 = arith.constant dense<0.000000e+00> : vector<16xf32>
    %432 = vector.multi_reduction <add>, %431, %cst_192 [1] : vector<16x32xf32> to vector<16xf32>
    %433 = vector.shape_cast %432 : vector<16xf32> to vector<16x1xf32>
    %cst_193 = arith.constant 3.200000e+01 : f32
    %434 = vector.broadcast %cst_193 : f32 to vector<16x1xf32>
    %435 = arith.divf %433, %434 : vector<16x1xf32>
    %436 = vector.broadcast %428 : vector<16x1xf32> to vector<16x32xf32>
    %437 = arith.subf %420, %436 : vector<16x32xf32>
    %cst_194 = arith.constant 9.99999996E-13 : f32
    %438 = vector.broadcast %cst_194 : f32 to vector<16x1xf32>
    %439 = arith.addf %435, %438 : vector<16x1xf32>
    %440 = math.rsqrt %439 : vector<16x1xf32>
    %441 = vector.broadcast %440 : vector<16x1xf32> to vector<16x32xf32>
    %442 = arith.mulf %437, %441 : vector<16x32xf32>
    %443 = vector.broadcast %422 : vector<1x32xf32> to vector<16x32xf32>
    %444 = arith.mulf %442, %443 : vector<16x32xf32>
    %445 = vector.broadcast %424 : vector<1x32xf32> to vector<16x32xf32>
    %446 = arith.addf %444, %445 : vector<16x32xf32>
    %447 = arith.truncf %446 : vector<16x32xf32> to vector<16x32xbf16>
    %c0_195 = arith.constant 0 : index
    %c0_196 = arith.constant 0 : index
    %448 = vector.load %arg15[%c0_195, %c0_196] : memref<32x32xbf16, #tpu.memory_space<vmem>>, vector<32x32xbf16>
    %cst_197 = arith.constant dense<0.000000e+00> : vector<16x32xf32>
    %449 = tpu.matmul %447, %448, %cst_197 {dimension_numbers = #tpu.dot_dimension_numbers<[1], [0], [0], [1], [0, 0, 1, 1], [], []>} : vector<16x32xbf16>, vector<32x32xbf16>, vector<16x32xf32> -> vector<16x32xf32>
    %c0_198 = arith.constant 0 : index
    %c0_199 = arith.constant 0 : index
    %450 = vector.load %arg16[%c0_198, %c0_199] : memref<1x32xf32, #tpu.memory_space<vmem>>, vector<1x32xf32>
    %451 = vector.broadcast %450 : vector<1x32xf32> to vector<16x32xf32>
    %452 = arith.addf %449, %451 : vector<16x32xf32>
    %453 = math.tanh %452 : vector<16x32xf32>
    %c0_200 = arith.constant 0 : index
    %c0_201 = arith.constant 0 : index
    %454 = vector.load %arg17[%c0_200, %c0_201] : memref<1x32xf32, #tpu.memory_space<vmem>>, vector<1x32xf32>
    %455 = vector.broadcast %454 : vector<1x32xf32> to vector<16x32xf32>
    %456 = arith.mulf %453, %455 : vector<16x32xf32>
    %cst_202 = arith.constant dense<0.000000e+00> : vector<16xf32>
    %457 = vector.multi_reduction <add>, %456, %cst_202 [1] : vector<16x32xf32> to vector<16xf32>
    %458 = vector.shape_cast %457 : vector<16xf32> to vector<16x1xf32>
    %c0_203 = arith.constant 0 : index
    %c0_204 = arith.constant 0 : index
    %459 = vector.load %arg18[%c0_203, %c0_204] : memref<1x1xf32, #tpu.memory_space<vmem>>, vector<1x1xf32>
    %460 = vector.broadcast %459 : vector<1x1xf32> to vector<16x1xf32>
    %461 = arith.addf %458, %460 : vector<16x1xf32>
    %c0_205 = arith.constant 0 : index
    %c0_206 = arith.constant 0 : index
    %462 = vector.load %arg20[%c0_205, %c0_206] : memref<16x1xf32, #tpu.memory_space<vmem>>, vector<16x1xf32>
    tpu.vector_store %arg20[%c0_205, %c0_206], %461 {strides = array<i32>} : memref<16x1xf32, #tpu.memory_space<vmem>>, vector<16x1xf32>,
    return
  }
}

</mosaic_0001>

<bundles_post_ra>
// kernel: _lambda_.1
= control target key start
LH: loop header
LB: loop body
LE: loop exit
PB: predicated region body
PF: predicated region fallthrough
CT: control target
= control target key end

     0   :  { %vm71_vm0 = vcmask 261120   ;;  %v2550_v4 = vmov 32.0   ;;  %s2552_s25 = smov 96   ;;  %s2554_s27 = smov 112   ;;  %vm178_vm8 = vcmask 64512   ;;  %vm281_vm9 = vcmask 1043456   ;;  %s3398_s0 = inlined_call_operand.vmem [shape: f32[16,32], index: 0, kind: input, shape index: {}]   ;;  %s3399_s1 = inlined_call_operand.vmem [shape: f32[1,32], index: 1, kind: input, shape index: {}]   ;;  %s3400_s2 = inlined_call_operand.vmem [shape: f32[1,32], index: 2, kind: input, shape index: {}]   ;;  %s3401_s4 = inlined_call_operand.vmem [shape: f32[2,1,96], index: 4, kind: input, shape index: {}]   ;;  %s3402_s3 = inlined_call_operand.vmem [shape: bf16[2,32,96], index: 3, kind: input, shape index: {}]   ;;  %s3403_s19 = inlined_call_operand.vmem [shape: f32[2,16,32], index: 19, kind: output, shape index: {0}]   ;;  %s3404_s6 = inlined_call_operand.vmem [shape: f32[2,1,32], index: 6, kind: input, shape index: {}]   ;;  %s3405_s5 = inlined_call_operand.vmem [shape: bf16[2,32,32], index: 5, kind: input, shape index: {}]   ;;  %s3406_s7 = inlined_call_operand.vmem [shape: f32[2,1,32], index: 7, kind: input, shape index: {}]   ;;  %s3407_s8 = inlined_call_operand.vmem [shape: f32[2,1,32], index: 8, kind: input, shape index: {}]   ;;  %s3408_s10 = inlined_call_operand.vmem [shape: f32[2,1,64], index: 10, kind: input, shape index: {}]   ;;  %s3409_s9 = inlined_call_operand.vmem [shape: bf16[2,32,64], index: 9, kind: input, shape index: {}]   ;;  %s3410_s12 = inlined_call_operand.vmem [shape: f32[2,1,32], index: 12, kind: input, shape index: {}]   ;;  %s3411_s11 = inlined_call_operand.vmem [shape: bf16[2,64,32], index: 11, kind: input, shape index: {}]   ;;  %s3412_s13 = inlined_call_operand.vmem [shape: f32[2,1,32], index: 13, kind: input, shape index: {}]   ;;  %s3413_s14 = inlined_call_operand.vmem [shape: f32[2,1,32], index: 14, kind: input, shape index: {}]   ;;  %s3414_s16 = inlined_call_operand.vmem [shape: f32[1,32], index: 16, kind: input, shape index: {}]   ;;  %s3415_s15 = inlined_call_operand.vmem [shape: bf16[32,32], index: 15, kind: input, shape index: {}]   ;;  %s3416_s17 = inlined_call_operand.vmem [shape: f32[1,32], index: 17, kind: input, shape index: {}]   ;;  %s3417_s18 = inlined_call_operand.<no memory space> [shape: f32[1,1], index: 18, kind: input, shape index: {}]   ;;  %s3418_s20 = inlined_call_operand.vmem [shape: f32[16,1], index: 20, kind: output, shape index: {1}]  }
   0x1   :  { %3434 = sst [smem:[#allocation4_spill]] %s3398_s0  ;;  %2452 = vrcp.f32 %v2550_v4  ;;  %s2555_s28 = smov 72  }
   0x2   :  { %3435 = sst [smem:[#allocation5_spill]] %s3399_s1  ;;  %s2557_s29 = smov 104  }
   0x3   :  { %3436 = sst [smem:[#allocation6_spill]] %s3400_s2  ;;  %s2551_s2 = smov 88  }
   0x4   :  { %3437 = sst [smem:[#allocation7_spill]] %s3401_s4  ;;  %s2553_s4 = smov 80  }
   0x5   :  { %3438 = sst [smem:[#allocation8_spill]] %s3402_s3  ;;  %s2556_s3 = smov 120  }
   0x6   :  { %s3439_s23 = sld [smem:[#allocation4_spill]]  ;;  %s3432_s0 = smov 56  }
   0x7   :  { %v2453_v5 = vpop.eup %2452  ;;  %s3440_s26 = sld [smem:[#allocation8_spill]]  ;;  %s3430_s21 = smov 40  }
   0x8   :  { %v79_v6 = vmul.f32 32.0, %v2453_v5  ;;  %vm83_vm1 = vweird.f32 %v2453_v5  ;;  %s3441_s30 = sld [smem:[#allocation5_spill]]  ;;  %s3426_s22 = smov 8  }
   0x9   :  { %s3442_s1 = sld [smem:[#allocation6_spill]] }
   0xa   :  { %v80_v7 = vsub.f32 1.0, %v79_v6  ;;  %s3443_s24 = sld [smem:[#allocation7_spill]] }
   0xc   :  { %v67_v0 = vld [vmem:[%s3439_s23] sm:$0xff]  ;;  %v68_v2 = vld [vmem:[%s3439_s23 + $0x8] sm:$0xff]  ;;  %v81_v8 = vmul.f32 %v2453_v5, %v80_v7  ;;  %s3424_s23 = smov 16  }
   0xd   :  { %v72_v1 = vsel %vm71_vm0, %v67_v0, 0.0  ;;  %v75_v3 = vsel %vm71_vm0, %v68_v2, 0.0  ;;  %v2395_v21 = vld [vmem:[%s3440_s26 + $0x8] sm:$0xff]  ;;  %v2394_v23 = vld [vmem:[%s3440_s26] sm:$0xff] }
   0xe   :  { %73 = vadd.xlane.f32.xlu0 %v72_v1  ;;  %v82_v9 = vadd.f32 %v2453_v5, %v81_v8  ;;  %163 = vmatpush.bf16.msra.mxu0 %v2395_v21  ;;  %v2431_v42 = vld [vmem:[%s3441_s30] ss:$0 sm:$0xff]  ;;  %s2558_s30 = smov 64  }
   0xf   :  { %v2432_v47 = vld [vmem:[%s3442_s1] ss:$0 sm:$0xff]  ;;  %s3422_s1 = smov 48  }
  0x10   :  { %v2678_v10 = vsel %vm83_vm1, %v2453_v5, %v82_v9  ;;  %v2433_v52 = vld [vmem:[%s3443_s24] ss:$0 sm:$0xff] }
  0x12   :  { %164 = vmatpush.bf16.msra.mxu0 %v2394_v23 }
  0x16   :  { %76 = vadd.xlane.f32.xlu0 %v75_v3 }
  0x81   :  { %v74_v11 = vpop.xlane.xlu0 %73 }
  0x82   :  { %v85_v12 = vmul.f32 %v2678_v10, %v74_v11 }
  0x84   :  { %v87_v13 = vsub.f32 %v67_v0, %v85_v12 }
  0x86   :  { %v89_v14 = vmul.f32 %v87_v13, %v87_v13 }
  0x88   :  { %v91_v15 = vsel %vm71_vm0, %v89_v14, 0.0 }
  0x89   :  { %92 = vadd.xlane.f32.xlu1 %v91_v15  ;;  %v77_v16 = vpop.xlane.xlu0 %76 }
  0x8a   :  { %v86_v17 = vmul.f32 %v2678_v10, %v77_v16 }
  0x8c   :  { %v88_v18 = vsub.f32 %v68_v2, %v86_v17 }
  0x8e   :  { %v90_v19 = vmul.f32 %v88_v18, %v88_v18 }
  0x90   :  { %v94_v20 = vsel %vm71_vm0, %v90_v19, 0.0 }
  0x91   :  { %95 = vadd.xlane.f32.xlu1 %v94_v20 }
  0xfc   :  { %v93_v22 = vpop.xlane.xlu1 %92 }
  0xfd   :  { %v97_v24 = vmul.f32 %v93_v22, %v2678_v10 }
  0xff   :  { %v99_v25 = vadd.f32 1e-12, %v97_v24 }
 0x101   :  { %2454 = vrsqrt.f32 %v99_v25  ;;  %vm107_vm3 = vweird.f32 %v99_v25 }
 0x104   :  { %v96_v26 = vpop.xlane.xlu1 %95 }
 0x105   :  { %v98_v27 = vmul.f32 %v96_v26, %v2678_v10 }
 0x107   :  { %v2455_v28 = vpop.eup %2454  ;;  %v100_v29 = vadd.f32 1e-12, %v98_v27 }
 0x108   :  { %v102_v30 = vmul.f32 %v2455_v28, %v99_v25  ;;  %vm108_vm2 = vweird.f32 %v2455_v28 }
 0x109   :  { %2456 = vrsqrt.f32 %v100_v29  ;;  %vm109_vm4 = vmor %vm107_vm3, %vm108_vm2  ;;  %vm117_vm6 = vweird.f32 %v100_v29 }
 0x10a   :  { %v103_v31 = vmul.f32 %v2455_v28, %v102_v30 }
 0x10c   :  { %v104_v32 = vmul.f32 0.5, %v103_v31 }
 0x10e   :  { %v105_v33 = vsub.f32 1.5, %v104_v32 }
 0x10f   :  { %v2457_v34 = vpop.eup %2456 }
 0x110   :  { %v106_v35 = vmul.f32 %v2455_v28, %v105_v33  ;;  %v112_v36 = vmul.f32 %v2457_v34, %v100_v29  ;;  %vm118_vm5 = vweird.f32 %v2457_v34 }
 0x111   :  { %vm119_vm7 = vmor %vm117_vm6, %vm118_vm5 }
 0x112   :  { %v113_v37 = vmul.f32 %v2457_v34, %v112_v36  ;;  %v110_v38 = vsel %vm109_vm4, %v2455_v28, %v106_v35 }
 0x113   :  { %v121_v41 = vmul.f32 %v110_v38, %v87_v13 }
 0x114   :  { %v114_v39 = vmul.f32 0.5, %v113_v37 }
 0x115   :  { %v126_v46 = vmul.f32 %v2431_v42, %v121_v41 }
 0x116   :  { %v115_v40 = vsub.f32 1.5, %v114_v39 }
 0x117   :  { %v2698_v49 = vadd.f32 %v2432_v47, %v126_v46 }
 0x118   :  { %v116_v43 = vmul.f32 %v2457_v34, %v115_v40 }
 0x11a   :  { %v120_v44 = vsel %vm119_vm7, %v2457_v34, %v116_v43 }
 0x11b   :  { %v122_v45 = vmul.f32 %v120_v44, %v88_v18 }
 0x11d   :  { %v127_v48 = vmul.f32 %v2431_v42, %v122_v45 }
 0x11f   :  { %v2700_v50 = vadd.f32 %v2432_v47, %v127_v48 }
 0x121   :  { %v133_v51 = vpack.c.bf16 %v2700_v50, %v2698_v49 }
 0x123   :  { %2233 = vmatmul.msk.bf16.vlgmr.msra.gmra.mxu0 %vm71_vm0, %v133_v51 }
 0x1a0   :  { %v166_v53 = vpop.f32.mrf.mxu0 }
 0x1a1   :  { %v167_v54 = vadd.f32 %v2433_v52, %v166_v53 }
 0x1a3   :  { %v171_v55 = vpack.c.bf16 %v167_v54, %v167_v54 }
 0x1a5   :  { %v174_v56 = vunpack.c.l.b16 %v171_v55 }
 0x1a7   :  { %v2708_v57 = vpack.c.b16 %v174_v56, %v174_v56 }
 0x1a8   :  { %v168_v58 = vpop.f32.mrf.mxu0 }
 0x1a9   :  { %v169_v59 = vadd.f32 %v2433_v52, %v168_v58  ;;  %323 = vrot.lane.b32.xlu0 %v2708_v57, %s2551_s2  ;;  %176 = vrot.lane.b32.xlu2 %v2708_v57, %s2552_s25 }
 0x1ab   :  { %v172_v60 = vpack.c.bf16 %v169_v59, %v169_v59 }
 0x1ad   :  { %v199_v61 = vunpack.c.l.b16 %v172_v60 }
 0x1af   :  { %v2714_v62 = vpack.c.b16 %v199_v61, %v199_v61 }
 0x1b1   :  { %346 = vrot.lane.b32.xlu1 %v2714_v62, %s2551_s2  ;;  %507 = vrot.lane.b32.xlu0 %v2714_v62, %s2553_s4 }
 0x1b2   :  { %201 = vrot.lane.b32.xlu2 %v2714_v62, %s2552_s25 }
 0x1b9   :  { %505 = vrot.lane.b32.xlu1 %v2714_v62, %s2554_s27  ;;  %645 = vrot.lane.b32.xlu0 %v2708_v57, %s2555_s28 }
 0x1ba   :  { %321 = vrot.lane.b32.xlu2 %v2708_v57, %s2556_s3 }
 0x1c1   :  { %643 = vrot.lane.b32.xlu1 %v2708_v57, %s2557_s29  ;;  %666 = vrot.lane.b32.xlu0 %v2714_v62, %s2557_s29 }
 0x1c2   :  { %344 = vrot.lane.b32.xlu2 %v2714_v62, %s2556_s3 }
 0x1ca   :  { %484 = vrot.lane.b32.xlu2 %v2708_v57, %s2553_s4 }
 0x1d2   :  { %482 = vrot.lane.b32.xlu2 %v2708_v57, %s2554_s27 }
 0x1da   :  { %668 = vrot.lane.b32.xlu2 %v2714_v62, %s2555_s28 }
 0x203   :  { %v177_v63 = vpop.permute.xlu2 %176 }
 0x204   :  { %v183_v0 = vsel %vm178_vm8, %v177_v63, 0 }
 0x205   :  { %192 = vmatpush.bf16.xpose.msra.mxu1 %v183_v0 }
 0x20c   :  { %v202_v1 = vpop.permute.xlu2 %201  ;;  %2234 = vmatmul.msk.bf16.vlgmr.msra.gmra.mxu1 %vm178_vm8, %v171_v55 }
 0x20d   :  { %v207_v2 = vsel %vm178_vm8, %v202_v1, 0 }
 0x20e   :  { %216 = vmatpush.bf16.xpose.msra.mxu2 %v207_v2 }
 0x214   :  { %v322_v3 = vpop.permute.xlu2 %321 }
 0x215   :  { %2235 = vmatmul.msk.bf16.vlgmr.msra.gmra.mxu2 %vm178_vm8, %v172_v60 }
 0x21b   :  { %v324_v4 = vpop.permute.xlu0 %323 }
 0x21c   :  { %v345_v5 = vpop.permute.xlu2 %344  ;;  %v329_v6 = vsel %vm178_vm8, %v324_v4, 0 }
 0x21d   :  { %338 = vmatpush.bf16.xpose.msrb.mxu0 %v329_v6 }
 0x223   :  { %v347_v7 = vpop.permute.xlu1 %346  ;;  %v508_v8 = vpop.permute.xlu0 %507 }
 0x224   :  { %v513_v9 = vsel %vm178_vm8, %v508_v8, 0  ;;  %v485_v11 = vpop.permute.xlu2 %484  ;;  %2238 = vmatmul.msk.bf16.vlgmr.msrb.gmra.mxu0 %vm178_vm8, %v322_v3  ;;  %v352_v12 = vsel %vm178_vm8, %v347_v7, 0 }
 0x225   :  { %v490_v13 = vsel %vm178_vm8, %v485_v11, 0  ;;  %361 = vmatpush.bf16.xpose.msrb.mxu1 %v352_v12 }
 0x226   :  { %499 = vmatpush.bf16.xpose.msra.mxu0 %v490_v13 }
 0x22b   :  { %v646_v14 = vpop.permute.xlu0 %645  ;;  %v506_v19 = vpop.permute.xlu1 %505 }
 0x22c   :  { %v651_v15 = vsel %vm178_vm8, %v646_v14, 0  ;;  %v483_v16 = vpop.permute.xlu2 %482  ;;  %2239 = vmatmul.msk.bf16.vlgmr.msrb.gmra.mxu1 %vm178_vm8, %v345_v5 }
 0x22d   :  { %522 = vmatpush.bf16.xpose.msra.mxu1 %v513_v9 }
 0x22e   :  { %660 = vmatpush.bf16.xpose.msrb.mxu0 %v651_v15 }
 0x233   :  { %v644_v20 = vpop.permute.xlu1 %643  ;;  %v667_v21 = vpop.permute.xlu0 %666 }
 0x234   :  { %v669_v17 = vpop.permute.xlu2 %668  ;;  %2242 = vmatmul.msk.bf16.vlgmr.msra.gmra.mxu0 %vm178_vm8, %v483_v16 }
 0x235   :  { %v674_v18 = vsel %vm178_vm8, %v669_v17, 0 }
 0x236   :  { %683 = vmatpush.bf16.xpose.msrb.mxu1 %v674_v18 }
 0x23c   :  { %2243 = vmatmul.msk.bf16.vlgmr.msra.gmra.mxu1 %vm178_vm8, %v506_v19 }
 0x244   :  { %2246 = vmatmul.msk.bf16.vlgmr.msrb.gmra.mxu0 %vm178_vm8, %v644_v20 }
 0x24c   :  { %2247 = vmatmul.msk.bf16.vlgmr.msrb.gmra.mxu1 %vm178_vm8, %v667_v21 }
 0x289   :  { %v194_v22 = vpop.f32.mrf.mxu1 }
 0x28a   :  { %v222_v23 = vmul.f32 0.35355338, %v194_v22 }
 0x28c   :  { %v224_v24 = vsel %vm178_vm8, %v222_v23, -inf }
 0x28d   :  { %225 = vmax.xlane.f32.xlu2 %v224_v24 }
 0x291   :  { %v196_v25 = vpop.f32.mrf.mxu1 }
 0x298   :  { %v218_v26 = vpop.f32.mrf.mxu2 }
 0x299   :  { %v223_v27 = vmul.f32 0.35355338, %v218_v26 }
 0x29b   :  { %v227_v28 = vsel %vm178_vm8, %v223_v27, -inf }
 0x29c   :  { %228 = vmax.xlane.f32.xlu1 %v227_v28 }
 0x2a0   :  { %v220_v29 = vpop.f32.mrf.mxu2 }
 0x2a1   :  { %v340_v30 = vpop.f32.mrf.mxu0 }
 0x2a2   :  { %v367_v31 = vmul.f32 0.35355338, %v340_v30 }
 0x2a4   :  { %v369_v32 = vsel %vm178_vm8, %v367_v31, -inf }
 0x2a5   :  { %370 = vmax.xlane.f32.xlu0 %v369_v32 }
 0x2a9   :  { %v342_v33 = vpop.f32.mrf.mxu0  ;;  %v363_v34 = vpop.f32.mrf.mxu1 }
 0x2aa   :  { %v368_v35 = vmul.f32 0.35355338, %v363_v34 }
 0x2ac   :  { %v372_v36 = vsel %vm178_vm8, %v368_v35, -inf }
 0x2ad   :  { %373 = vmax.xlane.f32.xlu2 %v372_v36 }
 0x2b1   :  { %v365_v37 = vpop.f32.mrf.mxu1  ;;  %v501_v38 = vpop.f32.mrf.mxu0 }
 0x2b2   :  { %v528_v52 = vmul.f32 0.35355338, %v501_v38 }
 0x2b4   :  { %v530_v53 = vsel %vm178_vm8, %v528_v52, -inf }
 0x2b5   :  { %276 = vrot.lane.b32.xlu1 %v2708_v57, %s2558_s30 }
 0x2b9   :  { %v503_v39 = vpop.f32.mrf.mxu0  ;;  %v524_v40 = vpop.f32.mrf.mxu1 }
 0x2ba   :  { %v2762_v41 = vmul.f32 0.35355338, %v524_v40 }
 0x2bc   :  { %v533_v42 = vsel %vm178_vm8, %v2762_v41, -inf }
 0x2bd   :  { %534 = vmax.xlane.f32.xlu0 %v533_v42 }
 0x2c1   :  { %v526_v43 = vpop.f32.mrf.mxu1  ;;  %v662_v44 = vpop.f32.mrf.mxu0 }
 0x2c2   :  { %v689_v54 = vmul.f32 0.35355338, %v662_v44 }
 0x2c4   :  { %v691_v55 = vsel %vm178_vm8, %v689_v54, -inf }
 0x2c5   :  { %451 = vrot.lane.b32.xlu2 %v2714_v62, %s3432_s0 }
 0x2c9   :  { %v664_v45 = vpop.f32.mrf.mxu0  ;;  %v685_v46 = vpop.f32.mrf.mxu1 }
 0x2ca   :  { %v690_v47 = vmul.f32 0.35355338, %v685_v46 }
 0x2cc   :  { %v694_v48 = vsel %vm178_vm8, %v690_v47, -inf }
 0x2cd   :  { %695 = vmax.xlane.f32.xlu0 %v694_v48 }
 0x2d1   :  { %v687_v51 = vpop.f32.mrf.mxu1 }
 0x2df   :  { %531 = vmax.xlane.f32.xlu1 %v530_v53 }
 0x2e1   :  { %298 = vrot.lane.b32.xlu0 %v2714_v62, %s2558_s30 }
 0x2e7   :  { %692 = vmax.xlane.f32.xlu1 %v691_v55 }
 0x300   :  { %430 = vrot.lane.b32.xlu1 %v2708_v57, %s3432_s0  ;;  %v226_v56 = vpop.xlane.xlu2 %225 }
 0x301   :  { %v230_v58 = vsub.f32 %v222_v23, %v226_v56 }
 0x303   :  { %v232_v59 = vmul.f32 1.442695, %v230_v58 }
 0x305   :  { %2458 = vpow2.f32 %v232_v59 }
 0x30b   :  { %v2775_v60 = vpop.eup %2458 }
 0x30c   :  { %v236_v61 = vsel %vm178_vm8, %v2775_v60, 0.0 }
 0x30d   :  { %237 = vadd.xlane.f32.xlu2 %v236_v61 }
 0x30f   :  { %v229_v63 = vpop.xlane.xlu1 %228 }
 0x310   :  { %v231_v0 = vsub.f32 %v223_v27, %v229_v63 }
 0x312   :  { %v234_v1 = vmul.f32 1.442695, %v231_v0 }
 0x314   :  { %2460 = vpow2.f32 %v234_v1 }
 0x318   :  { %v371_v2 = vpop.xlane.xlu0 %370 }
 0x319   :  { %v375_v3 = vsub.f32 %v367_v31, %v371_v2 }
 0x31a   :  { %v2779_v4 = vpop.eup %2460 }
 0x31b   :  { %v377_v5 = vmul.f32 1.442695, %v375_v3  ;;  %v239_v6 = vsel %vm178_vm8, %v2779_v4, 0.0 }
 0x31c   :  { %240 = vadd.xlane.f32.xlu2 %v239_v6 }
 0x31d   :  { %2462 = vpow2.f32 %v377_v5 }
 0x320   :  { %v374_v7 = vpop.xlane.xlu2 %373 }
 0x321   :  { %v376_v8 = vsub.f32 %v368_v35, %v374_v7 }
 0x323   :  { %v2783_v9 = vpop.eup %2462  ;;  %v379_v11 = vmul.f32 1.442695, %v376_v8 }
 0x324   :  { %v381_v12 = vsel %vm178_vm8, %v2783_v9, 0.0 }
 0x325   :  { %2464 = vpow2.f32 %v379_v11  ;;  %382 = vadd.xlane.f32.xlu0 %v381_v12 }
 0x327   :  { %v277_v13 = vpop.permute.xlu1 %276 }
 0x328   :  { %v283_v14 = vsel %vm281_vm9, %v277_v13, 0 }
 0x329   :  { %292 = vmatpush.bf16.msra.mxu3 %v283_v14 }
 0x32b   :  { %v2788_v15 = vpop.eup %2464 }
 0x32c   :  { %v384_v16 = vsel %vm178_vm8, %v2788_v15, 0.0 }
 0x32d   :  { %385 = vadd.xlane.f32.xlu2 %v384_v16 }
 0x330   :  { %v535_v17 = vpop.xlane.xlu0 %534 }
 0x331   :  { %v537_v27 = vsub.f32 %v2762_v41, %v535_v17  ;;  %v452_v41 = vpop.permute.xlu2 %451 }
 0x332   :  { %v457_v59 = vsel %vm281_vm9, %v452_v41, 0 }
 0x333   :  { %v540_v29 = vmul.f32 1.442695, %v537_v27 }
 0x340   :  { %v696_v18 = vpop.xlane.xlu0 %695 }
 0x341   :  { %v698_v19 = vsub.f32 %v690_v47, %v696_v18 }
 0x343   :  { %v701_v20 = vmul.f32 1.442695, %v698_v19 }
 0x345   :  { %2466 = vpow2.f32 %v701_v20 }
 0x34b   :  { %v2792_v21 = vpop.eup %2466 }
 0x34c   :  { %v706_v22 = vsel %vm178_vm8, %v2792_v21, 0.0 }
 0x34d   :  { %707 = vadd.xlane.f32.xlu1 %v706_v22 }
 0x352   :  { %v532_v23 = vpop.xlane.xlu1 %531 }
 0x353   :  { %v536_v24 = vsub.f32 %v528_v52, %v532_v23  ;;  %v299_v25 = vpop.permute.xlu0 %298 }
 0x354   :  { %v304_v26 = vsel %vm281_vm9, %v299_v25, 0 }
 0x355   :  { %v538_v28 = vmul.f32 1.442695, %v536_v24  ;;  %313 = vmatpush.bf16.msrb.mxu3 %v304_v26 }
 0x357   :  { %2468 = vpow2.f32 %v538_v28 }
 0x358   :  { %2470 = vpow2.f32 %v540_v29 }
 0x35a   :  { %v693_v30 = vpop.xlane.xlu1 %692 }
 0x35b   :  { %v697_v31 = vsub.f32 %v689_v54, %v693_v30 }
 0x35d   :  { %v2798_v32 = vpop.eup %2468  ;;  %v699_v33 = vmul.f32 1.442695, %v697_v31 }
 0x35e   :  { %v542_v34 = vsel %vm178_vm8, %v2798_v32, 0.0  ;;  %v2802_v35 = vpop.eup %2470 }
 0x35f   :  { %2472 = vpow2.f32 %v699_v33  ;;  %543 = vadd.xlane.f32.xlu2 %v542_v34  ;;  %v545_v38 = vsel %vm178_vm8, %v2802_v35, 0.0 }
 0x365   :  { %v2804_v36 = vpop.eup %2472 }
 0x366   :  { %v703_v37 = vsel %vm178_vm8, %v2804_v36, 0.0 }
 0x367   :  { %704 = vadd.xlane.f32.xlu0 %v703_v37  ;;  %546 = vadd.xlane.f32.xlu2 %v545_v38 }
 0x372   :  { %v431_v39 = vpop.permute.xlu1 %430 }
 0x373   :  { %v436_v40 = vsel %vm281_vm9, %v431_v39, 0 }
 0x374   :  { %445 = vmatpush.bf16.msrb.mxu2 %v436_v40 }
 0x37b   :  { %773 = vrot.lane.b32.xlu0 %v2714_v62, %s3430_s21 }
 0x37f   :  { %591 = vrot.lane.b32.xlu2 %v2708_v57, %s3422_s1 }
 0x380   :  { %v238_v42 = vpop.xlane.xlu2 %237 }
 0x381   :  { %2474 = vrcp.f32 %v238_v42  ;;  %v253_v47 = vand.u32 2147483648, %v238_v42  ;;  %v251_v48 = vand.u32 2147483647, %v238_v42  ;;  %vm247_vm11 = vweird.f32 %v238_v42 }
 0x383   :  { %v254_v53 = vor.u32 1.1754944e-38, %v253_v47  ;;  %vm252_vm13 = vcmp.eq.f32.partialorder %v251_v48, 8.507059e+37 }
 0x387   :  { %v2475_v43 = vpop.eup %2474  ;;  %612 = vrot.lane.b32.xlu2 %v2714_v62, %s3422_s1  ;;  %s3428_s1 = smov 24  }
 0x388   :  { %v243_v44 = vmul.f32 %v2475_v43, %v238_v42  ;;  %vm248_vm10 = vweird.f32 %v2475_v43 }
 0x389   :  { %vm249_vm12 = vmor %vm247_vm11, %vm248_vm10 }
 0x38a   :  { %v244_v45 = vsub.f32 1.0, %v243_v44 }
 0x38c   :  { %v245_v46 = vmul.f32 %v2475_v43, %v244_v45 }
 0x38e   :  { %v246_v51 = vadd.f32 %v2475_v43, %v245_v46 }
 0x38f   :  { %752 = vrot.lane.b32.xlu2 %v2708_v57, %s3430_s21  ;;  %v241_v52 = vpop.xlane.xlu2 %240 }
 0x390   :  { %2476 = vrcp.f32 %v241_v52  ;;  %v250_v54 = vsel %vm249_vm12, %v2475_v43, %v246_v51  ;;  %v268_v0 = vand.u32 2147483648, %v241_v52  ;;  %vm262_vm15 = vweird.f32 %v241_v52 }
 0x391   :  { %v255_v55 = vsel %vm252_vm13, %v254_v53, %v250_v54 }
 0x392   :  { %v256_v62 = vmul.f32 %v2775_v60, %v255_v55  ;;  %v266_v60 = vand.u32 2147483647, %v241_v52  ;;  %v269_v3 = vor.u32 1.1754944e-38, %v268_v0 }
 0x394   :  { %v274_v56 = vpack.c.bf16 %v256_v62, %v256_v62  ;;  %272 = vst.msk [vmem:[%s3403_s19] sm:$0xff] %vm178_vm8, %v256_v62  ;;  %vm267_vm2 = vcmp.eq.f32.partialorder %v266_v60, 8.507059e+37 }
 0x396   :  { %v2477_v58 = vpop.eup %2476  ;;  %2236 = vmatmul.msk.bf16.vlgmr.msra.gmra.mxu3 %vm178_vm8, %v274_v56 }
 0x397   :  { %v258_v61 = vmul.f32 %v2477_v58, %v241_v52  ;;  %466 = vmatpush.bf16.msra.mxu3 %v457_v59  ;;  %vm263_vm14 = vweird.f32 %v2477_v58 }
 0x398   :  { %v383_v57 = vpop.xlane.xlu0 %382  ;;  %vm264_vm1 = vmor %vm262_vm15, %vm263_vm14 }
 0x399   :  { %v259_v63 = vsub.f32 1.0, %v258_v61  ;;  %2478 = vrcp.f32 %v383_v57  ;;  %v398_v14 = vand.u32 2147483648, %v383_v57  ;;  %v396_v17 = vand.u32 2147483647, %v383_v57 }
 0x39a   :  { %vm392_vm4 = vweird.f32 %v383_v57 }
 0x39b   :  { %v260_v1 = vmul.f32 %v2477_v58, %v259_v63  ;;  %v399_v22 = vor.u32 1.1754944e-38, %v398_v14  ;;  %vm397_vm6 = vcmp.eq.f32.partialorder %v396_v17, 8.507059e+37 }
 0x39d   :  { %v261_v2 = vadd.f32 %v2477_v58, %v260_v1 }
 0x39f   :  { %v2479_v5 = vpop.eup %2478  ;;  %v265_v6 = vsel %vm264_vm1, %v2477_v58, %v261_v2 }
 0x3a0   :  { %v388_v7 = vmul.f32 %v2479_v5, %v383_v57  ;;  %v386_v8 = vpop.xlane.xlu2 %385  ;;  %v270_v11 = vsel %vm267_vm2, %v269_v3, %v265_v6  ;;  %vm393_vm3 = vweird.f32 %v2479_v5 }
 0x3a1   :  { %2480 = vrcp.f32 %v386_v8  ;;  %v271_v13 = vmul.f32 %v2779_v4, %v270_v11  ;;  %vm394_vm5 = vmor %vm392_vm4, %vm393_vm3  ;;  %v413_v27 = vand.u32 2147483648, %v386_v8  ;;  %v411_v29 = vand.u32 2147483647, %v386_v8 }
 0x3a2   :  { %v389_v12 = vsub.f32 1.0, %v388_v7  ;;  %vm407_vm10 = vweird.f32 %v386_v8 }
 0x3a3   :  { %273 = vst.msk [vmem:[%s3403_s19 + $0x8] sm:$0xff] %vm178_vm8, %v271_v13  ;;  %v275_v18 = vpack.c.bf16 %v271_v13, %v271_v13  ;;  %v414_v33 = vor.u32 1.1754944e-38, %v413_v27  ;;  %vm412_vm12 = vcmp.eq.f32.partialorder %v411_v29, 8.507059e+37 }
 0x3a4   :  { %v390_v16 = vmul.f32 %v2479_v5, %v389_v12 }
 0x3a6   :  { %v391_v19 = vadd.f32 %v2479_v5, %v390_v16  ;;  %2237 = vmatmul.msk.bf16.vlgmr.msrb.gmra.mxu3 %vm178_vm8, %v275_v18 }
 0x3a7   :  { %v2481_v20 = vpop.eup %2480 }
 0x3a8   :  { %v395_v23 = vsel %vm394_vm5, %v2479_v5, %v391_v19  ;;  %v403_v4 = vmul.f32 %v2481_v20, %v386_v8  ;;  %vm408_vm7 = vweird.f32 %v2481_v20 }
 0x3a9   :  { %v400_v24 = vsel %vm397_vm6, %v399_v22, %v395_v23  ;;  %vm409_vm11 = vmor %vm407_vm10, %vm408_vm7 }
 0x3aa   :  { %v404_v25 = vsub.f32 1.0, %v403_v4  ;;  %v2833_v26 = vmul.f32 %v2783_v9, %v400_v24 }
 0x3ac   :  { %v405_v28 = vmul.f32 %v2481_v20, %v404_v25  ;;  %v428_v30 = vpack.c.bf16 %v2833_v26, %v2833_v26 }
 0x3ae   :  { %v406_v31 = vadd.f32 %v2481_v20, %v405_v28  ;;  %2240 = vmatmul.msk.bf16.vlgmr.msrb.gmra.mxu2 %vm178_vm8, %v428_v30 }
 0x3b0   :  { %v410_v34 = vsel %vm409_vm11, %v2481_v20, %v406_v31 }
 0x3b1   :  { %v415_v37 = vsel %vm412_vm12, %v414_v33, %v410_v34 }
 0x3b2   :  { %v2839_v38 = vmul.f32 %v2788_v15, %v415_v37 }
 0x3b4   :  { %v429_v9 = vpack.c.bf16 %v2839_v38, %v2839_v38 }
 0x3b6   :  { %2241 = vmatmul.msk.bf16.vlgmr.msra.gmra.mxu3 %vm178_vm8, %v429_v9 }
 0x3c0   :  { %v2844_v40 = vpop.xlane.xlu1 %707 }
 0x3c1   :  { %v735_v29 = vand.u32 2147483648, %v2844_v40  ;;  %v733_v31 = vand.u32 2147483647, %v2844_v40 }
 0x3c3   :  { %v736_v37 = vor.u32 1.1754944e-38, %v735_v29 }
 0x3d2   :  { %v544_v39 = vpop.xlane.xlu2 %543 }
 0x3d3   :  { %2482 = vrcp.f32 %v544_v39  ;;  %v559_v15 = vand.u32 2147483648, %v544_v39  ;;  %v557_v47 = vand.u32 2147483647, %v544_v39  ;;  %vm553_vm14 = vweird.f32 %v544_v39 }
 0x3d4   :  { %2484 = vrcp.f32 %v2844_v40 }
 0x3d5   :  { %v560_v53 = vor.u32 1.1754944e-38, %v559_v15  ;;  %vm558_vm1 = vcmp.eq.f32.partialorder %v557_v47, 8.507059e+37 }
 0x3d9   :  { %v2483_v41 = vpop.eup %2482 }
 0x3da   :  { %v549_v42 = vmul.f32 %v2483_v41, %v544_v39  ;;  %v705_v43 = vpop.xlane.xlu0 %704  ;;  %v547_v44 = vpop.xlane.xlu2 %546  ;;  %vm554_vm13 = vweird.f32 %v2483_v41 }
 0x3db   :  { %2486 = vrcp.f32 %v705_v43  ;;  %v2847_v48 = vpop.eup %2484  ;;  %vm555_vm15 = vmor %vm553_vm14, %vm554_vm13  ;;  %v574_v2 = vand.u32 2147483648, %v547_v44  ;;  %v572_v6 = vand.u32 2147483647, %v547_v44  ;;  %v720_v8 = vand.u32 2147483648, %v705_v43 }
 0x3dc   :  { %v550_v45 = vsub.f32 1.0, %v549_v42  ;;  %2488 = vrcp.f32 %v547_v44  ;;  %v725_v0 = vmul.f32 %v2847_v48, %v2844_v40  ;;  %vm568_vm4 = vweird.f32 %v547_v44 }
 0x3dd   :  { %vm714_vm5 = vweird.f32 %v705_v43  ;;  %v718_v12 = vand.u32 2147483647, %v705_v43  ;;  %v575_v13 = vor.u32 1.1754944e-38, %v574_v2  ;;  %vm573_vm10 = vcmp.eq.f32.partialorder %v572_v6, 8.507059e+37  ;;  %v2434_v6 = vld [vmem:[%s3404_s6] ss:$0 sm:$0xff] }
 0x3de   :  { %v551_v46 = vmul.f32 %v2483_v41, %v550_v45  ;;  %v721_v22 = vor.u32 1.1754944e-38, %v720_v8  ;;  %vm730_vm12 = vweird.f32 %v2847_v48  ;;  %vm729_vm13 = vweird.f32 %v2844_v40 }
 0x3df   :  { %vm719_vm11 = vcmp.eq.f32.partialorder %v718_v12, 8.507059e+37  ;;  %vm731_vm14 = vmor %vm729_vm13, %vm730_vm12 }
 0x3e0   :  { %v552_v51 = vadd.f32 %v2483_v41, %v551_v46 }
 0x3e1   :  { %v2487_v52 = vpop.eup %2486 }
 0x3e2   :  { %v2489_v54 = vpop.eup %2488  ;;  %v556_v55 = vsel %vm555_vm15, %v2483_v41, %v552_v51  ;;  %v710_v62 = vmul.f32 %v2487_v52, %v705_v43  ;;  %v592_v56 = vpop.permute.xlu2 %591  ;;  %vm715_vm3 = vweird.f32 %v2487_v52  ;;  %vm734_vm15 = vcmp.eq.f32.partialorder %v733_v31, 8.507059e+37  ;;  %v2398_v31 = vld [vmem:[%s3409_s9] sm:$0xff] }
 0x3e3   :  { %v561_v58 = vsel %vm558_vm1, %v560_v53, %v556_v55  ;;  %v564_v59 = vmul.f32 %v2489_v54, %v547_v44  ;;  %v597_v61 = vsel %vm281_vm9, %v592_v56, 0  ;;  %vm569_vm2 = vweird.f32 %v2489_v54  ;;  %vm716_vm7 = vmor %vm714_vm5, %vm715_vm3 }
 0x3e4   :  { %v2851_v57 = vmul.f32 %v2798_v32, %v561_v58  ;;  %v711_v63 = vsub.f32 1.0, %v710_v62  ;;  %606 = vmatpush.bf16.msra.mxu2 %v597_v61  ;;  %v726_v32 = vsub.f32 1.0, %v725_v0  ;;  %vm570_vm6 = vmor %vm568_vm4, %vm569_vm2  ;;  %vm425_vm1 = vcmask 130112   ;;  %v2396_v0 = vld [vmem:[%s3405_s5] sm:$0xff] }
 0x3e5   :  { %v565_v1 = vsub.f32 1.0, %v564_v59  ;;  %vm586_vm2 = vcmask 195712   ;;  %vm747_vm3 = vcmask 261312  }
 0x3e6   :  { %v712_v60 = vmul.f32 %v2487_v52, %v711_v63  ;;  %v589_v3 = vpack.c.bf16 %v2851_v57, %v2851_v57  ;;  %v727_v20 = vmul.f32 %v2847_v48, %v726_v32  ;;  %v2397_v63 = vld [vmem:[%s3405_s5 + $0x8] sm:$0xff] }
 0x3e7   :  { %v566_v5 = vmul.f32 %v2489_v54, %v565_v1  ;;  %836 = vmatpush.bf16.msra.mxu0 %v2397_v63  ;;  %v2437_v63 = vld [vmem:[%s3408_s10] ss:$0 sm:$0xff] }
 0x3e8   :  { %v713_v7 = vadd.f32 %v2487_v52, %v712_v60  ;;  %2244 = vmatmul.msk.bf16.vlgmr.msra.gmra.mxu2 %vm178_vm8, %v589_v3  ;;  %v728_v28 = vadd.f32 %v2847_v48, %v727_v20 }
 0x3e9   :  { %v567_v11 = vadd.f32 %v2489_v54, %v566_v5 }
 0x3ea   :  { %v613_v14 = vpop.permute.xlu2 %612  ;;  %v717_v18 = vsel %vm716_vm7, %v2487_v52, %v713_v7  ;;  %v732_v34 = vsel %vm731_vm14, %v2847_v48, %v728_v28 }
 0x3eb   :  { %v571_v16 = vsel %vm570_vm6, %v2489_v54, %v567_v11  ;;  %v618_v17 = vsel %vm281_vm9, %v613_v14, 0  ;;  %v722_v25 = vsel %vm719_vm11, %v721_v22, %v717_v18  ;;  %v737_v39 = vsel %vm734_vm15, %v736_v37, %v732_v34  ;;  %837 = vmatpush.bf16.msra.mxu0 %v2396_v0 }
 0x3ec   :  { %v576_v19 = vsel %vm573_vm10, %v575_v13, %v571_v16  ;;  %627 = vmatpush.bf16.msrb.mxu3 %v618_v17 }
 0x3ed   :  { %v2861_v23 = vmul.f32 %v2802_v35, %v576_v19  ;;  %v774_v4 = vpop.permute.xlu0 %773  ;;  %v2871_v35 = vmul.f32 %v2804_v36, %v722_v25  ;;  %v2881_v36 = vmul.f32 %v2792_v21, %v737_v39 }
 0x3ee   :  { %v779_v24 = vsel %vm281_vm9, %v774_v4, 0 }
 0x3ef   :  { %v590_v27 = vpack.c.bf16 %v2861_v23, %v2861_v23  ;;  %v750_v9 = vpack.c.bf16 %v2871_v35, %v2871_v35  ;;  %v751_v40 = vpack.c.bf16 %v2881_v36, %v2881_v36 }
 0x3f0   :  { %788 = vmatpush.bf16.msra.mxu3 %v779_v24 }
 0x3f1   :  { %2245 = vmatmul.msk.bf16.vlgmr.msrb.gmra.mxu3 %vm178_vm8, %v590_v27 }
 0x3f2   :  { %v753_v30 = vpop.permute.xlu2 %752 }
 0x3f3   :  { %v758_v33 = vsel %vm281_vm9, %v753_v30, 0 }
 0x3f4   :  { %767 = vmatpush.bf16.msrb.mxu2 %v758_v33 }
 0x3f8   :  { %2248 = vmatmul.msk.bf16.vlgmr.msrb.gmra.mxu2 %vm178_vm8, %v750_v9 }
 0x401   :  { %2249 = vmatmul.msk.bf16.vlgmr.msra.gmra.mxu3 %vm178_vm8, %v751_v40 }
 0x419   :  { %v294_v41 = vpop.f32.mrf.mxu3 }
 0x41a   :  { %319 = vst.msk [vmem:[#allocation2] sm:$0xff] %vm178_vm8, %v294_v41 }
 0x421   :  { %v296_v42 = vpop.f32.mrf.mxu3 }
 0x429   :  { %v315_v43 = vpop.f32.mrf.mxu3 }
 0x42a   :  { %320 = vst.msk [vmem:[#allocation2 + $0x8] sm:$0xff] %vm178_vm8, %v315_v43 }
 0x431   :  { %v447_v44 = vpop.f32.mrf.mxu2  ;;  %v317_v45 = vpop.f32.mrf.mxu3 }
 0x432   :  { %474 = vrot.lane.b32.xlu1 %v447_v44, %s3426_s22 }
 0x439   :  { %v449_v15 = vpop.f32.mrf.mxu2  ;;  %v468_v21 = vpop.f32.mrf.mxu3 }
 0x441   :  { %v470_v46 = vpop.f32.mrf.mxu3 }
 0x46b   :  { %v608_v47 = vpop.f32.mrf.mxu2 }
 0x46c   :  { %635 = vrot.lane.b32.xlu2 %v608_v47, %s3424_s23 }
 0x473   :  { %v610_v48 = vpop.f32.mrf.mxu2 }
 0x474   :  { %v629_v51 = vpop.f32.mrf.mxu3  ;;  %476 = vrot.lane.b32.xlu2 %v468_v21, %s3426_s22  ;;  %v2435_v48 = vld [vmem:[%s3406_s7] ss:$0 sm:$0xff] }
 0x475   :  { %637 = vrot.lane.b32.xlu0 %v629_v51, %s3424_s23 }
 0x47b   :  { %v769_v52 = vpop.f32.mrf.mxu2 }
 0x47c   :  { %v631_v53 = vpop.f32.mrf.mxu3  ;;  %796 = vrot.lane.b32.xlu2 %v769_v52, %s3428_s1 }
 0x483   :  { %v771_v54 = vpop.f32.mrf.mxu2 }
 0x484   :  { %v790_v55 = vpop.f32.mrf.mxu3  ;;  %v2436_v54 = vld [vmem:[%s3407_s8] ss:$0 sm:$0xff] }
 0x485   :  { %798 = vrot.lane.b32.xlu1 %v790_v55, %s3428_s1 }
 0x48c   :  { %v792_v62 = vpop.f32.mrf.mxu3 }
 0x4a4   :  { %v475_v56 = vpop.permute.xlu1 %474 }
 0x4a5   :  { %480 = vst.msk [vmem:[#allocation2] sm:$0xff] %vm425_vm1, %v475_v56 }
 0x4c6   :  { %v636_v58 = vpop.permute.xlu2 %635 }
 0x4c7   :  { %641 = vst.msk [vmem:[#allocation2] sm:$0xff] %vm586_vm2, %v636_v58 }
 0x4ce   :  { %v477_v59 = vpop.permute.xlu2 %476 }
 0x4cf   :  { %481 = vst.msk [vmem:[#allocation2 + $0x8] sm:$0xff] %vm425_vm1, %v477_v59 }
 0x4d6   :  { %v797_v61 = vpop.permute.xlu2 %796 }
 0x4d7   :  { %802 = vst.msk [vmem:[#allocation2] sm:$0xff] %vm747_vm3, %v797_v61 }
 0x4de   :  { %v804_v2 = vld [vmem:[#allocation2] sm:$0xff] }
 0x4e7   :  { %v638_v1 = vpop.permute.xlu0 %637 }
 0x4e8   :  { %642 = vst.msk [vmem:[#allocation2 + $0x8] sm:$0xff] %vm586_vm2, %v638_v1 }
 0x4f7   :  { %v799_v60 = vpop.permute.xlu1 %798 }
 0x4f8   :  { %803 = vst.msk [vmem:[#allocation2 + $0x8] sm:$0xff] %vm747_vm3, %v799_v60 }
 0x4ff   :  { %v805_v3 = vld [vmem:[#allocation2 + $0x8] sm:$0xff] }
 0x500   :  { %v806_v5 = vpack.c.bf16 %v805_v3, %v804_v2 }
 0x502   :  { %2258 = vmatmul.msk.bf16.vlgmr.msra.gmra.mxu0 %vm71_vm0, %v806_v5 }
 0x57f   :  { %v839_v7 = vpop.f32.mrf.mxu0 }
 0x580   :  { %v840_v32 = vadd.f32 %v2434_v6, %v839_v7 }
 0x582   :  { %v844_v8 = vadd.f32 %v840_v32, %v2698_v49 }
 0x584   :  { %v848_v11 = vsel %vm71_vm0, %v844_v8, 0.0 }
 0x585   :  { %849 = vadd.xlane.f32.xlu0 %v848_v11 }
 0x587   :  { %v841_v12 = vpop.f32.mrf.mxu0 }
 0x588   :  { %v842_v13 = vadd.f32 %v2434_v6, %v841_v12 }
 0x58a   :  { %v845_v14 = vadd.f32 %v842_v13, %v2700_v50  ;;  %v2399_v50 = vld [vmem:[%s3409_s9 + $0x8] sm:$0xff] }
 0x58b   :  { %932 = vmatpush.bf16.msra.mxu1 %v2399_v50 }
 0x58c   :  { %v851_v16 = vsel %vm71_vm0, %v845_v14, 0.0 }
 0x58d   :  { %852 = vadd.xlane.f32.xlu2 %v851_v16 }
 0x58f   :  { %933 = vmatpush.bf16.msra.mxu1 %v2398_v31 }
 0x5f8   :  { %v850_v17 = vpop.xlane.xlu0 %849 }
 0x5f9   :  { %v854_v18 = vmul.f32 %v850_v17, %v2678_v10 }
 0x5fb   :  { %v856_v19 = vsub.f32 %v844_v8, %v854_v18 }
 0x5fd   :  { %v858_v20 = vmul.f32 %v856_v19, %v856_v19 }
 0x5ff   :  { %v860_v22 = vsel %vm71_vm0, %v858_v20, 0.0  ;;  %v2403_v20 = vld [vmem:[%s3411_s11 + $0x18] sm:$0xff] }
 0x600   :  { %v853_v4 = vpop.xlane.xlu2 %852  ;;  %861 = vadd.xlane.f32.xlu1 %v860_v22  ;;  %1073 = vmatpush.bf16.msra.mxu2 %v2403_v20 }
 0x601   :  { %v855_v49 = vmul.f32 %v853_v4, %v2678_v10 }
 0x603   :  { %v857_v24 = vsub.f32 %v845_v14, %v855_v49 }
 0x605   :  { %v859_v25 = vmul.f32 %v857_v24, %v857_v24 }
 0x607   :  { %v863_v27 = vsel %vm71_vm0, %v859_v25, 0.0 }
 0x608   :  { %864 = vadd.xlane.f32.xlu0 %v863_v27 }
 0x673   :  { %v862_v28 = vpop.xlane.xlu1 %861 }
 0x674   :  { %v866_v29 = vmul.f32 %v862_v28, %v2678_v10  ;;  %v2402_v28 = vld [vmem:[%s3411_s11 + $0x10] sm:$0xff] }
 0x675   :  { %1074 = vmatpush.bf16.msra.mxu2 %v2402_v28 }
 0x676   :  { %v868_v30 = vadd.f32 1e-12, %v866_v29 }
 0x678   :  { %2490 = vrsqrt.f32 %v868_v30  ;;  %vm876_vm5 = vweird.f32 %v868_v30 }
 0x67b   :  { %v865_v33 = vpop.xlane.xlu0 %864 }
 0x67c   :  { %v867_v34 = vmul.f32 %v865_v33, %v2678_v10 }
 0x67e   :  { %v2491_v37 = vpop.eup %2490  ;;  %v869_v9 = vadd.f32 1e-12, %v867_v34 }
 0x67f   :  { %v871_v39 = vmul.f32 %v2491_v37, %v868_v30  ;;  %vm877_vm4 = vweird.f32 %v2491_v37 }
 0x680   :  { %2492 = vrsqrt.f32 %v869_v9  ;;  %vm878_vm6 = vmor %vm876_vm5, %vm877_vm4  ;;  %vm886_vm10 = vweird.f32 %v869_v9 }
 0x681   :  { %v872_v40 = vmul.f32 %v2491_v37, %v871_v39  ;;  %v2401_v39 = vld [vmem:[%s3411_s11 + $0x8] sm:$0xff] }
 0x682   :  { %1075 = vmatpush.bf16.msra.mxu2 %v2401_v39 }
 0x683   :  { %v873_v41 = vmul.f32 0.5, %v872_v40 }
 0x685   :  { %v874_v42 = vsub.f32 1.5, %v873_v41 }
 0x686   :  { %v2493_v43 = vpop.eup %2492 }
 0x687   :  { %v875_v44 = vmul.f32 %v2491_v37, %v874_v42  ;;  %v881_v45 = vmul.f32 %v2493_v43, %v869_v9  ;;  %vm887_vm7 = vweird.f32 %v2493_v43 }
 0x688   :  { %vm888_vm11 = vmor %vm886_vm10, %vm887_vm7  ;;  %vm1065_vm10 = vcmask 523264  }
 0x689   :  { %v882_v15 = vmul.f32 %v2493_v43, %v881_v45  ;;  %v879_v21 = vsel %vm878_vm6, %v2491_v37, %v875_v44  ;;  %v2400_v45 = vld [vmem:[%s3411_s11] sm:$0xff] }
 0x68a   :  { %v890_v51 = vmul.f32 %v879_v21, %v856_v19  ;;  %1076 = vmatpush.bf16.msra.mxu2 %v2400_v45 }
 0x68b   :  { %v883_v46 = vmul.f32 0.5, %v882_v15 }
 0x68c   :  { %v895_v55 = vmul.f32 %v2435_v48, %v890_v51 }
 0x68d   :  { %v884_v47 = vsub.f32 1.5, %v883_v46 }
 0x68e   :  { %v2932_v58 = vadd.f32 %v2436_v54, %v895_v55 }
 0x68f   :  { %v885_v52 = vmul.f32 %v2493_v43, %v884_v47 }
 0x691   :  { %v889_v53 = vsel %vm888_vm11, %v2493_v43, %v885_v52 }
 0x692   :  { %v891_v62 = vmul.f32 %v889_v53, %v857_v24 }
 0x694   :  { %v896_v56 = vmul.f32 %v2435_v48, %v891_v62 }
 0x696   :  { %v2934_v59 = vadd.f32 %v2436_v54, %v896_v56 }
 0x698   :  { %v902_v61 = vpack.c.bf16 %v2934_v59, %v2932_v58 }
 0x69a   :  { %2267 = vmatmul.msk.bf16.vlgmr.msra.gmra.mxu1 %vm71_vm0, %v902_v61 }
 0x717   :  { %v935_v0 = vpop.f32.mrf.mxu1 }
 0x718   :  { %v2942_v1 = vadd.f32 %v2437_v63, %v935_v0 }
 0x71a   :  { %v2945_v60 = vmul.f32 0.70710677, %v2942_v1 }
 0x71c   :  { %v944_v2 = vmul.f32 %v2945_v60, %v2945_v60 }
 0x71e   :  { %v945_v3 = vmin.f32 %v944_v2, 16.0 }
 0x71f   :  { %v937_v5 = vpop.f32.mrf.mxu1 }
 0x720   :  { %v946_v6 = vmul.f32 2.1237322e-06, %v945_v3  ;;  %v957_v7 = vmul.f32 3.8918573e-05, %v945_v3  ;;  %v2949_v32 = vadd.f32 %v2437_v63, %v937_v5 }
 0x722   :  { %v947_v8 = vadd.f32 0.00028619796, %v946_v6  ;;  %v958_v11 = vadd.f32 0.001143296, %v957_v7  ;;  %v2952_v12 = vmul.f32 0.70710677, %v2949_v32 }
 0x724   :  { %v959_v13 = vmul.f32 %v958_v11, %v945_v3  ;;  %v984_v14 = vmul.f32 %v2952_v12, %v2952_v12  ;;  %v948_v16 = vmul.f32 %v947_v8, %v945_v3 }
 0x726   :  { %v960_v17 = vadd.f32 0.014752088, %v959_v13  ;;  %v985_v18 = vmin.f32 %v984_v14, 16.0  ;;  %v949_v49 = vadd.f32 0.0036580483, %v948_v16 }
 0x728   :  { %v961_v19 = vmul.f32 %v960_v17, %v945_v3  ;;  %v986_v22 = vmul.f32 2.1237322e-06, %v985_v18  ;;  %v997_v4 = vmul.f32 3.8918573e-05, %v985_v18  ;;  %v950_v31 = vmul.f32 %v949_v49, %v945_v3 }
 0x72a   :  { %v962_v24 = vadd.f32 0.112945676, %v961_v19  ;;  %v987_v25 = vadd.f32 0.00028619796, %v986_v22  ;;  %v998_v27 = vadd.f32 0.001143296, %v997_v4 }
 0x72b   :  { %v951_v41 = vadd.f32 0.05243302, %v950_v31  ;;  %v940_v31 = vmul.f32 0.5, %v2942_v1 }
 0x72c   :  { %v963_v50 = vmul.f32 %v962_v24, %v945_v3  ;;  %v988_v29 = vmul.f32 %v987_v25, %v985_v18  ;;  %v999_v30 = vmul.f32 %v998_v27, %v985_v18 }
 0x72d   :  { %v952_v21 = vmul.f32 %v951_v41, %v945_v3 }
 0x72e   :  { %v964_v33 = vadd.f32 0.4994258, %v963_v50  ;;  %v989_v34 = vadd.f32 0.0036580483, %v988_v29  ;;  %v1000_v37 = vadd.f32 0.014752088, %v999_v30 }
 0x72f   :  { %v953_v52 = vadd.f32 0.18741608, %v952_v21 }
 0x730   :  { %v965_v9 = vmul.f32 %v964_v33, %v945_v3  ;;  %v1001_v40 = vmul.f32 %v1000_v37, %v985_v18  ;;  %v990_v43 = vmul.f32 %v989_v34, %v985_v18  ;;  %v941_v33 = vmul.f32 0.5, %v2949_v32 }
 0x731   :  { %v954_v56 = vmul.f32 %v953_v52, %v945_v3 }
 0x732   :  { %v966_v42 = vadd.f32 1.0, %v965_v9  ;;  %v1002_v44 = vadd.f32 0.112945676, %v1001_v40  ;;  %v991_v46 = vadd.f32 0.05243302, %v990_v43 }
 0x733   :  { %v955_v6 = vadd.f32 1.1283791, %v954_v56 }
 0x734   :  { %2494 = vrcp.f32 %v966_v42  ;;  %v1003_v15 = vmul.f32 %v1002_v44, %v985_v18  ;;  %v992_v54 = vmul.f32 %v991_v46, %v985_v18  ;;  %v978_v63 = vand.u32 2147483648, %v966_v42 }
 0x735   :  { %v976_v2 = vand.u32 2147483647, %v966_v42  ;;  %vm972_vm13 = vweird.f32 %v966_v42  ;;  %v956_v17 = vmul.f32 %v955_v6, %v2945_v60 }
 0x736   :  { %v1004_v47 = vadd.f32 0.4994258, %v1003_v15  ;;  %v993_v0 = vadd.f32 0.18741608, %v992_v54  ;;  %v979_v11 = vor.u32 1.1754944e-38, %v978_v63 }
 0x737   :  { %vm977_vm15 = vcmp.eq.f32.partialorder %v976_v2, 8.507059e+37 }
 0x738   :  { %v1005_v48 = vmul.f32 %v1004_v47, %v985_v18  ;;  %v994_v13 = vmul.f32 %v993_v0, %v985_v18 }
 0x73a   :  { %v2495_v51 = vpop.eup %2494  ;;  %v1006_v55 = vadd.f32 1.0, %v1005_v48  ;;  %v995_v3 = vadd.f32 1.1283791, %v994_v13 }
 0x73b   :  { %v968_v53 = vmul.f32 %v2495_v51, %v966_v42  ;;  %vm973_vm12 = vweird.f32 %v2495_v51 }
 0x73c   :  { %2496 = vrcp.f32 %v1006_v55  ;;  %vm974_vm14 = vmor %vm972_vm13, %vm973_vm12  ;;  %v1018_v20 = vand.u32 2147483648, %v1006_v55  ;;  %v1016_v49 = vand.u32 2147483647, %v1006_v55  ;;  %vm1012_vm5 = vweird.f32 %v1006_v55 }
 0x73d   :  { %v969_v62 = vsub.f32 1.0, %v968_v53  ;;  %v996_v50 = vmul.f32 %v995_v3, %v2952_v12  ;;  %v2438_v12 = vld [vmem:[%s3410_s12] ss:$0 sm:$0xff] }
 0x73e   :  { %v1019_v25 = vor.u32 1.1754944e-38, %v1018_v20  ;;  %vm1017_vm7 = vcmp.eq.f32.partialorder %v1016_v49, 8.507059e+37 }
 0x73f   :  { %v970_v61 = vmul.f32 %v2495_v51, %v969_v62 }
 0x741   :  { %v971_v5 = vadd.f32 %v2495_v51, %v970_v61  ;;  %v2404_v61 = vld [vmem:[%s3440_s26 + $0x10] sm:$0xff] }
 0x742   :  { %v2497_v7 = vpop.eup %2496 }
 0x743   :  { %v975_v8 = vsel %vm974_vm14, %v2495_v51, %v971_v5  ;;  %v1008_v14 = vmul.f32 %v2497_v7, %v1006_v55  ;;  %vm1013_vm4 = vweird.f32 %v2497_v7 }
 0x744   :  { %v980_v16 = vsel %vm977_vm15, %v979_v11, %v975_v8  ;;  %vm1014_vm6 = vmor %vm1012_vm5, %vm1013_vm4 }
 0x745   :  { %v1009_v19 = vsub.f32 1.0, %v1008_v14  ;;  %v981_v22 = vmul.f32 %v980_v16, %v956_v17 }
 0x747   :  { %v1010_v4 = vmul.f32 %v2497_v7, %v1009_v19  ;;  %v2268_v27 = vclamps-f32 %v981_v22, 1.0  ;;  %v2439_v22 = vld [vmem:[%s3412_s13] ss:$0 sm:$0xff] }
 0x749   :  { %v1011_v24 = vadd.f32 %v2497_v7, %v1010_v4  ;;  %v1024_v30 = vadd.f32 1.0, %v2268_v27 }
 0x74b   :  { %v1015_v18 = vsel %vm1014_vm6, %v2497_v7, %v1011_v24  ;;  %v1026_v37 = vmul.f32 %v1024_v30, %v940_v31 }
 0x74c   :  { %v1020_v28 = vsel %vm1017_vm7, %v1019_v25, %v1015_v18  ;;  %v2440_v25 = vld [vmem:[%s3413_s14] ss:$0 sm:$0xff] }
 0x74d   :  { %v1021_v29 = vmul.f32 %v1020_v28, %v996_v50 }
 0x74f   :  { %v2269_v60 = vclamps-f32 %v1021_v29, 1.0 }
 0x751   :  { %v1025_v34 = vadd.f32 1.0, %v2269_v60  ;;  %v2441_v60 = vld [vmem:[%s3443_s24 + $0x1] ss:$0 sm:$0xff]  ;;  %s3444_s24 = smov 56  }
 0x753   :  { %v1027_v9 = vmul.f32 %v1025_v34, %v941_v33 }
 0x755   :  { %v1028_v39 = vpack.c.bf16 %v1027_v9, %v1026_v37 }
 0x757   :  { %2286 = vmatmul.msk.bf16.vlgmr.msra.gmra.mxu2 %vm1065_vm10, %v1028_v39 }
 0x7da   :  { %v1078_v40 = vpop.f32.mrf.mxu2 }
 0x7db   :  { %v1079_v41 = vadd.f32 %v2438_v12, %v1078_v40 }
 0x7dd   :  { %v1083_v42 = vadd.f32 %v1079_v41, %v2932_v58 }
 0x7df   :  { %v1087_v43 = vsel %vm71_vm0, %v1083_v42, 0.0 }
 0x7e0   :  { %1088 = vadd.xlane.f32.xlu2 %v1087_v43 }
 0x7e2   :  { %v1080_v1 = vpop.f32.mrf.mxu2 }
 0x7e3   :  { %v1081_v32 = vadd.f32 %v2438_v12, %v1080_v1 }
 0x7e5   :  { %v1084_v44 = vadd.f32 %v1081_v32, %v2934_v59  ;;  %v2405_v59 = vld [vmem:[%s3440_s26 + $0x18] sm:$0xff]  ;;  %s3449_s26 = smov 24  }
 0x7e6   :  { %1173 = vmatpush.bf16.msrb.mxu3 %v2405_v59 }
 0x7e7   :  { %v1090_v45 = vsel %vm71_vm0, %v1084_v44, 0.0 }
 0x7e8   :  { %1091 = vadd.xlane.f32.xlu1 %v1090_v45 }
 0x7ea   :  { %1174 = vmatpush.bf16.msrb.mxu3 %v2404_v61 }
 0x853   :  { %v1089_v15 = vpop.xlane.xlu2 %1088 }
 0x854   :  { %v1093_v21 = vmul.f32 %v1089_v15, %v2678_v10 }
 0x856   :  { %v1095_v46 = vsub.f32 %v1083_v42, %v1093_v21 }
 0x858   :  { %v1097_v47 = vmul.f32 %v1095_v46, %v1095_v46 }
 0x85a   :  { %v1099_v48 = vsel %vm71_vm0, %v1097_v47, 0.0 }
 0x85b   :  { %v1092_v51 = vpop.xlane.xlu1 %1091  ;;  %1100 = vadd.xlane.f32.xlu0 %v1099_v48 }
 0x85c   :  { %v1094_v58 = vmul.f32 %v1092_v51, %v2678_v10 }
 0x85e   :  { %v1096_v52 = vsub.f32 %v1084_v44, %v1094_v58 }
 0x860   :  { %v1098_v53 = vmul.f32 %v1096_v52, %v1096_v52 }
 0x862   :  { %v1102_v54 = vsel %vm71_vm0, %v1098_v53, 0.0 }
 0x863   :  { %1103 = vadd.xlane.f32.xlu2 %v1102_v54 }
 0x8ce   :  { %v1101_v55 = vpop.xlane.xlu0 %1100 }
 0x8cf   :  { %v1105_v62 = vmul.f32 %v1101_v55, %v2678_v10 }
 0x8d1   :  { %v1107_v56 = vadd.f32 1e-12, %v1105_v62 }
 0x8d3   :  { %2498 = vrsqrt.f32 %v1107_v56  ;;  %vm1115_vm12 = vweird.f32 %v1107_v56 }
 0x8d6   :  { %v1104_v63 = vpop.xlane.xlu2 %1103 }
 0x8d7   :  { %v1106_v0 = vmul.f32 %v1104_v63, %v2678_v10 }
 0x8d9   :  { %v2499_v2 = vpop.eup %2498  ;;  %v1108_v5 = vadd.f32 1e-12, %v1106_v0 }
 0x8da   :  { %v1110_v6 = vmul.f32 %v2499_v2, %v1107_v56  ;;  %vm1116_vm11 = vweird.f32 %v2499_v2 }
 0x8db   :  { %2500 = vrsqrt.f32 %v1108_v5  ;;  %vm1117_vm13 = vmor %vm1115_vm12, %vm1116_vm11  ;;  %vm1125_vm15 = vweird.f32 %v1108_v5 }
 0x8dc   :  { %v1111_v7 = vmul.f32 %v2499_v2, %v1110_v6 }
 0x8de   :  { %v1112_v8 = vmul.f32 0.5, %v1111_v7 }
 0x8e0   :  { %v1113_v11 = vsub.f32 1.5, %v1112_v8 }
 0x8e1   :  { %v2501_v13 = vpop.eup %2500 }
 0x8e2   :  { %v1114_v14 = vmul.f32 %v2499_v2, %v1113_v11  ;;  %v1120_v16 = vmul.f32 %v2501_v13, %v1108_v5  ;;  %vm1126_vm14 = vweird.f32 %v2501_v13 }
 0x8e3   :  { %vm1127_vm4 = vmor %vm1125_vm15, %vm1126_vm14 }
 0x8e4   :  { %v1121_v17 = vmul.f32 %v2501_v13, %v1120_v16  ;;  %v1118_v19 = vsel %vm1117_vm13, %v2499_v2, %v1114_v14 }
 0x8e5   :  { %v1129_v4 = vmul.f32 %v1118_v19, %v1095_v46 }
 0x8e6   :  { %v1122_v3 = vmul.f32 0.5, %v1121_v17 }
 0x8e7   :  { %v1134_v27 = vmul.f32 %v2439_v22, %v1129_v4 }
 0x8e8   :  { %v1123_v20 = vsub.f32 1.5, %v1122_v3 }
 0x8e9   :  { %v2998_v28 = vadd.f32 %v2440_v25, %v1134_v27 }
 0x8ea   :  { %v1124_v49 = vmul.f32 %v2501_v13, %v1123_v20 }
 0x8ec   :  { %v1128_v24 = vsel %vm1127_vm4, %v2501_v13, %v1124_v49 }
 0x8ed   :  { %v1130_v50 = vmul.f32 %v1128_v24, %v1096_v52 }
 0x8ef   :  { %v1135_v18 = vmul.f32 %v2439_v22, %v1130_v50 }
 0x8f1   :  { %v3000_v29 = vadd.f32 %v2440_v25, %v1135_v18 }
 0x8f3   :  { %v1141_v30 = vpack.c.bf16 %v3000_v29, %v2998_v28 }
 0x8f5   :  { %2300 = vmatmul.msk.bf16.vlgmr.msrb.gmra.mxu3 %vm71_vm0, %v1141_v30 }
 0x978   :  { %v1176_v31 = vpop.f32.mrf.mxu3 }
 0x979   :  { %v1177_v33 = vadd.f32 %v2441_v60, %v1176_v31 }
 0x97b   :  { %v1181_v34 = vpack.c.bf16 %v1177_v33, %v1177_v33 }
 0x97d   :  { %v1184_v37 = vunpack.c.l.b16 %v1181_v34 }
 0x97f   :  { %v3008_v9 = vpack.c.b16 %v1184_v37, %v1184_v37 }
 0x980   :  { %v1178_v39 = vpop.f32.mrf.mxu3 }
 0x981   :  { %v1179_v12 = vadd.f32 %v2441_v60, %v1178_v39  ;;  %1332 = vrot.lane.b32.xlu2 %v3008_v9, %s2551_s2  ;;  %1186 = vrot.lane.b32.xlu1 %v3008_v9, %s2552_s25 }
 0x983   :  { %v1182_v40 = vpack.c.bf16 %v1179_v12, %v1179_v12 }
 0x985   :  { %v1208_v41 = vunpack.c.l.b16 %v1182_v40 }
 0x987   :  { %v3014_v42 = vpack.c.b16 %v1208_v41, %v1208_v41 }
 0x989   :  { %1210 = vrot.lane.b32.xlu0 %v3014_v42, %s2552_s25  ;;  %1353 = vrot.lane.b32.xlu2 %v3014_v42, %s2556_s3  ;;  %s3446_s25 = smov 48  }
 0x98a   :  { %1330 = vrot.lane.b32.xlu1 %v3008_v9, %s2556_s3 }
 0x991   :  { %1355 = vrot.lane.b32.xlu0 %v3014_v42, %s2551_s2  ;;  %1490 = vrot.lane.b32.xlu2 %v3008_v9, %s2554_s27  ;;  %s3445_s2 = smov 40  }
 0x992   :  { %1515 = vrot.lane.b32.xlu1 %v3014_v42, %s2553_s4 }
 0x999   :  { %1492 = vrot.lane.b32.xlu0 %v3008_v9, %s2553_s4  ;;  %1675 = vrot.lane.b32.xlu2 %v3014_v42, %s2555_s28 }
 0x99a   :  { %1652 = vrot.lane.b32.xlu1 %v3008_v9, %s2555_s28 }
 0x9a1   :  { %1513 = vrot.lane.b32.xlu0 %v3014_v42, %s2554_s27 }
 0x9a2   :  { %1673 = vrot.lane.b32.xlu1 %v3014_v42, %s2557_s29 }
 0x9a9   :  { %1650 = vrot.lane.b32.xlu0 %v3008_v9, %s2557_s29  ;;  %s3447_s29 = smov 8  }
 0x9db   :  { %v1333_v43 = vpop.permute.xlu2 %1332 }
 0x9dc   :  { %v1338_v44 = vsel %vm178_vm8, %v1333_v43, 0 }
 0x9e3   :  { %v1354_v46 = vpop.permute.xlu2 %1353 }
 0x9eb   :  { %v1491_v52 = vpop.permute.xlu2 %1490 }
 0x9f3   :  { %v1187_v1 = vpop.permute.xlu1 %1186  ;;  %v1676_v62 = vpop.permute.xlu2 %1675 }
 0x9f4   :  { %v1192_v32 = vsel %vm178_vm8, %v1187_v1, 0  ;;  %v1681_v56 = vsel %vm178_vm8, %v1676_v62, 0 }
 0x9f5   :  { %1201 = vmatpush.bf16.xpose.msrb.mxu0 %v1192_v32 }
 0x9fb   :  { %v1211_v45 = vpop.permute.xlu0 %1210 }
 0x9fc   :  { %v1216_v15 = vsel %vm178_vm8, %v1211_v45, 0  ;;  %v1331_v21 = vpop.permute.xlu1 %1330  ;;  %2301 = vmatmul.msk.bf16.vlgmr.msrb.gmra.mxu0 %vm178_vm8, %v1181_v34 }
 0x9fd   :  { %1347 = vmatpush.bf16.xpose.msra.mxu0 %v1338_v44  ;;  %1225 = vmatpush.bf16.xpose.msrb.mxu1 %v1216_v15 }
 0xa03   :  { %v1356_v47 = vpop.permute.xlu0 %1355 }
 0xa04   :  { %v1361_v48 = vsel %vm178_vm8, %v1356_v47, 0  ;;  %v1516_v51 = vpop.permute.xlu1 %1515  ;;  %2302 = vmatmul.msk.bf16.vlgmr.msrb.gmra.mxu1 %vm178_vm8, %v1182_v40 }
 0xa05   :  { %v1521_v58 = vsel %vm178_vm8, %v1516_v51, 0  ;;  %1370 = vmatpush.bf16.xpose.msra.mxu1 %v1361_v48 }
 0xa0b   :  { %v1493_v53 = vpop.permute.xlu0 %1492 }
 0xa0c   :  { %v1498_v54 = vsel %vm178_vm8, %v1493_v53, 0  ;;  %v1653_v59 = vpop.permute.xlu1 %1652  ;;  %2307 = vmatmul.msk.bf16.vlgmr.msra.gmra.mxu0 %vm178_vm8, %v1331_v21 }
 0xa0d   :  { %1530 = vmatpush.bf16.xpose.msrb.mxu1 %v1521_v58  ;;  %v1658_v55 = vsel %vm178_vm8, %v1653_v59, 0  ;;  %1507 = vmatpush.bf16.xpose.msrb.mxu0 %v1498_v54 }
 0xa13   :  { %v1514_v61 = vpop.permute.xlu0 %1513 }
 0xa14   :  { %2308 = vmatmul.msk.bf16.vlgmr.msra.gmra.mxu1 %vm178_vm8, %v1354_v46  ;;  %v1674_v0 = vpop.permute.xlu1 %1673 }
 0xa15   :  { %1667 = vmatpush.bf16.xpose.msra.mxu0 %v1658_v55  ;;  %1690 = vmatpush.bf16.xpose.msra.mxu1 %v1681_v56 }
 0xa1b   :  { %v1651_v63 = vpop.permute.xlu0 %1650 }
 0xa1c   :  { %2313 = vmatmul.msk.bf16.vlgmr.msrb.gmra.mxu0 %vm178_vm8, %v1491_v52 }
 0xa24   :  { %2314 = vmatmul.msk.bf16.vlgmr.msrb.gmra.mxu1 %vm178_vm8, %v1514_v61 }
 0xa2c   :  { %2319 = vmatmul.msk.bf16.vlgmr.msra.gmra.mxu0 %vm178_vm8, %v1651_v63 }
 0xa34   :  { %2320 = vmatmul.msk.bf16.vlgmr.msra.gmra.mxu1 %vm178_vm8, %v1674_v0 }
 0xa79   :  { %v1203_v2 = vpop.f32.mrf.mxu0 }
 0xa7a   :  { %v1231_v5 = vmul.f32 0.35355338, %v1203_v2 }
 0xa7c   :  { %v1233_v6 = vsel %vm178_vm8, %v1231_v5, -inf }
 0xa7d   :  { %1234 = vmax.xlane.f32.xlu2 %v1233_v6 }
 0xa81   :  { %v1205_v7 = vpop.f32.mrf.mxu0  ;;  %v1227_v8 = vpop.f32.mrf.mxu1 }
 0xa82   :  { %v1232_v11 = vmul.f32 0.35355338, %v1227_v8 }
 0xa84   :  { %v1236_v13 = vsel %vm178_vm8, %v1232_v11, -inf }
 0xa85   :  { %1237 = vmax.xlane.f32.xlu0 %v1236_v13 }
 0xa89   :  { %v1229_v14 = vpop.f32.mrf.mxu1  ;;  %v1349_v16 = vpop.f32.mrf.mxu0 }
 0xa8a   :  { %v1376_v17 = vmul.f32 0.35355338, %v1349_v16 }
 0xa8c   :  { %v1378_v19 = vsel %vm178_vm8, %v1376_v17, -inf }
 0xa8d   :  { %1379 = vmax.xlane.f32.xlu1 %v1378_v19 }
 0xa91   :  { %v1351_v3 = vpop.f32.mrf.mxu0  ;;  %v1372_v20 = vpop.f32.mrf.mxu1 }
 0xa92   :  { %v1377_v22 = vmul.f32 0.35355338, %v1372_v20 }
 0xa94   :  { %v1381_v4 = vsel %vm178_vm8, %v1377_v22, -inf }
 0xa95   :  { %1382 = vmax.xlane.f32.xlu2 %v1381_v4 }
 0xa99   :  { %v1374_v49 = vpop.f32.mrf.mxu1  ;;  %v1509_v24 = vpop.f32.mrf.mxu0 }
 0xa9a   :  { %v1536_v25 = vmul.f32 0.35355338, %v1509_v24 }
 0xa9c   :  { %v1538_v27 = vsel %vm178_vm8, %v1536_v25, -inf }
 0xa9d   :  { %1539 = vmax.xlane.f32.xlu0 %v1538_v27 }
 0xaa1   :  { %v1511_v50 = vpop.f32.mrf.mxu0  ;;  %v1532_v18 = vpop.f32.mrf.mxu1 }
 0xaa2   :  { %v1537_v30 = vmul.f32 0.35355338, %v1532_v18 }
 0xaa4   :  { %v1541_v60 = vsel %vm178_vm8, %v1537_v30, -inf }
 0xaa5   :  { %1542 = vmax.xlane.f32.xlu2 %v1541_v60 }
 0xaa9   :  { %v1534_v31 = vpop.f32.mrf.mxu1  ;;  %v1669_v33 = vpop.f32.mrf.mxu0 }
 0xaaa   :  { %v1696_v34 = vmul.f32 0.35355338, %v1669_v33 }
 0xaac   :  { %v1698_v37 = vsel %vm178_vm8, %v1696_v34, -inf }
 0xaad   :  { %1699 = vmax.xlane.f32.xlu1 %v1698_v37 }
 0xab1   :  { %v1671_v39 = vpop.f32.mrf.mxu0  ;;  %v1692_v12 = vpop.f32.mrf.mxu1 }
 0xab2   :  { %v1697_v40 = vmul.f32 0.35355338, %v1692_v12 }
 0xab4   :  { %v1701_v41 = vsel %vm178_vm8, %v1697_v40, -inf }
 0xab5   :  { %1702 = vmax.xlane.f32.xlu0 %v1701_v41 }
 0xab9   :  { %v1694_v43 = vpop.f32.mrf.mxu1 }
 0xac9   :  { %1307 = vrot.lane.b32.xlu0 %v3014_v42, %s2558_s30 }
 0xaf0   :  { %v1235_v1 = vpop.xlane.xlu2 %1234 }
 0xaf1   :  { %v1239_v32 = vsub.f32 %v1231_v5, %v1235_v1 }
 0xaf3   :  { %v1241_v44 = vmul.f32 1.442695, %v1239_v32 }
 0xaf5   :  { %2502 = vpow2.f32 %v1241_v44 }
 0xaf8   :  { %v1238_v45 = vpop.xlane.xlu0 %1237 }
 0xaf9   :  { %v1240_v15 = vsub.f32 %v1232_v11, %v1238_v45 }
 0xafb   :  { %v3066_v21 = vpop.eup %2502  ;;  %v1243_v46 = vmul.f32 1.442695, %v1240_v15 }
 0xafc   :  { %v1245_v47 = vsel %vm178_vm8, %v3066_v21, 0.0 }
 0xafd   :  { %2504 = vpow2.f32 %v1243_v46  ;;  %1246 = vadd.xlane.f32.xlu2 %v1245_v47 }
 0xb00   :  { %v1380_v48 = vpop.xlane.xlu1 %1379 }
 0xb01   :  { %v1384_v51 = vsub.f32 %v1376_v17, %v1380_v48 }
 0xb03   :  { %v3070_v58 = vpop.eup %2504  ;;  %v1386_v52 = vmul.f32 1.442695, %v1384_v51 }
 0xb04   :  { %v1248_v53 = vsel %vm178_vm8, %v3070_v58, 0.0 }
 0xb05   :  { %2506 = vpow2.f32 %v1386_v52  ;;  %1249 = vadd.xlane.f32.xlu1 %v1248_v53 }
 0xb08   :  { %v1383_v55 = vpop.xlane.xlu2 %1382 }
 0xb09   :  { %v1385_v56 = vsub.f32 %v1377_v22, %v1383_v55 }
 0xb0b   :  { %v3074_v54 = vpop.eup %2506  ;;  %v1388_v61 = vmul.f32 1.442695, %v1385_v56 }
 0xb0c   :  { %v1390_v59 = vsel %vm178_vm8, %v3074_v54, 0.0 }
 0xb0d   :  { %1391 = vadd.xlane.f32.xlu0 %v1390_v59  ;;  %2508 = vpow2.f32 %v1388_v61 }
 0xb10   :  { %v1540_v62 = vpop.xlane.xlu0 %1539 }
 0xb11   :  { %v1544_v2 = vsub.f32 %v1536_v25, %v1540_v62 }
 0xb13   :  { %v1546_v6 = vmul.f32 1.442695, %v1544_v2  ;;  %v3084_v11 = vpop.eup %2508 }
 0xb14   :  { %v1393_v3 = vsel %vm178_vm8, %v3084_v11, 0.0 }
 0xb15   :  { %1438 = vrot.lane.b32.xlu2 %v3008_v9, %s3444_s24  ;;  %2510 = vpow2.f32 %v1546_v6 }
 0xb18   :  { %v1543_v7 = vpop.xlane.xlu2 %1542 }
 0xb19   :  { %v1545_v16 = vsub.f32 %v1537_v30, %v1543_v7 }
 0xb1b   :  { %v1548_v20 = vmul.f32 1.442695, %v1545_v16  ;;  %v3089_v22 = vpop.eup %2510 }
 0xb1c   :  { %v1550_v49 = vsel %vm178_vm8, %v3089_v22, 0.0 }
 0xb1e   :  { %1286 = vrot.lane.b32.xlu1 %v3008_v9, %s2558_s30  ;;  %s3448_s30 = smov 16  }
 0xb20   :  { %v1700_v63 = vpop.xlane.xlu1 %1699 }
 0xb21   :  { %1459 = vrot.lane.b32.xlu0 %v3014_v42, %s3444_s24  ;;  %v1704_v5 = vsub.f32 %v1696_v34, %v1700_v63 }
 0xb23   :  { %v1706_v13 = vmul.f32 1.442695, %v1704_v5 }
 0xb25   :  { %2512 = vpow2.f32 %v1706_v13 }
 0xb28   :  { %v1703_v0 = vpop.xlane.xlu0 %1702 }
 0xb29   :  { %v1705_v8 = vsub.f32 %v1697_v40, %v1703_v0 }
 0xb2b   :  { %v1708_v19 = vmul.f32 1.442695, %v1705_v8  ;;  %v3091_v4 = vpop.eup %2512 }
 0xb2c   :  { %v1710_v25 = vsel %vm178_vm8, %v3091_v4, 0.0 }
 0xb2d   :  { %2514 = vpow2.f32 %v1708_v19 }
 0xb2e   :  { %2516 = vpow2.f32 %v1548_v20 }
 0xb33   :  { %v3095_v24 = vpop.eup %2514 }
 0xb34   :  { %v3099_v27 = vpop.eup %2516  ;;  %v1713_v50 = vsel %vm178_vm8, %v3095_v24, 0.0 }
 0xb35   :  { %v1553_v18 = vsel %vm178_vm8, %v3099_v27, 0.0 }
 0xb3b   :  { %v1308_v14 = vpop.permute.xlu0 %1307 }
 0xb3c   :  { %v1313_v17 = vsel %vm281_vm9, %v1308_v14, 0 }
 0xb3d   :  { %1322 = vmatpush.bf16.msra.mxu3 %v1313_v17 }
 0xb3e   :  { %1394 = vadd.xlane.f32.xlu2 %v1393_v3 }
 0xb46   :  { %1551 = vadd.xlane.f32.xlu2 %v1550_v49 }
 0xb48   :  { %1711 = vadd.xlane.f32.xlu1 %v1710_v25 }
 0xb4b   :  { %1714 = vadd.xlane.f32.xlu0 %v1713_v50 }
 0xb4e   :  { %1554 = vadd.xlane.f32.xlu2 %v1553_v18 }
 0xb61   :  { %1779 = vrot.lane.b32.xlu1 %v3014_v42, %s3445_s2 }
 0xb66   :  { %1598 = vrot.lane.b32.xlu2 %v3008_v9, %s3446_s25 }
 0xb6e   :  { %1619 = vrot.lane.b32.xlu2 %v3014_v42, %s3446_s25 }
 0xb70   :  { %v1247_v30 = vpop.xlane.xlu2 %1246 }
 0xb71   :  { %2518 = vrcp.f32 %v1247_v30  ;;  %v1262_v37 = vand.u32 2147483648, %v1247_v30  ;;  %v1260_v12 = vand.u32 2147483647, %v1247_v30  ;;  %vm1256_vm6 = vweird.f32 %v1247_v30 }
 0xb73   :  { %v1263_v43 = vor.u32 1.1754944e-38, %v1262_v37  ;;  %vm1261_vm11 = vcmp.eq.f32.partialorder %v1260_v12, 8.507059e+37 }
 0xb76   :  { %1758 = vrot.lane.b32.xlu2 %v3008_v9, %s3445_s2 }
 0xb77   :  { %v2519_v60 = vpop.eup %2518 }
 0xb78   :  { %v1252_v31 = vmul.f32 %v2519_v60, %v1247_v30  ;;  %v1250_v33 = vpop.xlane.xlu1 %1249  ;;  %vm1257_vm5 = vweird.f32 %v2519_v60  ;;  %v1439_v61 = vpop.permute.xlu2 %1438 }
 0xb79   :  { %2520 = vrcp.f32 %v1250_v33  ;;  %vm1258_vm7 = vmor %vm1256_vm6, %vm1257_vm5  ;;  %v1277_v15 = vand.u32 2147483648, %v1250_v33  ;;  %v1275_v47 = vand.u32 2147483647, %v1250_v33  ;;  %vm1271_vm13 = vweird.f32 %v1250_v33 }
 0xb7a   :  { %v1253_v34 = vsub.f32 1.0, %v1252_v31  ;;  %v1444_v5 = vsel %vm281_vm9, %v1439_v61, 0 }
 0xb7b   :  { %v1278_v52 = vor.u32 1.1754944e-38, %v1277_v15  ;;  %vm1276_vm15 = vcmp.eq.f32.partialorder %v1275_v47, 8.507059e+37 }
 0xb7c   :  { %v1254_v39 = vmul.f32 %v2519_v60, %v1253_v34 }
 0xb7e   :  { %v1255_v40 = vadd.f32 %v2519_v60, %v1254_v39 }
 0xb7f   :  { %v2521_v41 = vpop.eup %2520 }
 0xb80   :  { %v1259_v42 = vsel %vm1258_vm7, %v2519_v60, %v1255_v40  ;;  %v1267_v1 = vmul.f32 %v2521_v41, %v1250_v33  ;;  %v1392_v32 = vpop.xlane.xlu0 %1391  ;;  %vm1272_vm12 = vweird.f32 %v2521_v41 }
 0xb81   :  { %v1264_v44 = vsel %vm1261_vm11, %v1263_v43, %v1259_v42  ;;  %2522 = vrcp.f32 %v1392_v32  ;;  %vm1273_vm14 = vmor %vm1271_vm13, %vm1272_vm12  ;;  %v1407_v13 = vand.u32 2147483648, %v1392_v32  ;;  %vm1401_vm5 = vweird.f32 %v1392_v32 }
 0xb82   :  { %v1265_v9 = vmul.f32 %v3066_v21, %v1264_v44  ;;  %v1268_v45 = vsub.f32 1.0, %v1267_v1  ;;  %v1405_v14 = vand.u32 2147483647, %v1392_v32 }
 0xb83   :  { %v1408_v17 = vor.u32 1.1754944e-38, %v1407_v13 }
 0xb84   :  { %v1269_v46 = vmul.f32 %v2521_v41, %v1268_v45  ;;  %2303 = vst.msk [vmem:[%s3403_s19 + $0x10] sm:$0xff] %vm178_vm8, %v1265_v9  ;;  %vm1406_vm7 = vcmp.eq.f32.partialorder %v1405_v14, 8.507059e+37 }
 0xb86   :  { %v1270_v48 = vadd.f32 %v2521_v41, %v1269_v46 }
 0xb87   :  { %v2523_v51 = vpop.eup %2522 }
 0xb88   :  { %v1274_v53 = vsel %vm1273_vm14, %v2521_v41, %v1270_v48  ;;  %v1397_v55 = vmul.f32 %v2523_v51, %v1392_v32  ;;  %vm1402_vm4 = vweird.f32 %v2523_v51 }
 0xb89   :  { %v1279_v59 = vsel %vm1276_vm15, %v1278_v52, %v1274_v53  ;;  %vm1403_vm6 = vmor %vm1401_vm5, %vm1402_vm4 }
 0xb8a   :  { %v1280_v21 = vmul.f32 %v3070_v58, %v1279_v59  ;;  %v1398_v56 = vsub.f32 1.0, %v1397_v55  ;;  %v1284_v58 = vpack.c.bf16 %v1265_v9, %v1265_v9 }
 0xb8c   :  { %v1285_v62 = vpack.c.bf16 %v1280_v21, %v1280_v21  ;;  %2304 = vst.msk [vmem:[%s3403_s19 + $0x18] sm:$0xff] %vm178_vm8, %v1280_v21  ;;  %v1399_v0 = vmul.f32 %v2523_v51, %v1398_v56 }
 0xb8e   :  { %2306 = vmatmul.msk.bf16.vlgmr.msra.gmra.mxu3 %vm178_vm8, %v1285_v62  ;;  %v1400_v8 = vadd.f32 %v2523_v51, %v1399_v0 }
 0xb90   :  { %v1287_v63 = vpop.permute.xlu1 %1286  ;;  %v1404_v16 = vsel %vm1403_vm6, %v2523_v51, %v1400_v8 }
 0xb91   :  { %v1292_v2 = vsel %vm281_vm9, %v1287_v63, 0  ;;  %v1409_v19 = vsel %vm1406_vm7, %v1408_v17, %v1404_v16 }
 0xb92   :  { %1301 = vmatpush.bf16.msrb.mxu2 %v1292_v2  ;;  %v3129_v3 = vmul.f32 %v3074_v54, %v1409_v19 }
 0xb93   :  { %v1460_v6 = vpop.permute.xlu0 %1459 }
 0xb94   :  { %v1465_v7 = vsel %vm281_vm9, %v1460_v6, 0  ;;  %v1436_v20 = vpack.c.bf16 %v3129_v3, %v3129_v3 }
 0xb95   :  { %2305 = vmatmul.msk.bf16.vlgmr.msrb.gmra.mxu2 %vm178_vm8, %v1284_v58  ;;  %1474 = vmatpush.bf16.msrb.mxu3 %v1465_v7 }
 0xb96   :  { %1453 = vmatpush.bf16.msra.mxu2 %v1444_v5 }
 0xba5   :  { %2311 = vmatmul.msk.bf16.vlgmr.msra.gmra.mxu2 %vm178_vm8, %v1436_v20 }
 0xbb1   :  { %v1395_v49 = vpop.xlane.xlu2 %1394 }
 0xbb2   :  { %2524 = vrcp.f32 %v1395_v49  ;;  %v1422_v31 = vand.u32 2147483648, %v1395_v49  ;;  %v1420_v54 = vand.u32 2147483647, %v1395_v49  ;;  %vm1416_vm12 = vweird.f32 %v1395_v49 }
 0xbb4   :  { %v1423_v12 = vor.u32 1.1754944e-38, %v1422_v31  ;;  %vm1421_vm14 = vcmp.eq.f32.partialorder %v1420_v54, 8.507059e+37 }
 0xbb8   :  { %v2525_v25 = vpop.eup %2524 }
 0xbb9   :  { %v1412_v50 = vmul.f32 %v2525_v25, %v1395_v49  ;;  %v1552_v18 = vpop.xlane.xlu2 %1551  ;;  %vm1417_vm11 = vweird.f32 %v2525_v25 }
 0xbba   :  { %2526 = vrcp.f32 %v1552_v18  ;;  %vm1418_vm13 = vmor %vm1416_vm12, %vm1417_vm11  ;;  %v1567_v45 = vand.u32 2147483648, %v1552_v18  ;;  %v1565_v46 = vand.u32 2147483647, %v1552_v18  ;;  %vm1561_vm4 = vweird.f32 %v1552_v18 }
 0xbbb   :  { %v1413_v30 = vsub.f32 1.0, %v1412_v50  ;;  %v3134_v60 = vpop.xlane.xlu1 %1711 }
 0xbbc   :  { %2528 = vrcp.f32 %v3134_v60  ;;  %v1568_v53 = vor.u32 1.1754944e-38, %v1567_v45  ;;  %vm1566_vm6 = vcmp.eq.f32.partialorder %v1565_v46, 8.507059e+37  ;;  %v1727_v14 = vand.u32 2147483648, %v3134_v60 }
 0xbbd   :  { %v1414_v33 = vmul.f32 %v2525_v25, %v1413_v30  ;;  %v1725_v17 = vand.u32 2147483647, %v3134_v60 }
 0xbbe   :  { %v3137_v34 = vpop.xlane.xlu0 %1714 }
 0xbbf   :  { %v1415_v37 = vadd.f32 %v2525_v25, %v1414_v33  ;;  %2530 = vrcp.f32 %v3137_v34  ;;  %v1728_v33 = vor.u32 1.1754944e-38, %v1727_v14 }
 0xbc0   :  { %v2527_v39 = vpop.eup %2526 }
 0xbc1   :  { %v1419_v40 = vsel %vm1418_vm13, %v2525_v25, %v1415_v37  ;;  %v1557_v41 = vmul.f32 %v2527_v39, %v1552_v18  ;;  %v1555_v43 = vpop.xlane.xlu2 %1554  ;;  %vm1562_vm15 = vweird.f32 %v2527_v39 }
 0xbc2   :  { %v3140_v42 = vpop.eup %2528  ;;  %v1424_v1 = vsel %vm1421_vm14, %v1423_v12, %v1419_v40  ;;  %2532 = vrcp.f32 %v1555_v43  ;;  %vm1563_vm5 = vmor %vm1561_vm4, %vm1562_vm15  ;;  %v1582_v5 = vand.u32 2147483648, %v1555_v43  ;;  %v1580_v58 = vand.u32 2147483647, %v1555_v43 }
 0xbc3   :  { %v3143_v32 = vmul.f32 %v3084_v11, %v1424_v1  ;;  %v1558_v44 = vsub.f32 1.0, %v1557_v41  ;;  %v1717_v9 = vmul.f32 %v3140_v42, %v3134_v60  ;;  %vm1722_vm11 = vweird.f32 %v3140_v42 }
 0xbc4   :  { %vm1576_vm12 = vweird.f32 %v1555_v43  ;;  %v1583_v16 = vor.u32 1.1754944e-38, %v1582_v5  ;;  %vm1721_vm14 = vweird.f32 %v3134_v60  ;;  %vm1581_vm15 = vcmp.eq.f32.partialorder %v1580_v58, 8.507059e+37  ;;  %v2407_v58 = vld [vmem:[%s3405_s5 + $0x18] sm:$0xff] }
 0xbc5   :  { %v1559_v15 = vmul.f32 %v2527_v39, %v1558_v44  ;;  %v1437_v47 = vpack.c.bf16 %v3143_v32, %v3143_v32  ;;  %v3149_v48 = vpop.eup %2530  ;;  %v1718_v52 = vsub.f32 1.0, %v1717_v9  ;;  %vm1723_vm4 = vmor %vm1721_vm14, %vm1722_vm11  ;;  %v1740_v40 = vand.u32 2147483647, %v3137_v34  ;;  %1844 = vmatpush.bf16.msrb.mxu0 %v2407_v58 }
 0xbc6   :  { %v1732_v0 = vmul.f32 %v3149_v48, %v3137_v34 }
 0xbc7   :  { %v1560_v51 = vadd.f32 %v2527_v39, %v1559_v15  ;;  %2312 = vmatmul.msk.bf16.vlgmr.msrb.gmra.mxu3 %vm178_vm8, %v1437_v47  ;;  %v1719_v63 = vmul.f32 %v3140_v42, %v1718_v52 }
 0xbc8   :  { %v2533_v11 = vpop.eup %2532 }
 0xbc9   :  { %v1564_v59 = vsel %vm1563_vm5, %v2527_v39, %v1560_v51  ;;  %v1572_v55 = vmul.f32 %v2533_v11, %v1555_v43  ;;  %v1599_v21 = vpop.permute.xlu2 %1598  ;;  %vm1577_vm7 = vweird.f32 %v2533_v11  ;;  %v1720_v8 = vadd.f32 %v3140_v42, %v1719_v63 }
 0xbca   :  { %v1569_v62 = vsel %vm1566_vm6, %v1568_v53, %v1564_v59  ;;  %v1604_v56 = vsel %vm281_vm9, %v1599_v21, 0  ;;  %vm1578_vm13 = vmor %vm1576_vm12, %vm1577_vm7  ;;  %vm1726_vm5 = vcmp.eq.f32.partialorder %v1725_v17, 8.507059e+37  ;;  %vm1737_vm6 = vweird.f32 %v3149_v48  ;;  %v2442_v17 = vld [vmem:[%s3404_s6 + $0x1] ss:$0 sm:$0xff] }
 0xbcb   :  { %v3154_v61 = vmul.f32 %v3089_v22, %v1569_v62  ;;  %v1573_v2 = vsub.f32 1.0, %v1572_v55  ;;  %1613 = vmatpush.bf16.msrb.mxu2 %v1604_v56  ;;  %v1733_v22 = vsub.f32 1.0, %v1732_v0  ;;  %v1724_v50 = vsel %vm1723_vm4, %v3140_v42, %v1720_v8 }
 0xbcc   :  { %v1729_v37 = vsel %vm1726_vm5, %v1728_v33, %v1724_v50  ;;  %vm1736_vm7 = vweird.f32 %v3137_v34  ;;  %vm1741_vm12 = vcmp.eq.f32.partialorder %v1740_v40, 8.507059e+37 }
 0xbcd   :  { %v1574_v6 = vmul.f32 %v2533_v11, %v1573_v2  ;;  %v1596_v7 = vpack.c.bf16 %v3154_v61, %v3154_v61  ;;  %v1734_v18 = vmul.f32 %v3149_v48, %v1733_v22  ;;  %v3181_v12 = vmul.f32 %v3091_v4, %v1729_v37  ;;  %vm1738_vm11 = vmor %vm1736_vm7, %vm1737_vm6 }
 0xbcf   :  { %v1575_v13 = vadd.f32 %v2533_v11, %v1574_v6  ;;  %2317 = vmatmul.msk.bf16.vlgmr.msrb.gmra.mxu2 %vm178_vm8, %v1596_v7  ;;  %v1735_v39 = vadd.f32 %v3149_v48, %v1734_v18  ;;  %v1756_v44 = vpack.c.bf16 %v3181_v12, %v3181_v12  ;;  %v2406_v7 = vld [vmem:[%s3405_s5 + $0x10] sm:$0xff] }
 0xbd0   :  { %1845 = vmatpush.bf16.msrb.mxu0 %v2406_v7 }
 0xbd1   :  { %v1579_v19 = vsel %vm1578_vm13, %v2533_v11, %v1575_v13  ;;  %v1620_v20 = vpop.permute.xlu2 %1619  ;;  %v1739_v42 = vsel %vm1738_vm11, %v3149_v48, %v1735_v39 }
 0xbd2   :  { %v1584_v49 = vsel %vm1581_vm15, %v1583_v16, %v1579_v19  ;;  %v1625_v25 = vsel %vm281_vm9, %v1620_v20, 0 }
 0xbd3   :  { %v3171_v30 = vmul.f32 %v3099_v27, %v1584_v49  ;;  %1634 = vmatpush.bf16.msra.mxu3 %v1625_v25  ;;  %v1780_v31 = vpop.permute.xlu1 %1779  ;;  %v1742_v27 = vand.u32 2147483648, %v3137_v34 }
 0xbd4   :  { %v1785_v54 = vsel %vm281_vm9, %v1780_v31, 0 }
 0xbd5   :  { %v1597_v60 = vpack.c.bf16 %v3171_v30, %v3171_v30  ;;  %v1743_v1 = vor.u32 1.1754944e-38, %v1742_v27 }
 0xbd7   :  { %1794 = vmatpush.bf16.msrb.mxu3 %v1785_v54  ;;  %v1744_v9 = vsel %vm1741_vm12, %v1743_v1, %v1739_v42  ;;  %v2409_v1 = vld [vmem:[%s3409_s9 + $0x18] sm:$0xff] }
 0xbd8   :  { %2318 = vmatmul.msk.bf16.vlgmr.msra.gmra.mxu3 %vm178_vm8, %v1597_v60  ;;  %v3191_v4 = vmul.f32 %v3095_v24, %v1744_v9  ;;  %1944 = vmatpush.bf16.msrb.mxu1 %v2409_v1 }
 0xbd9   :  { %v1759_v41 = vpop.permute.xlu2 %1758 }
 0xbda   :  { %v1764_v43 = vsel %vm281_vm9, %v1759_v41, 0  ;;  %v1757_v34 = vpack.c.bf16 %v3191_v4, %v3191_v4 }
 0xbdb   :  { %1773 = vmatpush.bf16.msra.mxu2 %v1764_v43 }
 0xbdf   :  { %2323 = vmatmul.msk.bf16.vlgmr.msra.gmra.mxu2 %vm178_vm8, %v1756_v44 }
 0xbe8   :  { %2324 = vmatmul.msk.bf16.vlgmr.msrb.gmra.mxu3 %vm178_vm8, %v1757_v34  ;;  %v2408_v34 = vld [vmem:[%s3409_s9 + $0x10] sm:$0xff] }
 0xbe9   :  { %1945 = vmatpush.bf16.msrb.mxu1 %v2408_v34 }
 0xc11   :  { %v1324_v45 = vpop.f32.mrf.mxu3 }
 0xc12   :  { %1329 = vst.msk [vmem:[#allocation2 + $0x8] sm:$0xff] %vm178_vm8, %v1324_v45 }
 0xc18   :  { %v1303_v15 = vpop.f32.mrf.mxu2 }
 0xc19   :  { %1328 = vst.msk [vmem:[#allocation2] sm:$0xff] %vm178_vm8, %v1303_v15  ;;  %v1326_v46 = vpop.f32.mrf.mxu3 }
 0xc20   :  { %v1305_v47 = vpop.f32.mrf.mxu2 }
 0xc28   :  { %v1455_v48 = vpop.f32.mrf.mxu2 }
 0xc29   :  { %1482 = vrot.lane.b32.xlu2 %v1455_v48, %s3447_s29 }
 0xc30   :  { %v1457_v51 = vpop.f32.mrf.mxu2 }
 0xc4a   :  { %v1476_v52 = vpop.f32.mrf.mxu3 }
 0xc4b   :  { %1484 = vrot.lane.b32.xlu0 %v1476_v52, %s3447_s29 }
 0xc52   :  { %v1478_v24 = vpop.f32.mrf.mxu3  ;;  %v1615_v11 = vpop.f32.mrf.mxu2 }
 0xc53   :  { %1642 = vrot.lane.b32.xlu2 %v1615_v11, %s3448_s30 }
 0xc5a   :  { %v1617_v53 = vpop.f32.mrf.mxu2 }
 0xc5b   :  { %v1636_v59 = vpop.f32.mrf.mxu3 }
 0xc5c   :  { %1644 = vrot.lane.b32.xlu2 %v1636_v59, %s3448_s30 }
 0xc62   :  { %v1775_v21 = vpop.f32.mrf.mxu2 }
 0xc63   :  { %v1638_v55 = vpop.f32.mrf.mxu3  ;;  %1802 = vrot.lane.b32.xlu1 %v1775_v21, %s3449_s26 }
 0xc6a   :  { %v1777_v62 = vpop.f32.mrf.mxu2 }
 0xc6b   :  { %v1796_v56 = vpop.f32.mrf.mxu3 }
 0xc6c   :  { %1804 = vrot.lane.b32.xlu0 %v1796_v56, %s3449_s26 }
 0xc73   :  { %v1798_v63 = vpop.f32.mrf.mxu3 }
 0xc74   :  { %v2443_v63 = vld [vmem:[%s3406_s7 + $0x1] ss:$0 sm:$0xff] }
 0xc83   :  { %v1483_v0 = vpop.permute.xlu2 %1482 }
 0xc84   :  { %1488 = vst.msk [vmem:[#allocation2] sm:$0xff] %vm425_vm1, %v1483_v0 }
 0xcad   :  { %v1643_v2 = vpop.permute.xlu2 %1642 }
 0xcae   :  { %1648 = vst.msk [vmem:[#allocation2] sm:$0xff] %vm586_vm2, %v1643_v2 }
 0xcb6   :  { %v1645_v6 = vpop.permute.xlu2 %1644 }
 0xcbd   :  { %v1485_v5 = vpop.permute.xlu0 %1484 }
 0xcbe   :  { %1489 = vst.msk [vmem:[#allocation2 + $0x8] sm:$0xff] %vm425_vm1, %v1485_v5 }
 0xcbf   :  { %1649 = vst.msk [vmem:[#allocation2 + $0x8] sm:$0xff] %vm586_vm2, %v1645_v6  ;;  %v2444_v6 = vld [vmem:[%s3407_s8 + $0x1] ss:$0 sm:$0xff] }
 0xcd5   :  { %v1803_v8 = vpop.permute.xlu1 %1802 }
 0xcd6   :  { %1808 = vst.msk [vmem:[#allocation2] sm:$0xff] %vm747_vm3, %v1803_v8 }
 0xcdd   :  { %v1810_v13 = vld [vmem:[#allocation2] sm:$0xff] }
 0xcde   :  { %v1805_v22 = vpop.permute.xlu0 %1804 }
 0xcdf   :  { %1809 = vst.msk [vmem:[#allocation2 + $0x8] sm:$0xff] %vm747_vm3, %v1805_v22 }
 0xce6   :  { %v1811_v14 = vld [vmem:[#allocation2 + $0x8] sm:$0xff] }
 0xce7   :  { %v1812_v16 = vpack.c.bf16 %v1811_v14, %v1810_v13 }
 0xce9   :  { %2338 = vmatmul.msk.bf16.vlgmr.msrb.gmra.mxu0 %vm71_vm0, %v1812_v16  ;;  %v2445_v16 = vld [vmem:[%s3408_s10 + $0x1] ss:$0 sm:$0xff] }
 0xd66   :  { %v1847_v19 = vpop.f32.mrf.mxu0 }
 0xd67   :  { %v1848_v20 = vadd.f32 %v2442_v17, %v1847_v19 }
 0xd69   :  { %v1852_v49 = vadd.f32 %v1848_v20, %v2998_v28 }
 0xd6b   :  { %v1858_v25 = vsel %vm71_vm0, %v1852_v49, 0.0 }
 0xd6c   :  { %1859 = vadd.xlane.f32.xlu2 %v1858_v25 }
 0xd6e   :  { %v1849_v50 = vpop.f32.mrf.mxu0 }
 0xd6f   :  { %v1850_v18 = vadd.f32 %v2442_v17, %v1849_v50 }
 0xd71   :  { %v1853_v31 = vadd.f32 %v1850_v18, %v3000_v29 }
 0xd73   :  { %v1861_v33 = vsel %vm71_vm0, %v1853_v31, 0.0 }
 0xd74   :  { %1862 = vadd.xlane.f32.xlu1 %v1861_v33 }
 0xddf   :  { %v1860_v54 = vpop.xlane.xlu2 %1859 }
 0xde0   :  { %v1864_v60 = vmul.f32 %v1860_v54, %v2678_v10 }
 0xde2   :  { %v1866_v37 = vsub.f32 %v1852_v49, %v1864_v60 }
 0xde4   :  { %v1868_v39 = vmul.f32 %v1866_v37, %v1866_v37 }
 0xde6   :  { %v1870_v27 = vsel %vm71_vm0, %v1868_v39, 0.0 }
 0xde7   :  { %v1863_v40 = vpop.xlane.xlu1 %1862  ;;  %1871 = vadd.xlane.f32.xlu0 %v1870_v27 }
 0xde8   :  { %v1865_v28 = vmul.f32 %v1863_v40, %v2678_v10 }
 0xdea   :  { %v1867_v41 = vsub.f32 %v1853_v31, %v1865_v28 }
 0xdec   :  { %v1869_v43 = vmul.f32 %v1867_v41, %v1867_v41 }
 0xdee   :  { %v1873_v42 = vsel %vm71_vm0, %v1869_v43, 0.0 }
 0xdef   :  { %1874 = vadd.xlane.f32.xlu2 %v1873_v42  ;;  %v2413_v42 = vld [vmem:[%s3411_s11 + $0x38] sm:$0xff] }
 0xdf0   :  { %2086 = vmatpush.bf16.msrb.mxu2 %v2413_v42 }
 0xe5a   :  { %v1872_v29 = vpop.xlane.xlu0 %1871 }
 0xe5b   :  { %v1876_v44 = vmul.f32 %v1872_v29, %v2678_v10 }
 0xe5d   :  { %v1878_v9 = vadd.f32 1e-12, %v1876_v44 }
 0xe5f   :  { %2534 = vrsqrt.f32 %v1878_v9  ;;  %vm1886_vm9 = vweird.f32 %v1878_v9 }
 0xe62   :  { %v1875_v45 = vpop.xlane.xlu2 %1874 }
 0xe63   :  { %v1877_v15 = vmul.f32 %v1875_v45, %v2678_v10 }
 0xe65   :  { %v2535_v46 = vpop.eup %2534  ;;  %v1879_v47 = vadd.f32 1e-12, %v1877_v15 }
 0xe66   :  { %v1881_v48 = vmul.f32 %v2535_v46, %v1878_v9  ;;  %vm1887_vm8 = vweird.f32 %v2535_v46 }
 0xe67   :  { %2536 = vrsqrt.f32 %v1879_v47  ;;  %vm1888_vm13 = vmor %vm1886_vm9, %vm1887_vm8  ;;  %vm1896_vm15 = vweird.f32 %v1879_v47 }
 0xe68   :  { %v1882_v51 = vmul.f32 %v2535_v46, %v1881_v48 }
 0xe6a   :  { %v1883_v52 = vmul.f32 0.5, %v1882_v51 }
 0xe6c   :  { %v1884_v24 = vsub.f32 1.5, %v1883_v52 }
 0xe6d   :  { %v2537_v11 = vpop.eup %2536 }
 0xe6e   :  { %v1885_v53 = vmul.f32 %v2535_v46, %v1884_v24  ;;  %v1891_v59 = vmul.f32 %v2537_v11, %v1879_v47  ;;  %vm1897_vm14 = vweird.f32 %v2537_v11 }
 0xe6f   :  { %vm1898_vm4 = vmor %vm1896_vm15, %vm1897_vm14 }
 0xe70   :  { %v1892_v55 = vmul.f32 %v2537_v11, %v1891_v59  ;;  %v1889_v21 = vsel %vm1888_vm13, %v2535_v46, %v1885_v53  ;;  %v2412_v46 = vld [vmem:[%s3411_s11 + $0x30] sm:$0xff]  ;;  %v2411_v59 = vld [vmem:[%s3411_s11 + $0x28] sm:$0xff] }
 0xe71   :  { %v1900_v0 = vmul.f32 %v1889_v21, %v1866_v37  ;;  %2087 = vmatpush.bf16.msrb.mxu2 %v2412_v46 }
 0xe72   :  { %v1893_v62 = vmul.f32 0.5, %v1892_v55 }
 0xe73   :  { %v1905_v58 = vmul.f32 %v2443_v63, %v1900_v0  ;;  %v2410_v0 = vld [vmem:[%s3411_s11 + $0x20] sm:$0xff] }
 0xe74   :  { %v1894_v56 = vsub.f32 1.5, %v1893_v62 }
 0xe75   :  { %v3242_v22 = vadd.f32 %v2444_v6, %v1905_v58  ;;  %2088 = vmatpush.bf16.msrb.mxu2 %v2411_v59 }
 0xe76   :  { %v1895_v2 = vmul.f32 %v2537_v11, %v1894_v56 }
 0xe78   :  { %v1899_v5 = vsel %vm1898_vm4, %v2537_v11, %v1895_v2 }
 0xe79   :  { %v1901_v7 = vmul.f32 %v1899_v5, %v1867_v41  ;;  %2089 = vmatpush.bf16.msrb.mxu2 %v2410_v0 }
 0xe7b   :  { %v1906_v8 = vmul.f32 %v2443_v63, %v1901_v7 }
 0xe7d   :  { %v3244_v13 = vadd.f32 %v2444_v6, %v1906_v8 }
 0xe7f   :  { %v1912_v14 = vpack.c.bf16 %v3244_v13, %v3242_v22 }
 0xe81   :  { %2354 = vmatmul.msk.bf16.vlgmr.msrb.gmra.mxu1 %vm71_vm0, %v1912_v14 }
 0xefe   :  { %v1947_v17 = vpop.f32.mrf.mxu1 }
 0xeff   :  { %v3252_v19 = vadd.f32 %v2445_v16, %v1947_v17 }
 0xf01   :  { %v3255_v20 = vmul.f32 0.70710677, %v3252_v19 }
 0xf03   :  { %v1956_v49 = vmul.f32 %v3255_v20, %v3255_v20 }
 0xf05   :  { %v1957_v25 = vmin.f32 %v1956_v49, 16.0 }
 0xf06   :  { %v1949_v50 = vpop.f32.mrf.mxu1 }
 0xf07   :  { %v1958_v18 = vmul.f32 2.1237322e-06, %v1957_v25  ;;  %v1969_v31 = vmul.f32 3.8918573e-05, %v1957_v25  ;;  %v3259_v33 = vadd.f32 %v2445_v16, %v1949_v50 }
 0xf09   :  { %v1959_v54 = vadd.f32 0.00028619796, %v1958_v18  ;;  %v1970_v60 = vadd.f32 0.001143296, %v1969_v31  ;;  %v3262_v37 = vmul.f32 0.70710677, %v3259_v33 }
 0xf0b   :  { %v1971_v39 = vmul.f32 %v1970_v60, %v1957_v25  ;;  %v1996_v27 = vmul.f32 %v3262_v37, %v3262_v37  ;;  %v1960_v40 = vmul.f32 %v1959_v54, %v1957_v25 }
 0xf0d   :  { %v1972_v28 = vadd.f32 0.014752088, %v1971_v39  ;;  %v1997_v41 = vmin.f32 %v1996_v27, 16.0  ;;  %v1961_v44 = vadd.f32 0.0036580483, %v1960_v40 }
 0xf0f   :  { %v1973_v43 = vmul.f32 %v1972_v28, %v1957_v25  ;;  %v1998_v29 = vmul.f32 2.1237322e-06, %v1997_v41  ;;  %v2009_v1 = vmul.f32 3.8918573e-05, %v1997_v41  ;;  %v1962_v51 = vmul.f32 %v1961_v44, %v1957_v25 }
 0xf11   :  { %v1974_v9 = vadd.f32 0.112945676, %v1973_v43  ;;  %v1999_v34 = vadd.f32 0.00028619796, %v1998_v29  ;;  %v2010_v45 = vadd.f32 0.001143296, %v2009_v1 }
 0xf12   :  { %v1963_v21 = vadd.f32 0.05243302, %v1962_v51 }
 0xf13   :  { %v1975_v15 = vmul.f32 %v1974_v9, %v1957_v25  ;;  %v2000_v47 = vmul.f32 %v1999_v34, %v1997_v41  ;;  %v2011_v48 = vmul.f32 %v2010_v45, %v1997_v41 }
 0xf14   :  { %v1964_v5 = vmul.f32 %v1963_v21, %v1957_v25  ;;  %v1953_v21 = vmul.f32 0.5, %v3259_v33 }
 0xf15   :  { %v1976_v52 = vadd.f32 0.4994258, %v1975_v15  ;;  %v2001_v24 = vadd.f32 0.0036580483, %v2000_v47  ;;  %v2012_v11 = vadd.f32 0.014752088, %v2011_v48 }
 0xf16   :  { %v1965_v14 = vadd.f32 0.18741608, %v1964_v5 }
 0xf17   :  { %v1977_v53 = vmul.f32 %v1976_v52, %v1957_v25  ;;  %v2013_v55 = vmul.f32 %v2012_v11, %v1997_v41  ;;  %v2002_v56 = vmul.f32 %v2001_v24, %v1997_v41 }
 0xf18   :  { %v1966_v18 = vmul.f32 %v1965_v14, %v1957_v25 }
 0xf19   :  { %v1978_v62 = vadd.f32 1.0, %v1977_v53  ;;  %v2014_v63 = vadd.f32 0.112945676, %v2013_v55  ;;  %v2003_v6 = vadd.f32 0.05243302, %v2002_v56  ;;  %v1952_v55 = vmul.f32 0.5, %v3252_v19 }
 0xf1a   :  { %v1967_v40 = vadd.f32 1.1283791, %v1966_v18 }
 0xf1b   :  { %2538 = vrcp.f32 %v1978_v62  ;;  %v2015_v2 = vmul.f32 %v2014_v63, %v1997_v41  ;;  %v2004_v17 = vmul.f32 %v2003_v6, %v1997_v41  ;;  %v1990_v54 = vand.u32 2147483648, %v1978_v62 }
 0xf1c   :  { %v1988_v39 = vand.u32 2147483647, %v1978_v62  ;;  %vm1984_vm6 = vweird.f32 %v1978_v62  ;;  %v1968_v9 = vmul.f32 %v1967_v40, %v3255_v20 }
 0xf1d   :  { %v2016_v58 = vadd.f32 0.4994258, %v2015_v2  ;;  %v2005_v60 = vadd.f32 0.18741608, %v2004_v17  ;;  %v1991_v42 = vor.u32 1.1754944e-38, %v1990_v54 }
 0xf1e   :  { %vm1989_vm11 = vcmp.eq.f32.partialorder %v1988_v39, 8.507059e+37 }
 0xf1f   :  { %v2017_v7 = vmul.f32 %v2016_v58, %v1997_v41  ;;  %v2006_v29 = vmul.f32 %v2005_v60, %v1997_v41 }
 0xf21   :  { %v2539_v8 = vpop.eup %2538  ;;  %v2018_v49 = vadd.f32 1.0, %v2017_v7  ;;  %v2007_v25 = vadd.f32 1.1283791, %v2006_v29 }
 0xf22   :  { %v1980_v16 = vmul.f32 %v2539_v8, %v1978_v62  ;;  %vm1985_vm5 = vweird.f32 %v2539_v8 }
 0xf23   :  { %2540 = vrcp.f32 %v2018_v49  ;;  %vm1986_vm7 = vmor %vm1984_vm6, %vm1985_vm5  ;;  %v2030_v45 = vand.u32 2147483648, %v2018_v49  ;;  %v2028_v47 = vand.u32 2147483647, %v2018_v49  ;;  %vm2024_vm8 = vweird.f32 %v2018_v49 }
 0xf24   :  { %v1981_v50 = vsub.f32 1.0, %v1980_v16  ;;  %v2008_v24 = vmul.f32 %v2007_v25, %v3262_v37  ;;  %v2446_v37 = vld [vmem:[%s3410_s12 + $0x1] ss:$0 sm:$0xff] }
 0xf25   :  { %v2031_v51 = vor.u32 1.1754944e-38, %v2030_v45  ;;  %vm2029_vm13 = vcmp.eq.f32.partialorder %v2028_v47, 8.507059e+37  ;;  %v2447_v25 = vld [vmem:[%s3412_s13 + $0x1] ss:$0 sm:$0xff] }
 0xf26   :  { %v1982_v31 = vmul.f32 %v2539_v8, %v1981_v50  ;;  %v2448_v47 = vld [vmem:[%s3413_s14 + $0x1] ss:$0 sm:$0xff] }
 0xf28   :  { %v1983_v27 = vadd.f32 %v2539_v8, %v1982_v31 }
 0xf29   :  { %v2541_v28 = vpop.eup %2540 }
 0xf2a   :  { %v1987_v43 = vsel %vm1986_vm7, %v2539_v8, %v1983_v27  ;;  %v2020_v1 = vmul.f32 %v2541_v28, %v2018_v49  ;;  %vm2025_vm12 = vweird.f32 %v2541_v28 }
 0xf2b   :  { %v1992_v44 = vsel %vm1989_vm11, %v1991_v42, %v1987_v43  ;;  %vm2026_vm9 = vmor %vm2024_vm8, %vm2025_vm12 }
 0xf2c   :  { %v2021_v34 = vsub.f32 1.0, %v2020_v1  ;;  %v1993_v15 = vmul.f32 %v1992_v44, %v1968_v9 }
 0xf2e   :  { %v2022_v46 = vmul.f32 %v2541_v28, %v2021_v34  ;;  %v2355_v52 = vclamps-f32 %v1993_v15, 1.0 }
 0xf30   :  { %v2023_v48 = vadd.f32 %v2541_v28, %v2022_v46  ;;  %v2036_v59 = vadd.f32 1.0, %v2355_v52 }
 0xf32   :  { %v2027_v41 = vsel %vm2026_vm9, %v2541_v28, %v2023_v48  ;;  %v2038_v56 = vmul.f32 %v2036_v59, %v1952_v55 }
 0xf33   :  { %v2032_v11 = vsel %vm2029_vm13, %v2031_v51, %v2027_v41 }
 0xf34   :  { %v2033_v53 = vmul.f32 %v2032_v11, %v2008_v24 }
 0xf36   :  { %v2356_v20 = vclamps-f32 %v2033_v53, 1.0 }
 0xf38   :  { %v2037_v62 = vadd.f32 1.0, %v2356_v20 }
 0xf3a   :  { %v2039_v63 = vmul.f32 %v2037_v62, %v1953_v21 }
 0xf3c   :  { %v2040_v0 = vpack.c.bf16 %v2039_v63, %v2038_v56  ;;  %v2449_v63 = vld [vmem:[%s3414_s16] ss:$0 sm:$0xff] }
 0xf3e   :  { %2382 = vmatmul.msk.bf16.vlgmr.msrb.gmra.mxu2 %vm1065_vm10, %v2040_v0 }
 0xfc1   :  { %v2091_v2 = vpop.f32.mrf.mxu2 }
 0xfc2   :  { %v2092_v5 = vadd.f32 %v2446_v37, %v2091_v2  ;;  %v2450_v2 = vld [vmem:[%s3416_s17] ss:$0 sm:$0xff] }
 0xfc4   :  { %v2096_v6 = vadd.f32 %v2092_v5, %v3242_v22 }
 0xfc6   :  { %v2102_v58 = vsel %vm71_vm0, %v2096_v6, 0.0 }
 0xfc7   :  { %2103 = vadd.xlane.f32.xlu1 %v2102_v58 }
 0xfc9   :  { %v2093_v19 = vpop.f32.mrf.mxu2 }
 0xfca   :  { %v2094_v7 = vadd.f32 %v2446_v37, %v2093_v19  ;;  %v26_v19 = vstv %s3417_s18 }
 0xfcb   :  { %27 = vst [vmem:[#allocation3] sm:$0x1] %v26_v19 }
 0xfcc   :  { %v2097_v33 = vadd.f32 %v2094_v7, %v3244_v13 }
 0xfce   :  { %v2105_v8 = vsel %vm71_vm0, %v2097_v33, 0.0 }
 0xfcf   :  { %2106 = vadd.xlane.f32.xlu0 %v2105_v8 }
 0xfe3   :  { %419 = vrot.lane.b32.xlu0 %v2833_v26, %s3447_s29 }
 0xfeb   :  { %582 = vrot.lane.b32.xlu0 %v2861_v23, %s3448_s30 }
0x103a   :  { %v2104_v14 = vpop.xlane.xlu1 %2103 }
0x103b   :  { %v2108_v16 = vmul.f32 %v2104_v14, %v2678_v10 }
0x103d   :  { %v2110_v22 = vsub.f32 %v2096_v6, %v2108_v16 }
0x103f   :  { %v2112_v17 = vmul.f32 %v2110_v22, %v2110_v22 }
0x1041   :  { %v2114_v49 = vsel %vm71_vm0, %v2112_v17, 0.0 }
0x1042   :  { %v2107_v50 = vpop.xlane.xlu0 %2106  ;;  %2115 = vadd.xlane.f32.xlu2 %v2114_v49 }
0x1043   :  { %v2109_v13 = vmul.f32 %v2107_v50, %v2678_v10 }
0x1045   :  { %v2111_v18 = vsub.f32 %v2097_v33, %v2109_v13 }
0x1047   :  { %v2113_v31 = vmul.f32 %v2111_v18, %v2111_v18 }
0x1049   :  { %v2117_v54 = vsel %vm71_vm0, %v2113_v31, 0.0 }
0x104a   :  { %2118 = vadd.xlane.f32.xlu1 %v2117_v54 }
0x1055   :  { %v420_v26 = vpop.permute.xlu0 %419 }
0x1056   :  { %426 = vst.msk [vmem:[%s3403_s19] sm:$0xff] %vm425_vm1, %v420_v26 }
0x105a   :  { %421 = vrot.lane.b32.xlu2 %v2839_v38, %s3447_s29  ;;  %v2415_v38 = vld [vmem:[%s3415_s15 + $0x8] sm:$0xff] }
0x105b   :  { %2186 = vmatpush.bf16.msra.mxu3 %v2415_v38 }
0x1063   :  { %580 = vrot.lane.b32.xlu1 %v2851_v57, %s3448_s30 }
0x106b   :  { %1428 = vrot.lane.b32.xlu1 %v3129_v3, %s3447_s29 }
0x1073   :  { %1430 = vrot.lane.b32.xlu1 %v3143_v32, %s3447_s29  ;;  %v2414_v32 = vld [vmem:[%s3415_s15] sm:$0xff] }
0x1074   :  { %2187 = vmatpush.bf16.msra.mxu3 %v2414_v32 }
0x107b   :  { %1588 = vrot.lane.b32.xlu1 %v3154_v61, %s3448_s30 }
0x1083   :  { %1590 = vrot.lane.b32.xlu1 %v3171_v30, %s3448_s30  ;;  %v583_v30 = vpop.permute.xlu0 %582 }
0x108b   :  { %741 = vrot.lane.b32.xlu1 %v2871_v35, %s3449_s26 }
0x1093   :  { %1750 = vrot.lane.b32.xlu1 %v3191_v4, %s3449_s26 }
0x10b5   :  { %v2116_v57 = vpop.xlane.xlu2 %2115 }
0x10b6   :  { %v2120_v23 = vmul.f32 %v2116_v57, %v2678_v10 }
0x10b8   :  { %v2122_v3 = vadd.f32 1e-12, %v2120_v23 }
0x10ba   :  { %2542 = vrsqrt.f32 %v2122_v3  ;;  %vm2130_vm14 = vweird.f32 %v2122_v3 }
0x10bd   :  { %v422_v61 = vpop.permute.xlu2 %421  ;;  %v2119_v35 = vpop.xlane.xlu1 %2118 }
0x10be   :  { %427 = vst.msk [vmem:[%s3403_s19 + $0x8] sm:$0xff] %vm425_vm1, %v422_v61  ;;  %v2121_v4 = vmul.f32 %v2119_v35, %v2678_v10 }
0x10bf   :  { %588 = vst.msk [vmem:[%s3403_s19 + $0x8] sm:$0xff] %vm586_vm2, %v583_v30 }
0x10c0   :  { %v2543_v60 = vpop.eup %2542  ;;  %v2123_v39 = vadd.f32 1e-12, %v2121_v4 }
0x10c1   :  { %v2125_v27 = vmul.f32 %v2543_v60, %v2122_v3  ;;  %vm2131_vm10 = vweird.f32 %v2543_v60 }
0x10c2   :  { %2544 = vrsqrt.f32 %v2123_v39  ;;  %vm2132_vm15 = vmor %vm2130_vm14, %vm2131_vm10  ;;  %vm2140_vm5 = vweird.f32 %v2123_v39 }
0x10c3   :  { %v2126_v40 = vmul.f32 %v2543_v60, %v2125_v27 }
0x10c5   :  { %v2127_v28 = vmul.f32 0.5, %v2126_v40 }
0x10c7   :  { %v2128_v43 = vsub.f32 1.5, %v2127_v28 }
0x10c8   :  { %v2545_v42 = vpop.eup %2544 }
0x10c9   :  { %v2129_v29 = vmul.f32 %v2543_v60, %v2128_v43  ;;  %v2135_v1 = vmul.f32 %v2545_v42, %v2123_v39  ;;  %vm2141_vm4 = vweird.f32 %v2545_v42 }
0x10ca   :  { %vm2142_vm6 = vmor %vm2140_vm5, %vm2141_vm4 }
0x10cb   :  { %v2136_v44 = vmul.f32 %v2545_v42, %v2135_v1  ;;  %v2133_v10 = vsel %vm2132_vm15, %v2543_v60, %v2129_v29 }
0x10cc   :  { %v2144_v45 = vmul.f32 %v2133_v10, %v2110_v22  ;;  %v2451_v22 = vld [vmem:[#allocation3] ss:$0 sm:$0xff] }
0x10cd   :  { %v2137_v9 = vmul.f32 0.5, %v2136_v44 }
0x10ce   :  { %v2149_v48 = vmul.f32 %v2447_v25, %v2144_v45 }
0x10cf   :  { %v2138_v34 = vsub.f32 1.5, %v2137_v9 }
0x10d0   :  { %v2154_v41 = vadd.f32 %v2448_v47, %v2149_v48 }
0x10d1   :  { %v2139_v15 = vmul.f32 %v2545_v42, %v2138_v34 }
0x10d3   :  { %v2143_v46 = vsel %vm2142_vm6, %v2545_v42, %v2139_v15 }
0x10d4   :  { %v2145_v51 = vmul.f32 %v2143_v46, %v2111_v18 }
0x10d5   :  { %v581_v52 = vpop.permute.xlu1 %580 }
0x10d6   :  { %v2150_v24 = vmul.f32 %v2447_v25, %v2145_v51  ;;  %587 = vst.msk [vmem:[%s3403_s19] sm:$0xff] %vm586_vm2, %v581_v52 }
0x10d8   :  { %v2155_v11 = vadd.f32 %v2448_v47, %v2150_v24 }
0x10da   :  { %v2156_v53 = vpack.c.bf16 %v2155_v11, %v2154_v41 }
0x10dc   :  { %2393 = vmatmul.msk.bf16.vlgmr.msra.gmra.mxu3 %vm71_vm0, %v2156_v53 }
0x10dd   :  { %v1429_v59 = vpop.permute.xlu1 %1428 }
0x10de   :  { %2309 = vst.msk [vmem:[%s3403_s19 + $0x10] sm:$0xff] %vm425_vm1, %v1429_v59 }
0x10e5   :  { %v1431_v20 = vpop.permute.xlu1 %1430 }
0x10e6   :  { %2310 = vst.msk [vmem:[%s3403_s19 + $0x18] sm:$0xff] %vm425_vm1, %v1431_v20  ;;  %vm2214_vm1 = vcmask 7168  }
0x10ed   :  { %v1589_v55 = vpop.permute.xlu1 %1588 }
0x10ee   :  { %2315 = vst.msk [vmem:[%s3403_s19 + $0x10] sm:$0xff] %vm586_vm2, %v1589_v55 }
0x10f5   :  { %v1591_v21 = vpop.permute.xlu1 %1590 }
0x10f6   :  { %2316 = vst.msk [vmem:[%s3403_s19 + $0x18] sm:$0xff] %vm586_vm2, %v1591_v21 }
0x10fd   :  { %v742_v62 = vpop.permute.xlu1 %741 }
0x10fe   :  { %748 = vst.msk [vmem:[%s3403_s19] sm:$0xff] %vm747_vm3, %v742_v62 }
0x1105   :  { %v1751_v56 = vpop.permute.xlu1 %1750 }
0x1106   :  { %2322 = vst.msk [vmem:[%s3403_s19 + $0x18] sm:$0xff] %vm747_vm3, %v1751_v56 }
0x115f   :  { %v2189_v0 = vpop.f32.mrf.mxu3 }
0x1160   :  { %v2190_v37 = vadd.f32 %v2449_v63, %v2189_v0 }
0x1162   :  { %2546 = vtanh.f32 %v2190_v37 }
0x1167   :  { %v2191_v5 = vpop.f32.mrf.mxu3 }
0x1168   :  { %v2547_v6 = vpop.eup %2546  ;;  %v2192_v58 = vadd.f32 %v2449_v63, %v2191_v5 }
0x1169   :  { %v2200_v7 = vmul.f32 %v2547_v6, %v2450_v2 }
0x116a   :  { %2548 = vtanh.f32 %v2192_v58 }
0x116b   :  { %v2202_v33 = vsel %vm71_vm0, %v2200_v7, 0.0 }
0x116c   :  { %2203 = vadd.xlane.f32.xlu2 %v2202_v33 }
0x1170   :  { %v2549_v8 = vpop.eup %2548 }
0x1171   :  { %v2201_v14 = vmul.f32 %v2549_v8, %v2450_v2 }
0x1173   :  { %v2205_v16 = vsel %vm71_vm0, %v2201_v14, 0.0 }
0x1174   :  { %2206 = vadd.xlane.f32.xlu0 %v2205_v16 }
0x1184   :  { %743 = vrot.lane.b32.xlu2 %v2881_v36, %s3449_s26 }
0x1188   :  { %1748 = vrot.lane.b32.xlu0 %v3181_v12, %s3449_s26 }
0x11df   :  { %v2204_v17 = vpop.xlane.xlu2 %2203 }
0x11e0   :  { %v2212_v49 = vadd.f32 %v2451_v22, %v2204_v17 }
0x11e2   :  { %2215 = vst.msk [vmem:[%s3418_s20] sm:$0xff] %vm2214_vm1, %v2212_v49 }
0x11e7   :  { %v2207_v50 = vpop.xlane.xlu0 %2206  ;;  %v744_v13 = vpop.permute.xlu2 %743 }
0x11e8   :  { %v2213_v18 = vadd.f32 %v2451_v22, %v2207_v50  ;;  %749 = vst.msk [vmem:[%s3403_s19 + $0x8] sm:$0xff] %vm747_vm3, %v744_v13 }
0x11ea   :  { %2216 = vst.msk [vmem:[%s3418_s20 + $0x8] sm:$0xff] %vm2214_vm1, %v2213_v18 }
0x11fa   :  { %v1749_v36 = vpop.permute.xlu0 %1748 }
0x11fb   :  { %2321 = vst.msk [vmem:[%s3403_s19 + $0x10] sm:$0xff] %vm747_vm3, %v1749_v36 }

</bundles_post_ra>
